<compile_context>
chip_gen: v7x
topology: tpu7x:2x2x1
jax: 0.10.0
libtpu: 0.0.40
codegen_flags: <defaults>
</compile_context>

<pallas_src>
import jax
import jax.numpy as jnp
from jax import lax
from jax.experimental import pallas as pl
from jax.experimental.pallas import tpu as pltpu

IN_FEATURES = 196608   # fixed by Linear(196608, 10)
OUT_FEATURES = 10


def _linear_bias_kernel(x_ref, w_ref, b_ref, o_ref):
    """Single-TC path: grid axis 0 is the K reduction.

    x_ref: (B, tk) bf16, w_ref: (OUT, tk) bf16 (native PyTorch layout, K on
    lanes), b_ref: (1, OUT) f32, o_ref: (B, OUT) f32 resident accumulator
    (output block index is constant across the reduction axis).
    """
    k = pl.program_id(0)

    # Contract last (lane) axis of both tiles: x (B, tk) . w (OUT, tk)^T.
    # Same NT contraction as flash attention's q @ k.T -> MXU transposed latch,
    # no XLU transpose of the big weight tile, f32 accumulation.
    partial = lax.dot_general(
        x_ref[...],
        w_ref[...],
        dimension_numbers=(((1,), (1,)), ((), ())),
        preferred_element_type=jnp.float32,
    )

    @pl.when(k == 0)
    def _init():
        # Fold the bias into the first reduction step: no wrapper epilogue op.
        o_ref[...] = partial + b_ref[...]

    @pl.when(k > 0)
    def _accumulate():
        o_ref[...] += partial


def _linear_partial_kernel(x_ref, w_ref, o_ref):
    """Multi-split (v7x 2-TC) path: axis 0 = K-half (CORE_PARALLEL), axis 1 = K
    reduction within the half.  Produces one partial (B, OUT) block per split;
    bias + partial-sum happen in the wrapper."""
    k = pl.program_id(1)
    partial = lax.dot_general(
        x_ref[...],
        w_ref[...],
        dimension_numbers=(((1,), (1,)), ((), ())),
        preferred_element_type=jnp.float32,
    )

    @pl.when(k == 0)
    def _init():
        o_ref[...] = partial

    @pl.when(k > 0)
    def _accumulate():
        o_ref[...] += partial


def tudui_linear(x, w, b, *, tk=49152, num_splits=1):
    """x: (B, K), w: (OUT, K) (native PyTorch layout), b: (OUT,).

    Returns x @ w.T + b, shape (B, OUT), f32.
    num_splits=1 (default) is the single-TensorCore path (v5e/v6e; also safe on
    v7x).  On v7x use num_splits=2 so each TensorCore owns one K-half
    (CORE_PARALLEL), and consider sweeping tk in {16384, 24576, 49152}.
    """
    B, K = x.shape
    N, K2 = w.shape
    assert K == K2, "weight K must match input K"
    assert K % (num_splits * tk) == 0, "K must divide evenly into splits*tk"
    steps = K // (num_splits * tk)

    # bf16 operands, f32 accumulation (biggest HBM-traffic lever; weight bytes
    # dominate).  Bias stays f32 and is added in f32.
    xb = x.astype(jnp.bfloat16)
    wb = w.astype(jnp.bfloat16)
    bf = b.astype(jnp.float32).reshape(1, N)

    cost = pl.CostEstimate(
        flops=2 * B * N * K,
        bytes_accessed=2 * B * K + 2 * N * K + 4 * N + 4 * B * N,
        transcendentals=0,
    )

    if num_splits == 1:
        out = pl.pallas_call(
            _linear_bias_kernel,
            out_shape=jax.ShapeDtypeStruct((B, N), jnp.float32),
            grid_spec=pltpu.PrefetchScalarGridSpec(
                num_scalar_prefetch=0,
                grid=(steps,),
                in_specs=[
                    # x tile: all batch rows, tk contiguous features (K on lanes)
                    pl.BlockSpec((B, tk), lambda k: (0, k)),
                    # weight tile: all 10 output rows, tk features (lane-dense)
                    pl.BlockSpec((N, tk), lambda k: (0, k)),
                    # bias: tiny constant block
                    pl.BlockSpec((1, N), lambda k: (0, 0)),
                ],
                # single resident output block = f32 accumulator across the
                # whole reduction; written back to HBM once.
                out_specs=pl.BlockSpec((B, N), lambda k: (0, 0)),
            ),
            compiler_params=pltpu.CompilerParams(
                dimension_semantics=("arbitrary",),
            ),
            cost_estimate=cost,
        )(xb, wb, bf)
        return out.astype(x.dtype)

    # ---- v7x (2 TensorCores) path: shard K halves across cores. ----
    partials = pl.pallas_call(
        _linear_partial_kernel,
        out_shape=jax.ShapeDtypeStruct((num_splits, B, N), jnp.float32),
        grid_spec=pltpu.PrefetchScalarGridSpec(
            num_scalar_prefetch=0,
            grid=(num_splits, steps),
            in_specs=[
                pl.BlockSpec((B, tk), lambda p, k: (0, p * steps + k)),
                pl.BlockSpec((N, tk), lambda p, k: (0, p * steps + k)),
            ],
            out_specs=pl.BlockSpec((None, B, N), lambda p, k: (p, 0, 0)),
        ),
        compiler_params=pltpu.CompilerParams(
            # Guarantee the split actually lands on the two TensorCores.
            dimension_semantics=(pltpu.CORE_PARALLEL, pltpu.ARBITRARY),
        ),
        cost_estimate=cost,
    )(xb, wb)
    return (partials.sum(axis=0) + b).astype(x.dtype)


def init_params(key):
    """Mimics torch.nn.Linear default init (uniform +-1/sqrt(in_features))."""
    kw, kb = jax.random.split(key)
    bound = 1.0 / jnp.sqrt(jnp.float32(IN_FEATURES))
    # Native PyTorch layout: (out_features, in_features)
    w = jax.random.uniform(
        kw, (OUT_FEATURES, IN_FEATURES), jnp.float32, -bound, bound
    )
    b = jax.random.uniform(kb, (OUT_FEATURES,), jnp.float32, -bound, bound)
    return w, b


if __name__ == "__main__":
    key = jax.random.PRNGKey(0)
    k_param, k_x = jax.random.split(key)

    w, b = init_params(k_param)

    # Batch is free; feature dim is fixed at 196608 by the module definition.
    B = 2
    x = jax.random.normal(k_x, (B, IN_FEATURES), jnp.float32)

    fwd = jax.jit(lambda x, w, b: tudui_linear(x, w, b))
    out = jax.block_until_ready(fwd(x, w, b))

    # Reference with matched bf16 operand precision (f32 accumulate) -> tight.
    ref_bf16 = jnp.dot(
        x.astype(jnp.bfloat16), w.astype(jnp.bfloat16).T,
        preferred_element_type=jnp.float32,
    ) + b
    # Full f32 reference (PyTorch semantics) -> loose, bf16 operand rounding
    # over the K=196608 reduction deviates by O(1e-3).
    ref_f32 = x @ w.T + b

    assert out.shape == (B, OUT_FEATURES)
    assert out.dtype == jnp.float32
    assert jnp.allclose(out, ref_bf16, atol=1e-3, rtol=1e-3)
    assert jnp.allclose(out, ref_f32, atol=3e-2, rtol=3e-2)

    print("KERNEL_OK")
</pallas_src>

<mosaic_0001>
module attributes {stable_mosaic.version = 11 : i64} {
  func.func @_linear_bias_kernel(%arg0: i32, %arg1: memref<2x49152xbf16, #tpu.memory_space<vmem>>, %arg2: memref<10x49152xbf16, #tpu.memory_space<vmem>>, %arg3: memref<1x10xf32, #tpu.memory_space<vmem>>, %arg4: memref<2x10xf32, #tpu.memory_space<vmem>>) attributes {dimension_semantics = [#tpu.dimension_semantics<arbitrary>], iteration_bounds = array<i64: 4>, scalar_prefetch = 0 : i64, scratch_operands = 0 : i64, tpu.core_type = #tpu.core_type<tc>, window_params = [{transform_indices = @transform_0, window_bounds = array<i64: 2, 49152>}, {transform_indices = @transform_1, window_bounds = array<i64: 10, 49152>}, {pipeline_mode = #tpu.pipeline_mode<synchronous>, transform_indices = @transform_2, window_bounds = array<i64: 1, 10>}, {pipeline_mode = #tpu.pipeline_mode<synchronous>, transform_indices = @transform_3, window_bounds = array<i64: 2, 10>}]} {
    %c0 = arith.constant 0 : index
    %c0_0 = arith.constant 0 : index
    %0 = vector.load %arg1[%c0, %c0_0] : memref<2x49152xbf16, #tpu.memory_space<vmem>>, vector<2x49152xbf16>
    %c0_1 = arith.constant 0 : index
    %c0_2 = arith.constant 0 : index
    %1 = vector.load %arg2[%c0_1, %c0_2] : memref<10x49152xbf16, #tpu.memory_space<vmem>>, vector<10x49152xbf16>
    %cst = arith.constant dense<0.000000e+00> : vector<2x10xf32>
    %2 = tpu.matmul %0, %1, %cst {dimension_numbers = #tpu.dot_dimension_numbers<[1], [1], [0], [0], [0, 0, 1, 0], [], []>} : vector<2x49152xbf16>, vector<10x49152xbf16>, vector<2x10xf32> -> vector<2x10xf32>
    %c0_i32 = arith.constant 0 : i32
    %3 = arith.cmpi eq, %arg0, %c0_i32 : i32
    %4 = arith.extui %3 : i1 to i32
    %c0_i32_3 = arith.constant 0 : i32
    %5 = arith.cmpi ne, %4, %c0_i32_3 : i32
    scf.if %5 {
      %c0_6 = arith.constant 0 : index
      %c0_7 = arith.constant 0 : index
      %9 = vector.load %arg3[%c0_6, %c0_7] : memref<1x10xf32, #tpu.memory_space<vmem>>, vector<1x10xf32>
      %10 = vector.broadcast %9 : vector<1x10xf32> to vector<2x10xf32>
      %11 = arith.addf %2, %10 : vector<2x10xf32>
      %c0_8 = arith.constant 0 : index
      %c0_9 = arith.constant 0 : index
      %12 = vector.load %arg4[%c0_8, %c0_9] : memref<2x10xf32, #tpu.memory_space<vmem>>, vector<2x10xf32>
      tpu.vector_store %arg4[%c0_8, %c0_9], %11 {strides = array<i32>} : memref<2x10xf32, #tpu.memory_space<vmem>>, vector<2x10xf32>,
    } else {
    }
    %c0_i32_4 = arith.constant 0 : i32
    %6 = arith.cmpi sgt, %arg0, %c0_i32_4 : i32
    %7 = arith.extui %6 : i1 to i32
    %c0_i32_5 = arith.constant 0 : i32
    %8 = arith.cmpi ne, %7, %c0_i32_5 : i32
    scf.if %8 {
      %c0_6 = arith.constant 0 : index
      %c0_7 = arith.constant 0 : index
      %9 = vector.load %arg4[%c0_6, %c0_7] : memref<2x10xf32, #tpu.memory_space<vmem>>, vector<2x10xf32>
      %10 = arith.addf %9, %2 : vector<2x10xf32>
      %c0_8 = arith.constant 0 : index
      %c0_9 = arith.constant 0 : index
      %11 = vector.load %arg4[%c0_8, %c0_9] : memref<2x10xf32, #tpu.memory_space<vmem>>, vector<2x10xf32>
      tpu.vector_store %arg4[%c0_8, %c0_9], %10 {strides = array<i32>} : memref<2x10xf32, #tpu.memory_space<vmem>>, vector<2x10xf32>,
    } else {
    }
    return
  }
  func.func @transform_0(%arg0: i32) -> (i32, i32) {
    %c0_i32 = arith.constant 0 : i32
    %c0_i32_0 = arith.constant 0 : i32
    return %c0_i32, %arg0 : i32, i32
  }
  func.func @transform_1(%arg0: i32) -> (i32, i32) {
    %c0_i32 = arith.constant 0 : i32
    %c0_i32_0 = arith.constant 0 : i32
    return %c0_i32, %arg0 : i32, i32
  }
  func.func @transform_2(%arg0: i32) -> (i32, i32) {
    %c0_i32 = arith.constant 0 : i32
    %c0_i32_0 = arith.constant 0 : i32
    %c0_i32_1 = arith.constant 0 : i32
    return %c0_i32, %c0_i32_0 : i32, i32
  }
  func.func @transform_3(%arg0: i32) -> (i32, i32) {
    %c0_i32 = arith.constant 0 : i32
    %c0_i32_0 = arith.constant 0 : i32
    %c0_i32_1 = arith.constant 0 : i32
    return %c0_i32, %c0_i32_0 : i32, i32
  }
}

</mosaic_0001>

<bundles_post_ra>
// kernel: _lambda_.1
= control target key start
LH: loop header
LB: loop body
LE: loop exit
PB: predicated region body
PF: predicated region fallthrough
CT: control target
= control target key end

     0   :  { %8 = vsyncpa [#allocation4], 0  ;;  %s15179_s12 = smov 0   ;;  %s15181_s13 = smov 0   ;;  %s16758_s0 = inlined_call_operand.vmem [shape: bf16[2,196608], index: 0, kind: input, shape index: {}]   ;;  %s16759_s1 = inlined_call_operand.vmem [shape: bf16[10,196608], index: 1, kind: input, shape index: {}]   ;;  %s16760_s2 = inlined_call_operand.vmem [shape: f32[1,10], index: 2, kind: input, shape index: {}]   ;;  %s16761_s3 = inlined_call_operand.hbm [shape: f32[2,10], index: 3, kind: output, shape index: {}]  }
   0x1   :  { %s15183_s14 = smov 0  }
   0x2 LB: > { %s15195_s15 = sadd.s32 4294967295, %s15155_s14   ;;  %s15198_s16 = sadd.s32 1, %s15155_s14   ;;  %s15155_s14 = sphi %s15183_s14, %s16764_s14   ;;  %s15151_s13 = sphi %s15181_s13, %s16763_s13   ;;  %s15147_s12 = sphi %s15179_s12, %s16762_s12  }
   0x3   : > { %s44_s17 = ssub.s32 %s15155_s14, %s15198_s16  ;;  %s47_s18 = sadd.s32 1, %s15151_s13 }
   0x4   : > { %p45_p0 = scmp.eq.s32.totalorder %s44_s17, 0  ;;  %p54_p1 = scmp.ne.s32.totalorder %s15151_s13, %s15147_s12 }
   0x5   : > { %p55_p2 = scmp.eq.s32.totalorder %s15155_s14, 0  ;;  %p13865_p4 = scmp.ge.s32.totalorder %s15155_s14, 4 }
   0x6   : > { %s15207_s19 = scalar_select %p45_p0, %s15151_s13, %s47_s18  }
   0x7   : > { %p56_p3 = por %p55_p2, %p54_p1  ;;  %125 = sbr.rel (%p13865_p4) target bundleno = 211 (0xd3), region = 20 }
   0xe   : > { %136 = sbr.rel (!%p56_p3) target bundleno = 211 (0xd3), region = 28  ;;  %s138_s20 = sand.u32 (%p56_p3), 1, %s15151_s13  }
   0xf   : > { %s14259_s21 = smul.u32 (%p56_p3), 1536, %s15155_s14 }
  0x10   : > { %s15021_s22 = smul.u32 (%p56_p3), 3072, %s138_s20 }
  0x11   : > { %s15215_s25 = scalar_lea.vmem (%p56_p3), %s16759_s1, %s14259_s21 }
  0x12   : > { %v156_v0 = vld [vmem:[%s15215_s25] sm:$0xff] (%p56_p3)  ;;  %v158_v1 = vld [vmem:[%s15215_s25 + $0x8] sm:$0xff] (%p56_p3)  ;;  %v160_v2 = vld [vmem:[%s15215_s25 + $0x10] sm:$0xff] (%p56_p3)  ;;  %s15220_s26 = scalar_lea.vmem (%p56_p3), [#allocation2], %s15021_s22 }
  0x13   : > { %157 = vst [vmem:[%s15220_s26] sm:$0xff] (%p56_p3), %v156_v0  ;;  %159 = vst [vmem:[%s15220_s26 + $0x8] sm:$0xff] (%p56_p3), %v158_v1  ;;  %v162_v3 = vld [vmem:[%s15215_s25 + $0x18] sm:$0xff] (%p56_p3)  ;;  %v164_v4 = vld [vmem:[%s15215_s25 + $0x20] sm:$0xff] (%p56_p3) }
  0x14   : > { %161 = vst [vmem:[%s15220_s26 + $0x10] sm:$0xff] (%p56_p3), %v160_v2  ;;  %v166_v5 = vld [vmem:[%s15215_s25 + $0x28] sm:$0xff] (%p56_p3)  ;;  %163 = vst [vmem:[%s15220_s26 + $0x18] sm:$0xff] (%p56_p3), %v162_v3  ;;  %v168_v6 = vld [vmem:[%s15215_s25 + $0x30] sm:$0xff] (%p56_p3) }
  0x15   : > { %165 = vst [vmem:[%s15220_s26 + $0x20] sm:$0xff] %v164_v4  ;;  %167 = vst [vmem:[%s15220_s26 + $0x28] sm:$0xff] %v166_v5  ;;  %v170_v7 = vld [vmem:[%s15215_s25 + $0x38] sm:$0xff]  ;;  %v172_v8 = vld [vmem:[%s15215_s25 + $0x40] sm:$0xff] }
  0x16   : > { %169 = vst [vmem:[%s15220_s26 + $0x30] sm:$0xff] %v168_v6  ;;  %171 = vst [vmem:[%s15220_s26 + $0x38] sm:$0xff] %v170_v7  ;;  %v174_v9 = vld [vmem:[%s15215_s25 + $0x48] sm:$0xff]  ;;  %v176_v10 = vld [vmem:[%s15215_s25 + $0x50] sm:$0xff] }
  0x17   : > { %173 = vst [vmem:[%s15220_s26 + $0x40] sm:$0xff] %v172_v8  ;;  %v178_v11 = vld [vmem:[%s15215_s25 + $0x58] sm:$0xff]  ;;  %175 = vst [vmem:[%s15220_s26 + $0x48] sm:$0xff] %v174_v9  ;;  %v180_v12 = vld [vmem:[%s15215_s25 + $0x60] sm:$0xff] }
  0x18   : > { %177 = vst [vmem:[%s15220_s26 + $0x50] sm:$0xff] %v176_v10  ;;  %179 = vst [vmem:[%s15220_s26 + $0x58] sm:$0xff] %v178_v11  ;;  %v182_v13 = vld [vmem:[%s15215_s25 + $0x68] sm:$0xff]  ;;  %v184_v14 = vld [vmem:[%s15215_s25 + $0x70] sm:$0xff] }
  0x19   : > { %181 = vst [vmem:[%s15220_s26 + $0x60] sm:$0xff] %v180_v12  ;;  %183 = vst [vmem:[%s15220_s26 + $0x68] sm:$0xff] %v182_v13  ;;  %v186_v15 = vld [vmem:[%s15215_s25 + $0x78] sm:$0xff]  ;;  %v188_v16 = vld [vmem:[%s15215_s25 + $0x80] sm:$0xff] }
  0x1a   : > { %185 = vst [vmem:[%s15220_s26 + $0x70] sm:$0xff] %v184_v14  ;;  %v190_v17 = vld [vmem:[%s15215_s25 + $0x88] sm:$0xff]  ;;  %187 = vst [vmem:[%s15220_s26 + $0x78] sm:$0xff] %v186_v15  ;;  %v192_v18 = vld [vmem:[%s15215_s25 + $0x90] sm:$0xff] }
  0x1b   : > { %189 = vst [vmem:[%s15220_s26 + $0x80] sm:$0xff] %v188_v16  ;;  %191 = vst [vmem:[%s15220_s26 + $0x88] sm:$0xff] %v190_v17  ;;  %v194_v19 = vld [vmem:[%s15215_s25 + $0x98] sm:$0xff]  ;;  %v196_v20 = vld [vmem:[%s15215_s25 + $0xa0] sm:$0xff] }
  0x1c   : > { %193 = vst [vmem:[%s15220_s26 + $0x90] sm:$0xff] %v192_v18  ;;  %195 = vst [vmem:[%s15220_s26 + $0x98] sm:$0xff] %v194_v19  ;;  %v198_v21 = vld [vmem:[%s15215_s25 + $0xa8] sm:$0xff]  ;;  %v200_v22 = vld [vmem:[%s15215_s25 + $0xb0] sm:$0xff] }
  0x1d   : > { %197 = vst [vmem:[%s15220_s26 + $0xa0] sm:$0xff] %v196_v20  ;;  %v202_v23 = vld [vmem:[%s15215_s25 + $0xb8] sm:$0xff]  ;;  %199 = vst [vmem:[%s15220_s26 + $0xa8] sm:$0xff] %v198_v21  ;;  %v204_v24 = vld [vmem:[%s15215_s25 + $0xc0] sm:$0xff] }
  0x1e   : > { %201 = vst [vmem:[%s15220_s26 + $0xb0] sm:$0xff] %v200_v22  ;;  %203 = vst [vmem:[%s15220_s26 + $0xb8] sm:$0xff] %v202_v23  ;;  %v206_v25 = vld [vmem:[%s15215_s25 + $0xc8] sm:$0xff]  ;;  %v208_v26 = vld [vmem:[%s15215_s25 + $0xd0] sm:$0xff] }
  0x1f   : > { %205 = vst [vmem:[%s15220_s26 + $0xc0] sm:$0xff] %v204_v24  ;;  %207 = vst [vmem:[%s15220_s26 + $0xc8] sm:$0xff] %v206_v25  ;;  %v210_v27 = vld [vmem:[%s15215_s25 + $0xd8] sm:$0xff]  ;;  %v212_v28 = vld [vmem:[%s15215_s25 + $0xe0] sm:$0xff] }
  0x20   : > { %209 = vst [vmem:[%s15220_s26 + $0xd0] sm:$0xff] %v208_v26  ;;  %v214_v29 = vld [vmem:[%s15215_s25 + $0xe8] sm:$0xff]  ;;  %211 = vst [vmem:[%s15220_s26 + $0xd8] sm:$0xff] %v210_v27  ;;  %v216_v30 = vld [vmem:[%s15215_s25 + $0xf0] sm:$0xff] }
  0x21   : > { %213 = vst [vmem:[%s15220_s26 + $0xe0] sm:$0xff] %v212_v28  ;;  %215 = vst [vmem:[%s15220_s26 + $0xe8] sm:$0xff] %v214_v29  ;;  %v218_v31 = vld [vmem:[%s15215_s25 + $0xf8] sm:$0xff]  ;;  %v220_v32 = vld [vmem:[%s15215_s25 + $0x100] sm:$0xff] }
  0x22   : > { %217 = vst [vmem:[%s15220_s26 + $0xf0] sm:$0xff] %v216_v30  ;;  %219 = vst [vmem:[%s15220_s26 + $0xf8] sm:$0xff] %v218_v31  ;;  %v222_v33 = vld [vmem:[%s15215_s25 + $0x108] sm:$0xff]  ;;  %v224_v34 = vld [vmem:[%s15215_s25 + $0x110] sm:$0xff] }
  0x23   : > { %221 = vst [vmem:[%s15220_s26 + $0x100] sm:$0xff] %v220_v32  ;;  %v226_v35 = vld [vmem:[%s15215_s25 + $0x118] sm:$0xff]  ;;  %223 = vst [vmem:[%s15220_s26 + $0x108] sm:$0xff] %v222_v33  ;;  %v228_v36 = vld [vmem:[%s15215_s25 + $0x120] sm:$0xff] }
  0x24   : > { %225 = vst [vmem:[%s15220_s26 + $0x110] sm:$0xff] %v224_v34  ;;  %227 = vst [vmem:[%s15220_s26 + $0x118] sm:$0xff] %v226_v35  ;;  %v230_v37 = vld [vmem:[%s15215_s25 + $0x128] sm:$0xff]  ;;  %v232_v38 = vld [vmem:[%s15215_s25 + $0x130] sm:$0xff] }
  0x25   : > { %229 = vst [vmem:[%s15220_s26 + $0x120] sm:$0xff] %v228_v36  ;;  %231 = vst [vmem:[%s15220_s26 + $0x128] sm:$0xff] %v230_v37  ;;  %v234_v39 = vld [vmem:[%s15215_s25 + $0x138] sm:$0xff]  ;;  %v236_v40 = vld [vmem:[%s15215_s25 + $0x140] sm:$0xff] }
  0x26   : > { %233 = vst [vmem:[%s15220_s26 + $0x130] sm:$0xff] %v232_v38  ;;  %v238_v41 = vld [vmem:[%s15215_s25 + $0x148] sm:$0xff]  ;;  %235 = vst [vmem:[%s15220_s26 + $0x138] sm:$0xff] %v234_v39  ;;  %v240_v42 = vld [vmem:[%s15215_s25 + $0x150] sm:$0xff] }
  0x27   : > { %237 = vst [vmem:[%s15220_s26 + $0x140] sm:$0xff] %v236_v40  ;;  %239 = vst [vmem:[%s15220_s26 + $0x148] sm:$0xff] %v238_v41  ;;  %v242_v43 = vld [vmem:[%s15215_s25 + $0x158] sm:$0xff]  ;;  %v244_v44 = vld [vmem:[%s15215_s25 + $0x160] sm:$0xff] }
  0x28   : > { %241 = vst [vmem:[%s15220_s26 + $0x150] sm:$0xff] %v240_v42  ;;  %243 = vst [vmem:[%s15220_s26 + $0x158] sm:$0xff] %v242_v43  ;;  %v246_v45 = vld [vmem:[%s15215_s25 + $0x168] sm:$0xff]  ;;  %v248_v46 = vld [vmem:[%s15215_s25 + $0x170] sm:$0xff] }
  0x29   : > { %245 = vst [vmem:[%s15220_s26 + $0x160] sm:$0xff] %v244_v44  ;;  %v250_v47 = vld [vmem:[%s15215_s25 + $0x178] sm:$0xff]  ;;  %247 = vst [vmem:[%s15220_s26 + $0x168] sm:$0xff] %v246_v45  ;;  %v252_v48 = vld [vmem:[%s15215_s25 + $0x180] sm:$0xff] }
  0x2a   : > { %249 = vst [vmem:[%s15220_s26 + $0x170] sm:$0xff] %v248_v46  ;;  %251 = vst [vmem:[%s15220_s26 + $0x178] sm:$0xff] %v250_v47  ;;  %v254_v49 = vld [vmem:[%s15215_s25 + $0x188] sm:$0xff]  ;;  %v256_v50 = vld [vmem:[%s15215_s25 + $0x190] sm:$0xff] }
  0x2b   : > { %253 = vst [vmem:[%s15220_s26 + $0x180] sm:$0xff] %v252_v48  ;;  %255 = vst [vmem:[%s15220_s26 + $0x188] sm:$0xff] %v254_v49  ;;  %v258_v51 = vld [vmem:[%s15215_s25 + $0x198] sm:$0xff]  ;;  %v260_v52 = vld [vmem:[%s15215_s25 + $0x1a0] sm:$0xff] }
  0x2c   : > { %257 = vst [vmem:[%s15220_s26 + $0x190] sm:$0xff] %v256_v50  ;;  %v262_v53 = vld [vmem:[%s15215_s25 + $0x1a8] sm:$0xff]  ;;  %259 = vst [vmem:[%s15220_s26 + $0x198] sm:$0xff] %v258_v51  ;;  %v264_v54 = vld [vmem:[%s15215_s25 + $0x1b0] sm:$0xff] }
  0x2d   : > { %261 = vst [vmem:[%s15220_s26 + $0x1a0] sm:$0xff] %v260_v52  ;;  %263 = vst [vmem:[%s15220_s26 + $0x1a8] sm:$0xff] %v262_v53  ;;  %v266_v55 = vld [vmem:[%s15215_s25 + $0x1b8] sm:$0xff]  ;;  %v268_v56 = vld [vmem:[%s15215_s25 + $0x1c0] sm:$0xff] }
  0x2e   : > { %265 = vst [vmem:[%s15220_s26 + $0x1b0] sm:$0xff] %v264_v54  ;;  %267 = vst [vmem:[%s15220_s26 + $0x1b8] sm:$0xff] %v266_v55  ;;  %v270_v57 = vld [vmem:[%s15215_s25 + $0x1c8] sm:$0xff]  ;;  %v272_v58 = vld [vmem:[%s15215_s25 + $0x1d0] sm:$0xff] }
  0x2f   : > { %269 = vst [vmem:[%s15220_s26 + $0x1c0] sm:$0xff] %v268_v56  ;;  %v274_v59 = vld [vmem:[%s15215_s25 + $0x1d8] sm:$0xff]  ;;  %271 = vst [vmem:[%s15220_s26 + $0x1c8] sm:$0xff] %v270_v57  ;;  %v276_v60 = vld [vmem:[%s15215_s25 + $0x1e0] sm:$0xff] }
  0x30   : > { %273 = vst [vmem:[%s15220_s26 + $0x1d0] sm:$0xff] %v272_v58  ;;  %275 = vst [vmem:[%s15220_s26 + $0x1d8] sm:$0xff] %v274_v59  ;;  %v278_v61 = vld [vmem:[%s15215_s25 + $0x1e8] sm:$0xff]  ;;  %v280_v62 = vld [vmem:[%s15215_s25 + $0x1f0] sm:$0xff] }
  0x31   : > { %277 = vst [vmem:[%s15220_s26 + $0x1e0] sm:$0xff] %v276_v60  ;;  %279 = vst [vmem:[%s15220_s26 + $0x1e8] sm:$0xff] %v278_v61  ;;  %v282_v63 = vld [vmem:[%s15215_s25 + $0x1f8] sm:$0xff]  ;;  %v284_v0 = vld [vmem:[%s15215_s25 + $0x200] sm:$0xff] }
  0x32   : > { %281 = vst [vmem:[%s15220_s26 + $0x1f0] sm:$0xff] %v280_v62  ;;  %v286_v1 = vld [vmem:[%s15215_s25 + $0x208] sm:$0xff]  ;;  %283 = vst [vmem:[%s15220_s26 + $0x1f8] sm:$0xff] %v282_v63  ;;  %v288_v2 = vld [vmem:[%s15215_s25 + $0x210] sm:$0xff] }
  0x33   : > { %285 = vst [vmem:[%s15220_s26 + $0x200] sm:$0xff] %v284_v0  ;;  %287 = vst [vmem:[%s15220_s26 + $0x208] sm:$0xff] %v286_v1  ;;  %v290_v3 = vld [vmem:[%s15215_s25 + $0x218] sm:$0xff]  ;;  %v292_v4 = vld [vmem:[%s15215_s25 + $0x220] sm:$0xff] }
  0x34   : > { %289 = vst [vmem:[%s15220_s26 + $0x210] sm:$0xff] %v288_v2  ;;  %291 = vst [vmem:[%s15220_s26 + $0x218] sm:$0xff] %v290_v3  ;;  %v294_v5 = vld [vmem:[%s15215_s25 + $0x228] sm:$0xff]  ;;  %v296_v6 = vld [vmem:[%s15215_s25 + $0x230] sm:$0xff] }
  0x35   : > { %293 = vst [vmem:[%s15220_s26 + $0x220] sm:$0xff] %v292_v4  ;;  %v298_v7 = vld [vmem:[%s15215_s25 + $0x238] sm:$0xff]  ;;  %295 = vst [vmem:[%s15220_s26 + $0x228] sm:$0xff] %v294_v5  ;;  %v300_v8 = vld [vmem:[%s15215_s25 + $0x240] sm:$0xff] }
  0x36   : > { %297 = vst [vmem:[%s15220_s26 + $0x230] sm:$0xff] %v296_v6  ;;  %299 = vst [vmem:[%s15220_s26 + $0x238] sm:$0xff] %v298_v7  ;;  %v302_v9 = vld [vmem:[%s15215_s25 + $0x248] sm:$0xff]  ;;  %v304_v10 = vld [vmem:[%s15215_s25 + $0x250] sm:$0xff] }
  0x37   : > { %301 = vst [vmem:[%s15220_s26 + $0x240] sm:$0xff] %v300_v8  ;;  %303 = vst [vmem:[%s15220_s26 + $0x248] sm:$0xff] %v302_v9  ;;  %v306_v11 = vld [vmem:[%s15215_s25 + $0x258] sm:$0xff]  ;;  %v308_v12 = vld [vmem:[%s15215_s25 + $0x260] sm:$0xff] }
  0x38   : > { %305 = vst [vmem:[%s15220_s26 + $0x250] sm:$0xff] %v304_v10  ;;  %v310_v13 = vld [vmem:[%s15215_s25 + $0x268] sm:$0xff]  ;;  %307 = vst [vmem:[%s15220_s26 + $0x258] sm:$0xff] %v306_v11  ;;  %v312_v14 = vld [vmem:[%s15215_s25 + $0x270] sm:$0xff] }
  0x39   : > { %309 = vst [vmem:[%s15220_s26 + $0x260] sm:$0xff] %v308_v12  ;;  %311 = vst [vmem:[%s15220_s26 + $0x268] sm:$0xff] %v310_v13  ;;  %v314_v15 = vld [vmem:[%s15215_s25 + $0x278] sm:$0xff]  ;;  %v316_v16 = vld [vmem:[%s15215_s25 + $0x280] sm:$0xff] }
  0x3a   : > { %313 = vst [vmem:[%s15220_s26 + $0x270] sm:$0xff] %v312_v14  ;;  %315 = vst [vmem:[%s15220_s26 + $0x278] sm:$0xff] %v314_v15  ;;  %v318_v17 = vld [vmem:[%s15215_s25 + $0x288] sm:$0xff]  ;;  %v320_v18 = vld [vmem:[%s15215_s25 + $0x290] sm:$0xff] }
  0x3b   : > { %317 = vst [vmem:[%s15220_s26 + $0x280] sm:$0xff] %v316_v16  ;;  %v322_v19 = vld [vmem:[%s15215_s25 + $0x298] sm:$0xff]  ;;  %319 = vst [vmem:[%s15220_s26 + $0x288] sm:$0xff] %v318_v17  ;;  %v324_v20 = vld [vmem:[%s15215_s25 + $0x2a0] sm:$0xff] }
  0x3c   : > { %321 = vst [vmem:[%s15220_s26 + $0x290] sm:$0xff] %v320_v18  ;;  %323 = vst [vmem:[%s15220_s26 + $0x298] sm:$0xff] %v322_v19  ;;  %v326_v21 = vld [vmem:[%s15215_s25 + $0x2a8] sm:$0xff]  ;;  %v328_v22 = vld [vmem:[%s15215_s25 + $0x2b0] sm:$0xff] }
  0x3d   : > { %325 = vst [vmem:[%s15220_s26 + $0x2a0] sm:$0xff] %v324_v20  ;;  %327 = vst [vmem:[%s15220_s26 + $0x2a8] sm:$0xff] %v326_v21  ;;  %v330_v23 = vld [vmem:[%s15215_s25 + $0x2b8] sm:$0xff]  ;;  %v332_v24 = vld [vmem:[%s15215_s25 + $0x2c0] sm:$0xff] }
  0x3e   : > { %329 = vst [vmem:[%s15220_s26 + $0x2b0] sm:$0xff] %v328_v22  ;;  %v334_v25 = vld [vmem:[%s15215_s25 + $0x2c8] sm:$0xff]  ;;  %331 = vst [vmem:[%s15220_s26 + $0x2b8] sm:$0xff] %v330_v23  ;;  %v336_v26 = vld [vmem:[%s15215_s25 + $0x2d0] sm:$0xff] }
  0x3f   : > { %333 = vst [vmem:[%s15220_s26 + $0x2c0] sm:$0xff] %v332_v24  ;;  %335 = vst [vmem:[%s15220_s26 + $0x2c8] sm:$0xff] %v334_v25  ;;  %v338_v27 = vld [vmem:[%s15215_s25 + $0x2d8] sm:$0xff]  ;;  %v340_v28 = vld [vmem:[%s15215_s25 + $0x2e0] sm:$0xff] }
  0x40   : > { %337 = vst [vmem:[%s15220_s26 + $0x2d0] sm:$0xff] %v336_v26  ;;  %339 = vst [vmem:[%s15220_s26 + $0x2d8] sm:$0xff] %v338_v27  ;;  %v342_v29 = vld [vmem:[%s15215_s25 + $0x2e8] sm:$0xff]  ;;  %v344_v30 = vld [vmem:[%s15215_s25 + $0x2f0] sm:$0xff] }
  0x41   : > { %341 = vst [vmem:[%s15220_s26 + $0x2e0] sm:$0xff] %v340_v28  ;;  %v346_v31 = vld [vmem:[%s15215_s25 + $0x2f8] sm:$0xff]  ;;  %343 = vst [vmem:[%s15220_s26 + $0x2e8] sm:$0xff] %v342_v29  ;;  %v348_v32 = vld [vmem:[%s15215_s25 + $0x300] sm:$0xff] }
  0x42   : > { %345 = vst [vmem:[%s15220_s26 + $0x2f0] sm:$0xff] %v344_v30  ;;  %347 = vst [vmem:[%s15220_s26 + $0x2f8] sm:$0xff] %v346_v31  ;;  %v350_v33 = vld [vmem:[%s15215_s25 + $0x308] sm:$0xff]  ;;  %v352_v34 = vld [vmem:[%s15215_s25 + $0x310] sm:$0xff] }
  0x43   : > { %349 = vst [vmem:[%s15220_s26 + $0x300] sm:$0xff] %v348_v32  ;;  %351 = vst [vmem:[%s15220_s26 + $0x308] sm:$0xff] %v350_v33  ;;  %v354_v35 = vld [vmem:[%s15215_s25 + $0x318] sm:$0xff]  ;;  %v356_v36 = vld [vmem:[%s15215_s25 + $0x320] sm:$0xff] }
  0x44   : > { %353 = vst [vmem:[%s15220_s26 + $0x310] sm:$0xff] %v352_v34  ;;  %v358_v37 = vld [vmem:[%s15215_s25 + $0x328] sm:$0xff]  ;;  %355 = vst [vmem:[%s15220_s26 + $0x318] sm:$0xff] %v354_v35  ;;  %v360_v38 = vld [vmem:[%s15215_s25 + $0x330] sm:$0xff] }
  0x45   : > { %357 = vst [vmem:[%s15220_s26 + $0x320] sm:$0xff] %v356_v36  ;;  %359 = vst [vmem:[%s15220_s26 + $0x328] sm:$0xff] %v358_v37  ;;  %v362_v39 = vld [vmem:[%s15215_s25 + $0x338] sm:$0xff]  ;;  %v364_v40 = vld [vmem:[%s15215_s25 + $0x340] sm:$0xff] }
  0x46   : > { %361 = vst [vmem:[%s15220_s26 + $0x330] sm:$0xff] %v360_v38  ;;  %363 = vst [vmem:[%s15220_s26 + $0x338] sm:$0xff] %v362_v39  ;;  %v366_v41 = vld [vmem:[%s15215_s25 + $0x348] sm:$0xff]  ;;  %v368_v42 = vld [vmem:[%s15215_s25 + $0x350] sm:$0xff] }
  0x47   : > { %365 = vst [vmem:[%s15220_s26 + $0x340] sm:$0xff] %v364_v40  ;;  %v370_v43 = vld [vmem:[%s15215_s25 + $0x358] sm:$0xff]  ;;  %367 = vst [vmem:[%s15220_s26 + $0x348] sm:$0xff] %v366_v41  ;;  %v372_v44 = vld [vmem:[%s15215_s25 + $0x360] sm:$0xff] }
  0x48   : > { %369 = vst [vmem:[%s15220_s26 + $0x350] sm:$0xff] %v368_v42  ;;  %371 = vst [vmem:[%s15220_s26 + $0x358] sm:$0xff] %v370_v43  ;;  %v374_v45 = vld [vmem:[%s15215_s25 + $0x368] sm:$0xff]  ;;  %v376_v46 = vld [vmem:[%s15215_s25 + $0x370] sm:$0xff] }
  0x49   : > { %373 = vst [vmem:[%s15220_s26 + $0x360] sm:$0xff] %v372_v44  ;;  %375 = vst [vmem:[%s15220_s26 + $0x368] sm:$0xff] %v374_v45  ;;  %v378_v47 = vld [vmem:[%s15215_s25 + $0x378] sm:$0xff]  ;;  %v380_v48 = vld [vmem:[%s15215_s25 + $0x380] sm:$0xff] }
  0x4a   : > { %377 = vst [vmem:[%s15220_s26 + $0x370] sm:$0xff] %v376_v46  ;;  %v382_v49 = vld [vmem:[%s15215_s25 + $0x388] sm:$0xff]  ;;  %379 = vst [vmem:[%s15220_s26 + $0x378] sm:$0xff] %v378_v47  ;;  %v384_v50 = vld [vmem:[%s15215_s25 + $0x390] sm:$0xff] }
  0x4b   : > { %381 = vst [vmem:[%s15220_s26 + $0x380] sm:$0xff] %v380_v48  ;;  %383 = vst [vmem:[%s15220_s26 + $0x388] sm:$0xff] %v382_v49  ;;  %v386_v51 = vld [vmem:[%s15215_s25 + $0x398] sm:$0xff]  ;;  %v388_v52 = vld [vmem:[%s15215_s25 + $0x3a0] sm:$0xff] }
  0x4c   : > { %385 = vst [vmem:[%s15220_s26 + $0x390] sm:$0xff] %v384_v50  ;;  %387 = vst [vmem:[%s15220_s26 + $0x398] sm:$0xff] %v386_v51  ;;  %v390_v53 = vld [vmem:[%s15215_s25 + $0x3a8] sm:$0xff]  ;;  %v392_v54 = vld [vmem:[%s15215_s25 + $0x3b0] sm:$0xff] }
  0x4d   : > { %389 = vst [vmem:[%s15220_s26 + $0x3a0] sm:$0xff] %v388_v52  ;;  %v394_v55 = vld [vmem:[%s15215_s25 + $0x3b8] sm:$0xff]  ;;  %391 = vst [vmem:[%s15220_s26 + $0x3a8] sm:$0xff] %v390_v53  ;;  %v396_v56 = vld [vmem:[%s15215_s25 + $0x3c0] sm:$0xff] }
  0x4e   : > { %393 = vst [vmem:[%s15220_s26 + $0x3b0] sm:$0xff] %v392_v54  ;;  %395 = vst [vmem:[%s15220_s26 + $0x3b8] sm:$0xff] %v394_v55  ;;  %v398_v57 = vld [vmem:[%s15215_s25 + $0x3c8] sm:$0xff]  ;;  %v400_v58 = vld [vmem:[%s15215_s25 + $0x3d0] sm:$0xff] }
  0x4f   : > { %397 = vst [vmem:[%s15220_s26 + $0x3c0] sm:$0xff] %v396_v56  ;;  %399 = vst [vmem:[%s15220_s26 + $0x3c8] sm:$0xff] %v398_v57  ;;  %v402_v59 = vld [vmem:[%s15215_s25 + $0x3d8] sm:$0xff]  ;;  %v404_v60 = vld [vmem:[%s15215_s25 + $0x3e0] sm:$0xff] }
  0x50   : > { %401 = vst [vmem:[%s15220_s26 + $0x3d0] sm:$0xff] %v400_v58  ;;  %v406_v61 = vld [vmem:[%s15215_s25 + $0x3e8] sm:$0xff]  ;;  %403 = vst [vmem:[%s15220_s26 + $0x3d8] sm:$0xff] %v402_v59  ;;  %v408_v62 = vld [vmem:[%s15215_s25 + $0x3f0] sm:$0xff] }
  0x51   : > { %405 = vst [vmem:[%s15220_s26 + $0x3e0] sm:$0xff] %v404_v60  ;;  %407 = vst [vmem:[%s15220_s26 + $0x3e8] sm:$0xff] %v406_v61  ;;  %v410_v63 = vld [vmem:[%s15215_s25 + $0x3f8] sm:$0xff]  ;;  %v412_v0 = vld [vmem:[%s15215_s25 + $0x400] sm:$0xff] }
  0x52   : > { %409 = vst [vmem:[%s15220_s26 + $0x3f0] sm:$0xff] %v408_v62  ;;  %411 = vst [vmem:[%s15220_s26 + $0x3f8] sm:$0xff] %v410_v63  ;;  %v414_v1 = vld [vmem:[%s15215_s25 + $0x408] sm:$0xff]  ;;  %v416_v2 = vld [vmem:[%s15215_s25 + $0x410] sm:$0xff] }
  0x53   : > { %413 = vst [vmem:[%s15220_s26 + $0x400] sm:$0xff] %v412_v0  ;;  %v418_v3 = vld [vmem:[%s15215_s25 + $0x418] sm:$0xff]  ;;  %415 = vst [vmem:[%s15220_s26 + $0x408] sm:$0xff] %v414_v1  ;;  %v420_v4 = vld [vmem:[%s15215_s25 + $0x420] sm:$0xff] }
  0x54   : > { %417 = vst [vmem:[%s15220_s26 + $0x410] sm:$0xff] %v416_v2  ;;  %419 = vst [vmem:[%s15220_s26 + $0x418] sm:$0xff] %v418_v3  ;;  %v422_v5 = vld [vmem:[%s15215_s25 + $0x428] sm:$0xff]  ;;  %v424_v6 = vld [vmem:[%s15215_s25 + $0x430] sm:$0xff] }
  0x55   : > { %421 = vst [vmem:[%s15220_s26 + $0x420] sm:$0xff] %v420_v4  ;;  %423 = vst [vmem:[%s15220_s26 + $0x428] sm:$0xff] %v422_v5  ;;  %v426_v7 = vld [vmem:[%s15215_s25 + $0x438] sm:$0xff]  ;;  %v428_v8 = vld [vmem:[%s15215_s25 + $0x440] sm:$0xff] }
  0x56   : > { %425 = vst [vmem:[%s15220_s26 + $0x430] sm:$0xff] %v424_v6  ;;  %v430_v9 = vld [vmem:[%s15215_s25 + $0x448] sm:$0xff]  ;;  %427 = vst [vmem:[%s15220_s26 + $0x438] sm:$0xff] %v426_v7  ;;  %v432_v10 = vld [vmem:[%s15215_s25 + $0x450] sm:$0xff] }
  0x57   : > { %429 = vst [vmem:[%s15220_s26 + $0x440] sm:$0xff] %v428_v8  ;;  %431 = vst [vmem:[%s15220_s26 + $0x448] sm:$0xff] %v430_v9  ;;  %v434_v11 = vld [vmem:[%s15215_s25 + $0x458] sm:$0xff]  ;;  %v436_v12 = vld [vmem:[%s15215_s25 + $0x460] sm:$0xff] }
  0x58   : > { %433 = vst [vmem:[%s15220_s26 + $0x450] sm:$0xff] %v432_v10  ;;  %435 = vst [vmem:[%s15220_s26 + $0x458] sm:$0xff] %v434_v11  ;;  %v438_v13 = vld [vmem:[%s15215_s25 + $0x468] sm:$0xff]  ;;  %v440_v14 = vld [vmem:[%s15215_s25 + $0x470] sm:$0xff] }
  0x59   : > { %437 = vst [vmem:[%s15220_s26 + $0x460] sm:$0xff] %v436_v12  ;;  %v442_v15 = vld [vmem:[%s15215_s25 + $0x478] sm:$0xff]  ;;  %439 = vst [vmem:[%s15220_s26 + $0x468] sm:$0xff] %v438_v13  ;;  %v444_v16 = vld [vmem:[%s15215_s25 + $0x480] sm:$0xff] }
  0x5a   : > { %441 = vst [vmem:[%s15220_s26 + $0x470] sm:$0xff] %v440_v14  ;;  %443 = vst [vmem:[%s15220_s26 + $0x478] sm:$0xff] %v442_v15  ;;  %v446_v17 = vld [vmem:[%s15215_s25 + $0x488] sm:$0xff]  ;;  %v448_v18 = vld [vmem:[%s15215_s25 + $0x490] sm:$0xff] }
  0x5b   : > { %445 = vst [vmem:[%s15220_s26 + $0x480] sm:$0xff] %v444_v16  ;;  %447 = vst [vmem:[%s15220_s26 + $0x488] sm:$0xff] %v446_v17  ;;  %v450_v19 = vld [vmem:[%s15215_s25 + $0x498] sm:$0xff]  ;;  %v452_v20 = vld [vmem:[%s15215_s25 + $0x4a0] sm:$0xff] }
  0x5c   : > { %449 = vst [vmem:[%s15220_s26 + $0x490] sm:$0xff] %v448_v18  ;;  %v454_v21 = vld [vmem:[%s15215_s25 + $0x4a8] sm:$0xff]  ;;  %451 = vst [vmem:[%s15220_s26 + $0x498] sm:$0xff] %v450_v19  ;;  %v456_v22 = vld [vmem:[%s15215_s25 + $0x4b0] sm:$0xff] }
  0x5d   : > { %453 = vst [vmem:[%s15220_s26 + $0x4a0] sm:$0xff] %v452_v20  ;;  %455 = vst [vmem:[%s15220_s26 + $0x4a8] sm:$0xff] %v454_v21  ;;  %v458_v23 = vld [vmem:[%s15215_s25 + $0x4b8] sm:$0xff]  ;;  %v460_v24 = vld [vmem:[%s15215_s25 + $0x4c0] sm:$0xff] }
  0x5e   : > { %457 = vst [vmem:[%s15220_s26 + $0x4b0] sm:$0xff] %v456_v22  ;;  %459 = vst [vmem:[%s15220_s26 + $0x4b8] sm:$0xff] %v458_v23  ;;  %v462_v25 = vld [vmem:[%s15215_s25 + $0x4c8] sm:$0xff]  ;;  %v464_v26 = vld [vmem:[%s15215_s25 + $0x4d0] sm:$0xff] }
  0x5f   : > { %461 = vst [vmem:[%s15220_s26 + $0x4c0] sm:$0xff] %v460_v24  ;;  %v466_v27 = vld [vmem:[%s15215_s25 + $0x4d8] sm:$0xff]  ;;  %463 = vst [vmem:[%s15220_s26 + $0x4c8] sm:$0xff] %v462_v25  ;;  %v468_v28 = vld [vmem:[%s15215_s25 + $0x4e0] sm:$0xff] }
  0x60   : > { %465 = vst [vmem:[%s15220_s26 + $0x4d0] sm:$0xff] %v464_v26  ;;  %467 = vst [vmem:[%s15220_s26 + $0x4d8] sm:$0xff] %v466_v27  ;;  %v470_v29 = vld [vmem:[%s15215_s25 + $0x4e8] sm:$0xff]  ;;  %v472_v30 = vld [vmem:[%s15215_s25 + $0x4f0] sm:$0xff] }
  0x61   : > { %469 = vst [vmem:[%s15220_s26 + $0x4e0] sm:$0xff] %v468_v28  ;;  %471 = vst [vmem:[%s15220_s26 + $0x4e8] sm:$0xff] %v470_v29  ;;  %v474_v31 = vld [vmem:[%s15215_s25 + $0x4f8] sm:$0xff]  ;;  %v476_v32 = vld [vmem:[%s15215_s25 + $0x500] sm:$0xff] }
  0x62   : > { %473 = vst [vmem:[%s15220_s26 + $0x4f0] sm:$0xff] %v472_v30  ;;  %v478_v33 = vld [vmem:[%s15215_s25 + $0x508] sm:$0xff]  ;;  %475 = vst [vmem:[%s15220_s26 + $0x4f8] sm:$0xff] %v474_v31  ;;  %v480_v34 = vld [vmem:[%s15215_s25 + $0x510] sm:$0xff] }
  0x63   : > { %477 = vst [vmem:[%s15220_s26 + $0x500] sm:$0xff] %v476_v32  ;;  %479 = vst [vmem:[%s15220_s26 + $0x508] sm:$0xff] %v478_v33  ;;  %v482_v35 = vld [vmem:[%s15215_s25 + $0x518] sm:$0xff]  ;;  %v484_v36 = vld [vmem:[%s15215_s25 + $0x520] sm:$0xff] }
  0x64   : > { %481 = vst [vmem:[%s15220_s26 + $0x510] sm:$0xff] %v480_v34  ;;  %483 = vst [vmem:[%s15220_s26 + $0x518] sm:$0xff] %v482_v35  ;;  %v486_v37 = vld [vmem:[%s15215_s25 + $0x528] sm:$0xff]  ;;  %v488_v38 = vld [vmem:[%s15215_s25 + $0x530] sm:$0xff] }
  0x65   : > { %485 = vst [vmem:[%s15220_s26 + $0x520] sm:$0xff] %v484_v36  ;;  %v490_v39 = vld [vmem:[%s15215_s25 + $0x538] sm:$0xff]  ;;  %487 = vst [vmem:[%s15220_s26 + $0x528] sm:$0xff] %v486_v37  ;;  %v492_v40 = vld [vmem:[%s15215_s25 + $0x540] sm:$0xff] }
  0x66   : > { %489 = vst [vmem:[%s15220_s26 + $0x530] sm:$0xff] %v488_v38  ;;  %491 = vst [vmem:[%s15220_s26 + $0x538] sm:$0xff] %v490_v39  ;;  %v494_v41 = vld [vmem:[%s15215_s25 + $0x548] sm:$0xff]  ;;  %v496_v42 = vld [vmem:[%s15215_s25 + $0x550] sm:$0xff] }
  0x67   : > { %493 = vst [vmem:[%s15220_s26 + $0x540] sm:$0xff] %v492_v40  ;;  %495 = vst [vmem:[%s15220_s26 + $0x548] sm:$0xff] %v494_v41  ;;  %v498_v43 = vld [vmem:[%s15215_s25 + $0x558] sm:$0xff]  ;;  %v500_v44 = vld [vmem:[%s15215_s25 + $0x560] sm:$0xff] }
  0x68   : > { %497 = vst [vmem:[%s15220_s26 + $0x550] sm:$0xff] %v496_v42  ;;  %v502_v45 = vld [vmem:[%s15215_s25 + $0x568] sm:$0xff]  ;;  %499 = vst [vmem:[%s15220_s26 + $0x558] sm:$0xff] %v498_v43  ;;  %v504_v46 = vld [vmem:[%s15215_s25 + $0x570] sm:$0xff] }
  0x69   : > { %501 = vst [vmem:[%s15220_s26 + $0x560] sm:$0xff] %v500_v44  ;;  %503 = vst [vmem:[%s15220_s26 + $0x568] sm:$0xff] %v502_v45  ;;  %v506_v47 = vld [vmem:[%s15215_s25 + $0x578] sm:$0xff]  ;;  %v508_v48 = vld [vmem:[%s15215_s25 + $0x580] sm:$0xff] }
  0x6a   : > { %505 = vst [vmem:[%s15220_s26 + $0x570] sm:$0xff] %v504_v46  ;;  %507 = vst [vmem:[%s15220_s26 + $0x578] sm:$0xff] %v506_v47  ;;  %v510_v49 = vld [vmem:[%s15215_s25 + $0x588] sm:$0xff]  ;;  %v512_v50 = vld [vmem:[%s15215_s25 + $0x590] sm:$0xff] }
  0x6b   : > { %509 = vst [vmem:[%s15220_s26 + $0x580] sm:$0xff] %v508_v48  ;;  %v514_v51 = vld [vmem:[%s15215_s25 + $0x598] sm:$0xff]  ;;  %511 = vst [vmem:[%s15220_s26 + $0x588] sm:$0xff] %v510_v49  ;;  %v516_v52 = vld [vmem:[%s15215_s25 + $0x5a0] sm:$0xff] }
  0x6c   : > { %513 = vst [vmem:[%s15220_s26 + $0x590] sm:$0xff] %v512_v50  ;;  %515 = vst [vmem:[%s15220_s26 + $0x598] sm:$0xff] %v514_v51  ;;  %v518_v53 = vld [vmem:[%s15215_s25 + $0x5a8] sm:$0xff]  ;;  %v520_v54 = vld [vmem:[%s15215_s25 + $0x5b0] sm:$0xff] }
  0x6d   : > { %517 = vst [vmem:[%s15220_s26 + $0x5a0] sm:$0xff] %v516_v52  ;;  %519 = vst [vmem:[%s15220_s26 + $0x5a8] sm:$0xff] %v518_v53  ;;  %v522_v55 = vld [vmem:[%s15215_s25 + $0x5b8] sm:$0xff]  ;;  %v524_v56 = vld [vmem:[%s15215_s25 + $0x5c0] sm:$0xff] }
  0x6e   : > { %521 = vst [vmem:[%s15220_s26 + $0x5b0] sm:$0xff] %v520_v54  ;;  %v526_v57 = vld [vmem:[%s15215_s25 + $0x5c8] sm:$0xff]  ;;  %523 = vst [vmem:[%s15220_s26 + $0x5b8] sm:$0xff] %v522_v55  ;;  %v528_v58 = vld [vmem:[%s15215_s25 + $0x5d0] sm:$0xff] }
  0x6f   : > { %525 = vst [vmem:[%s15220_s26 + $0x5c0] sm:$0xff] %v524_v56  ;;  %527 = vst [vmem:[%s15220_s26 + $0x5c8] sm:$0xff] %v526_v57  ;;  %v530_v59 = vld [vmem:[%s15215_s25 + $0x5d8] sm:$0xff]  ;;  %v532_v60 = vld [vmem:[%s15215_s25 + $0x5e0] sm:$0xff] }
  0x70   : > { %529 = vst [vmem:[%s15220_s26 + $0x5d0] sm:$0xff] %v528_v58  ;;  %531 = vst [vmem:[%s15220_s26 + $0x5d8] sm:$0xff] %v530_v59  ;;  %v534_v61 = vld [vmem:[%s15215_s25 + $0x5e8] sm:$0xff]  ;;  %v536_v62 = vld [vmem:[%s15215_s25 + $0x5f0] sm:$0xff] }
  0x71   : > { %533 = vst [vmem:[%s15220_s26 + $0x5e0] sm:$0xff] %v532_v60  ;;  %v538_v63 = vld [vmem:[%s15215_s25 + $0x5f8] sm:$0xff]  ;;  %535 = vst [vmem:[%s15220_s26 + $0x5e8] sm:$0xff] %v534_v61  ;;  %v540_v0 = vld [vmem:[%s15215_s25 + $0x1800] sm:$0xff] }
  0x72   : > { %537 = vst [vmem:[%s15220_s26 + $0x5f0] sm:$0xff] %v536_v62  ;;  %539 = vst [vmem:[%s15220_s26 + $0x5f8] sm:$0xff] %v538_v63  ;;  %v542_v1 = vld [vmem:[%s15215_s25 + $0x1808] sm:$0xff]  ;;  %v544_v2 = vld [vmem:[%s15215_s25 + $0x1810] sm:$0xff] }
  0x73   : > { %541 = vst [vmem:[%s15220_s26 + $0x600] sm:$0xff] %v540_v0  ;;  %543 = vst [vmem:[%s15220_s26 + $0x608] sm:$0xff] %v542_v1  ;;  %v546_v3 = vld [vmem:[%s15215_s25 + $0x1818] sm:$0xff]  ;;  %v548_v4 = vld [vmem:[%s15215_s25 + $0x1820] sm:$0xff] }
  0x74   : > { %545 = vst [vmem:[%s15220_s26 + $0x610] sm:$0xff] %v544_v2  ;;  %v550_v5 = vld [vmem:[%s15215_s25 + $0x1828] sm:$0xff]  ;;  %547 = vst [vmem:[%s15220_s26 + $0x618] sm:$0xff] %v546_v3  ;;  %v552_v6 = vld [vmem:[%s15215_s25 + $0x1830] sm:$0xff] }
  0x75   : > { %549 = vst [vmem:[%s15220_s26 + $0x620] sm:$0xff] %v548_v4  ;;  %551 = vst [vmem:[%s15220_s26 + $0x628] sm:$0xff] %v550_v5  ;;  %v554_v7 = vld [vmem:[%s15215_s25 + $0x1838] sm:$0xff]  ;;  %v556_v8 = vld [vmem:[%s15215_s25 + $0x1840] sm:$0xff] }
  0x76   : > { %553 = vst [vmem:[%s15220_s26 + $0x630] sm:$0xff] %v552_v6  ;;  %555 = vst [vmem:[%s15220_s26 + $0x638] sm:$0xff] %v554_v7  ;;  %v558_v9 = vld [vmem:[%s15215_s25 + $0x1848] sm:$0xff]  ;;  %v560_v10 = vld [vmem:[%s15215_s25 + $0x1850] sm:$0xff] }
  0x77   : > { %557 = vst [vmem:[%s15220_s26 + $0x640] sm:$0xff] %v556_v8  ;;  %v562_v11 = vld [vmem:[%s15215_s25 + $0x1858] sm:$0xff]  ;;  %559 = vst [vmem:[%s15220_s26 + $0x648] sm:$0xff] %v558_v9  ;;  %v564_v12 = vld [vmem:[%s15215_s25 + $0x1860] sm:$0xff] }
  0x78   : > { %561 = vst [vmem:[%s15220_s26 + $0x650] sm:$0xff] %v560_v10  ;;  %563 = vst [vmem:[%s15220_s26 + $0x658] sm:$0xff] %v562_v11  ;;  %v566_v13 = vld [vmem:[%s15215_s25 + $0x1868] sm:$0xff]  ;;  %v568_v14 = vld [vmem:[%s15215_s25 + $0x1870] sm:$0xff] }
  0x79   : > { %565 = vst [vmem:[%s15220_s26 + $0x660] sm:$0xff] %v564_v12  ;;  %567 = vst [vmem:[%s15220_s26 + $0x668] sm:$0xff] %v566_v13  ;;  %v570_v15 = vld [vmem:[%s15215_s25 + $0x1878] sm:$0xff]  ;;  %v572_v16 = vld [vmem:[%s15215_s25 + $0x1880] sm:$0xff] }
  0x7a   : > { %569 = vst [vmem:[%s15220_s26 + $0x670] sm:$0xff] %v568_v14  ;;  %v574_v17 = vld [vmem:[%s15215_s25 + $0x1888] sm:$0xff]  ;;  %571 = vst [vmem:[%s15220_s26 + $0x678] sm:$0xff] %v570_v15  ;;  %v576_v18 = vld [vmem:[%s15215_s25 + $0x1890] sm:$0xff] }
  0x7b   : > { %573 = vst [vmem:[%s15220_s26 + $0x680] sm:$0xff] %v572_v16  ;;  %575 = vst [vmem:[%s15220_s26 + $0x688] sm:$0xff] %v574_v17  ;;  %v578_v19 = vld [vmem:[%s15215_s25 + $0x1898] sm:$0xff]  ;;  %v580_v20 = vld [vmem:[%s15215_s25 + $0x18a0] sm:$0xff] }
  0x7c   : > { %577 = vst [vmem:[%s15220_s26 + $0x690] sm:$0xff] %v576_v18  ;;  %579 = vst [vmem:[%s15220_s26 + $0x698] sm:$0xff] %v578_v19  ;;  %v582_v21 = vld [vmem:[%s15215_s25 + $0x18a8] sm:$0xff]  ;;  %v584_v22 = vld [vmem:[%s15215_s25 + $0x18b0] sm:$0xff] }
  0x7d   : > { %581 = vst [vmem:[%s15220_s26 + $0x6a0] sm:$0xff] %v580_v20  ;;  %v586_v23 = vld [vmem:[%s15215_s25 + $0x18b8] sm:$0xff]  ;;  %583 = vst [vmem:[%s15220_s26 + $0x6a8] sm:$0xff] %v582_v21  ;;  %v588_v24 = vld [vmem:[%s15215_s25 + $0x18c0] sm:$0xff] }
  0x7e   : > { %585 = vst [vmem:[%s15220_s26 + $0x6b0] sm:$0xff] %v584_v22  ;;  %587 = vst [vmem:[%s15220_s26 + $0x6b8] sm:$0xff] %v586_v23  ;;  %v590_v25 = vld [vmem:[%s15215_s25 + $0x18c8] sm:$0xff]  ;;  %v592_v26 = vld [vmem:[%s15215_s25 + $0x18d0] sm:$0xff] }
  0x7f   : > { %589 = vst [vmem:[%s15220_s26 + $0x6c0] sm:$0xff] %v588_v24  ;;  %591 = vst [vmem:[%s15220_s26 + $0x6c8] sm:$0xff] %v590_v25  ;;  %v594_v27 = vld [vmem:[%s15215_s25 + $0x18d8] sm:$0xff]  ;;  %v596_v28 = vld [vmem:[%s15215_s25 + $0x18e0] sm:$0xff] }
  0x80   : > { %593 = vst [vmem:[%s15220_s26 + $0x6d0] sm:$0xff] %v592_v26  ;;  %v598_v29 = vld [vmem:[%s15215_s25 + $0x18e8] sm:$0xff]  ;;  %595 = vst [vmem:[%s15220_s26 + $0x6d8] sm:$0xff] %v594_v27  ;;  %v600_v30 = vld [vmem:[%s15215_s25 + $0x18f0] sm:$0xff] }
  0x81   : > { %597 = vst [vmem:[%s15220_s26 + $0x6e0] sm:$0xff] %v596_v28  ;;  %599 = vst [vmem:[%s15220_s26 + $0x6e8] sm:$0xff] %v598_v29  ;;  %v602_v31 = vld [vmem:[%s15215_s25 + $0x18f8] sm:$0xff]  ;;  %v604_v32 = vld [vmem:[%s15215_s25 + $0x1900] sm:$0xff] }
  0x82   : > { %601 = vst [vmem:[%s15220_s26 + $0x6f0] sm:$0xff] %v600_v30  ;;  %603 = vst [vmem:[%s15220_s26 + $0x6f8] sm:$0xff] %v602_v31  ;;  %v606_v33 = vld [vmem:[%s15215_s25 + $0x1908] sm:$0xff]  ;;  %v608_v34 = vld [vmem:[%s15215_s25 + $0x1910] sm:$0xff] }
  0x83   : > { %605 = vst [vmem:[%s15220_s26 + $0x700] sm:$0xff] %v604_v32  ;;  %v610_v35 = vld [vmem:[%s15215_s25 + $0x1918] sm:$0xff]  ;;  %607 = vst [vmem:[%s15220_s26 + $0x708] sm:$0xff] %v606_v33  ;;  %v612_v36 = vld [vmem:[%s15215_s25 + $0x1920] sm:$0xff] }
  0x84   : > { %609 = vst [vmem:[%s15220_s26 + $0x710] sm:$0xff] %v608_v34  ;;  %611 = vst [vmem:[%s15220_s26 + $0x718] sm:$0xff] %v610_v35  ;;  %v614_v37 = vld [vmem:[%s15215_s25 + $0x1928] sm:$0xff]  ;;  %v616_v38 = vld [vmem:[%s15215_s25 + $0x1930] sm:$0xff] }
  0x85   : > { %613 = vst [vmem:[%s15220_s26 + $0x720] sm:$0xff] %v612_v36  ;;  %615 = vst [vmem:[%s15220_s26 + $0x728] sm:$0xff] %v614_v37  ;;  %v618_v39 = vld [vmem:[%s15215_s25 + $0x1938] sm:$0xff]  ;;  %v620_v40 = vld [vmem:[%s15215_s25 + $0x1940] sm:$0xff] }
  0x86   : > { %617 = vst [vmem:[%s15220_s26 + $0x730] sm:$0xff] %v616_v38  ;;  %v622_v41 = vld [vmem:[%s15215_s25 + $0x1948] sm:$0xff]  ;;  %619 = vst [vmem:[%s15220_s26 + $0x738] sm:$0xff] %v618_v39  ;;  %v624_v42 = vld [vmem:[%s15215_s25 + $0x1950] sm:$0xff] }
  0x87   : > { %621 = vst [vmem:[%s15220_s26 + $0x740] sm:$0xff] %v620_v40  ;;  %623 = vst [vmem:[%s15220_s26 + $0x748] sm:$0xff] %v622_v41  ;;  %v626_v43 = vld [vmem:[%s15215_s25 + $0x1958] sm:$0xff]  ;;  %v628_v44 = vld [vmem:[%s15215_s25 + $0x1960] sm:$0xff] }
  0x88   : > { %625 = vst [vmem:[%s15220_s26 + $0x750] sm:$0xff] %v624_v42  ;;  %627 = vst [vmem:[%s15220_s26 + $0x758] sm:$0xff] %v626_v43  ;;  %v630_v45 = vld [vmem:[%s15215_s25 + $0x1968] sm:$0xff]  ;;  %v632_v46 = vld [vmem:[%s15215_s25 + $0x1970] sm:$0xff] }
  0x89   : > { %629 = vst [vmem:[%s15220_s26 + $0x760] sm:$0xff] %v628_v44  ;;  %v634_v47 = vld [vmem:[%s15215_s25 + $0x1978] sm:$0xff]  ;;  %631 = vst [vmem:[%s15220_s26 + $0x768] sm:$0xff] %v630_v45  ;;  %v636_v48 = vld [vmem:[%s15215_s25 + $0x1980] sm:$0xff] }
  0x8a   : > { %633 = vst [vmem:[%s15220_s26 + $0x770] sm:$0xff] %v632_v46  ;;  %635 = vst [vmem:[%s15220_s26 + $0x778] sm:$0xff] %v634_v47  ;;  %v638_v49 = vld [vmem:[%s15215_s25 + $0x1988] sm:$0xff]  ;;  %v640_v50 = vld [vmem:[%s15215_s25 + $0x1990] sm:$0xff] }
  0x8b   : > { %637 = vst [vmem:[%s15220_s26 + $0x780] sm:$0xff] %v636_v48  ;;  %639 = vst [vmem:[%s15220_s26 + $0x788] sm:$0xff] %v638_v49  ;;  %v642_v51 = vld [vmem:[%s15215_s25 + $0x1998] sm:$0xff]  ;;  %v644_v52 = vld [vmem:[%s15215_s25 + $0x19a0] sm:$0xff] }
  0x8c   : > { %641 = vst [vmem:[%s15220_s26 + $0x790] sm:$0xff] %v640_v50  ;;  %v646_v53 = vld [vmem:[%s15215_s25 + $0x19a8] sm:$0xff]  ;;  %643 = vst [vmem:[%s15220_s26 + $0x798] sm:$0xff] %v642_v51  ;;  %v648_v54 = vld [vmem:[%s15215_s25 + $0x19b0] sm:$0xff] }
  0x8d   : > { %645 = vst [vmem:[%s15220_s26 + $0x7a0] sm:$0xff] %v644_v52  ;;  %647 = vst [vmem:[%s15220_s26 + $0x7a8] sm:$0xff] %v646_v53  ;;  %v650_v55 = vld [vmem:[%s15215_s25 + $0x19b8] sm:$0xff]  ;;  %v652_v56 = vld [vmem:[%s15215_s25 + $0x19c0] sm:$0xff] }
  0x8e   : > { %649 = vst [vmem:[%s15220_s26 + $0x7b0] sm:$0xff] %v648_v54  ;;  %651 = vst [vmem:[%s15220_s26 + $0x7b8] sm:$0xff] %v650_v55  ;;  %v654_v57 = vld [vmem:[%s15215_s25 + $0x19c8] sm:$0xff]  ;;  %v656_v58 = vld [vmem:[%s15215_s25 + $0x19d0] sm:$0xff] }
  0x8f   : > { %653 = vst [vmem:[%s15220_s26 + $0x7c0] sm:$0xff] %v652_v56  ;;  %v658_v59 = vld [vmem:[%s15215_s25 + $0x19d8] sm:$0xff]  ;;  %655 = vst [vmem:[%s15220_s26 + $0x7c8] sm:$0xff] %v654_v57  ;;  %v660_v60 = vld [vmem:[%s15215_s25 + $0x19e0] sm:$0xff] }
  0x90   : > { %657 = vst [vmem:[%s15220_s26 + $0x7d0] sm:$0xff] %v656_v58  ;;  %659 = vst [vmem:[%s15220_s26 + $0x7d8] sm:$0xff] %v658_v59  ;;  %v662_v61 = vld [vmem:[%s15215_s25 + $0x19e8] sm:$0xff]  ;;  %v664_v62 = vld [vmem:[%s15215_s25 + $0x19f0] sm:$0xff] }
  0x91   : > { %661 = vst [vmem:[%s15220_s26 + $0x7e0] sm:$0xff] %v660_v60  ;;  %663 = vst [vmem:[%s15220_s26 + $0x7e8] sm:$0xff] %v662_v61  ;;  %v666_v63 = vld [vmem:[%s15215_s25 + $0x19f8] sm:$0xff]  ;;  %v668_v0 = vld [vmem:[%s15215_s25 + $0x1a00] sm:$0xff] }
  0x92   : > { %665 = vst [vmem:[%s15220_s26 + $0x7f0] sm:$0xff] %v664_v62  ;;  %v670_v1 = vld [vmem:[%s15215_s25 + $0x1a08] sm:$0xff]  ;;  %667 = vst [vmem:[%s15220_s26 + $0x7f8] sm:$0xff] %v666_v63  ;;  %v672_v2 = vld [vmem:[%s15215_s25 + $0x1a10] sm:$0xff] }
  0x93   : > { %669 = vst [vmem:[%s15220_s26 + $0x800] sm:$0xff] %v668_v0  ;;  %671 = vst [vmem:[%s15220_s26 + $0x808] sm:$0xff] %v670_v1  ;;  %v674_v3 = vld [vmem:[%s15215_s25 + $0x1a18] sm:$0xff]  ;;  %v676_v4 = vld [vmem:[%s15215_s25 + $0x1a20] sm:$0xff] }
  0x94   : > { %673 = vst [vmem:[%s15220_s26 + $0x810] sm:$0xff] %v672_v2  ;;  %675 = vst [vmem:[%s15220_s26 + $0x818] sm:$0xff] %v674_v3  ;;  %v678_v5 = vld [vmem:[%s15215_s25 + $0x1a28] sm:$0xff]  ;;  %v680_v6 = vld [vmem:[%s15215_s25 + $0x1a30] sm:$0xff] }
  0x95   : > { %677 = vst [vmem:[%s15220_s26 + $0x820] sm:$0xff] %v676_v4  ;;  %v682_v7 = vld [vmem:[%s15215_s25 + $0x1a38] sm:$0xff]  ;;  %679 = vst [vmem:[%s15220_s26 + $0x828] sm:$0xff] %v678_v5  ;;  %v684_v8 = vld [vmem:[%s15215_s25 + $0x1a40] sm:$0xff] }
  0x96   : > { %681 = vst [vmem:[%s15220_s26 + $0x830] sm:$0xff] %v680_v6  ;;  %683 = vst [vmem:[%s15220_s26 + $0x838] sm:$0xff] %v682_v7  ;;  %v686_v9 = vld [vmem:[%s15215_s25 + $0x1a48] sm:$0xff]  ;;  %v688_v10 = vld [vmem:[%s15215_s25 + $0x1a50] sm:$0xff] }
  0x97   : > { %685 = vst [vmem:[%s15220_s26 + $0x840] sm:$0xff] %v684_v8  ;;  %687 = vst [vmem:[%s15220_s26 + $0x848] sm:$0xff] %v686_v9  ;;  %v690_v11 = vld [vmem:[%s15215_s25 + $0x1a58] sm:$0xff]  ;;  %v692_v12 = vld [vmem:[%s15215_s25 + $0x1a60] sm:$0xff] }
  0x98   : > { %689 = vst [vmem:[%s15220_s26 + $0x850] sm:$0xff] %v688_v10  ;;  %v694_v13 = vld [vmem:[%s15215_s25 + $0x1a68] sm:$0xff]  ;;  %691 = vst [vmem:[%s15220_s26 + $0x858] sm:$0xff] %v690_v11  ;;  %v696_v14 = vld [vmem:[%s15215_s25 + $0x1a70] sm:$0xff] }
  0x99   : > { %693 = vst [vmem:[%s15220_s26 + $0x860] sm:$0xff] %v692_v12  ;;  %695 = vst [vmem:[%s15220_s26 + $0x868] sm:$0xff] %v694_v13  ;;  %v698_v15 = vld [vmem:[%s15215_s25 + $0x1a78] sm:$0xff]  ;;  %v700_v16 = vld [vmem:[%s15215_s25 + $0x1a80] sm:$0xff] }
  0x9a   : > { %697 = vst [vmem:[%s15220_s26 + $0x870] sm:$0xff] %v696_v14  ;;  %699 = vst [vmem:[%s15220_s26 + $0x878] sm:$0xff] %v698_v15  ;;  %v702_v17 = vld [vmem:[%s15215_s25 + $0x1a88] sm:$0xff]  ;;  %v704_v18 = vld [vmem:[%s15215_s25 + $0x1a90] sm:$0xff] }
  0x9b   : > { %701 = vst [vmem:[%s15220_s26 + $0x880] sm:$0xff] %v700_v16  ;;  %v706_v19 = vld [vmem:[%s15215_s25 + $0x1a98] sm:$0xff]  ;;  %703 = vst [vmem:[%s15220_s26 + $0x888] sm:$0xff] %v702_v17  ;;  %v708_v20 = vld [vmem:[%s15215_s25 + $0x1aa0] sm:$0xff] }
  0x9c   : > { %705 = vst [vmem:[%s15220_s26 + $0x890] sm:$0xff] %v704_v18  ;;  %707 = vst [vmem:[%s15220_s26 + $0x898] sm:$0xff] %v706_v19  ;;  %v710_v21 = vld [vmem:[%s15215_s25 + $0x1aa8] sm:$0xff]  ;;  %v712_v22 = vld [vmem:[%s15215_s25 + $0x1ab0] sm:$0xff] }
  0x9d   : > { %709 = vst [vmem:[%s15220_s26 + $0x8a0] sm:$0xff] %v708_v20  ;;  %711 = vst [vmem:[%s15220_s26 + $0x8a8] sm:$0xff] %v710_v21  ;;  %v714_v23 = vld [vmem:[%s15215_s25 + $0x1ab8] sm:$0xff]  ;;  %v716_v24 = vld [vmem:[%s15215_s25 + $0x1ac0] sm:$0xff] }
  0x9e   : > { %713 = vst [vmem:[%s15220_s26 + $0x8b0] sm:$0xff] %v712_v22  ;;  %v718_v25 = vld [vmem:[%s15215_s25 + $0x1ac8] sm:$0xff]  ;;  %715 = vst [vmem:[%s15220_s26 + $0x8b8] sm:$0xff] %v714_v23  ;;  %v720_v26 = vld [vmem:[%s15215_s25 + $0x1ad0] sm:$0xff] }
  0x9f   : > { %717 = vst [vmem:[%s15220_s26 + $0x8c0] sm:$0xff] %v716_v24  ;;  %719 = vst [vmem:[%s15220_s26 + $0x8c8] sm:$0xff] %v718_v25  ;;  %v722_v27 = vld [vmem:[%s15215_s25 + $0x1ad8] sm:$0xff]  ;;  %v724_v28 = vld [vmem:[%s15215_s25 + $0x1ae0] sm:$0xff] }
  0xa0   : > { %721 = vst [vmem:[%s15220_s26 + $0x8d0] sm:$0xff] %v720_v26  ;;  %723 = vst [vmem:[%s15220_s26 + $0x8d8] sm:$0xff] %v722_v27  ;;  %v726_v29 = vld [vmem:[%s15215_s25 + $0x1ae8] sm:$0xff]  ;;  %v728_v30 = vld [vmem:[%s15215_s25 + $0x1af0] sm:$0xff] }
  0xa1   : > { %725 = vst [vmem:[%s15220_s26 + $0x8e0] sm:$0xff] %v724_v28  ;;  %v730_v31 = vld [vmem:[%s15215_s25 + $0x1af8] sm:$0xff]  ;;  %727 = vst [vmem:[%s15220_s26 + $0x8e8] sm:$0xff] %v726_v29  ;;  %v732_v32 = vld [vmem:[%s15215_s25 + $0x1b00] sm:$0xff] }
  0xa2   : > { %729 = vst [vmem:[%s15220_s26 + $0x8f0] sm:$0xff] %v728_v30  ;;  %731 = vst [vmem:[%s15220_s26 + $0x8f8] sm:$0xff] %v730_v31  ;;  %v734_v33 = vld [vmem:[%s15215_s25 + $0x1b08] sm:$0xff]  ;;  %v736_v34 = vld [vmem:[%s15215_s25 + $0x1b10] sm:$0xff] }
  0xa3   : > { %733 = vst [vmem:[%s15220_s26 + $0x900] sm:$0xff] %v732_v32  ;;  %735 = vst [vmem:[%s15220_s26 + $0x908] sm:$0xff] %v734_v33  ;;  %v738_v35 = vld [vmem:[%s15215_s25 + $0x1b18] sm:$0xff]  ;;  %v740_v36 = vld [vmem:[%s15215_s25 + $0x1b20] sm:$0xff] }
  0xa4   : > { %737 = vst [vmem:[%s15220_s26 + $0x910] sm:$0xff] %v736_v34  ;;  %v742_v37 = vld [vmem:[%s15215_s25 + $0x1b28] sm:$0xff]  ;;  %739 = vst [vmem:[%s15220_s26 + $0x918] sm:$0xff] %v738_v35  ;;  %v744_v38 = vld [vmem:[%s15215_s25 + $0x1b30] sm:$0xff] }
  0xa5   : > { %741 = vst [vmem:[%s15220_s26 + $0x920] sm:$0xff] %v740_v36  ;;  %743 = vst [vmem:[%s15220_s26 + $0x928] sm:$0xff] %v742_v37  ;;  %v746_v39 = vld [vmem:[%s15215_s25 + $0x1b38] sm:$0xff]  ;;  %v748_v40 = vld [vmem:[%s15215_s25 + $0x1b40] sm:$0xff] }
  0xa6   : > { %745 = vst [vmem:[%s15220_s26 + $0x930] sm:$0xff] %v744_v38  ;;  %747 = vst [vmem:[%s15220_s26 + $0x938] sm:$0xff] %v746_v39  ;;  %v750_v41 = vld [vmem:[%s15215_s25 + $0x1b48] sm:$0xff]  ;;  %v752_v42 = vld [vmem:[%s15215_s25 + $0x1b50] sm:$0xff] }
  0xa7   : > { %749 = vst [vmem:[%s15220_s26 + $0x940] sm:$0xff] %v748_v40  ;;  %v754_v43 = vld [vmem:[%s15215_s25 + $0x1b58] sm:$0xff]  ;;  %751 = vst [vmem:[%s15220_s26 + $0x948] sm:$0xff] %v750_v41  ;;  %v756_v44 = vld [vmem:[%s15215_s25 + $0x1b60] sm:$0xff] }
  0xa8   : > { %753 = vst [vmem:[%s15220_s26 + $0x950] sm:$0xff] %v752_v42  ;;  %755 = vst [vmem:[%s15220_s26 + $0x958] sm:$0xff] %v754_v43  ;;  %v758_v45 = vld [vmem:[%s15215_s25 + $0x1b68] sm:$0xff]  ;;  %v760_v46 = vld [vmem:[%s15215_s25 + $0x1b70] sm:$0xff] }
  0xa9   : > { %757 = vst [vmem:[%s15220_s26 + $0x960] sm:$0xff] %v756_v44  ;;  %759 = vst [vmem:[%s15220_s26 + $0x968] sm:$0xff] %v758_v45  ;;  %v762_v47 = vld [vmem:[%s15215_s25 + $0x1b78] sm:$0xff]  ;;  %v764_v48 = vld [vmem:[%s15215_s25 + $0x1b80] sm:$0xff] }
  0xaa   : > { %761 = vst [vmem:[%s15220_s26 + $0x970] sm:$0xff] %v760_v46  ;;  %v766_v49 = vld [vmem:[%s15215_s25 + $0x1b88] sm:$0xff]  ;;  %763 = vst [vmem:[%s15220_s26 + $0x978] sm:$0xff] %v762_v47  ;;  %v768_v50 = vld [vmem:[%s15215_s25 + $0x1b90] sm:$0xff] }
  0xab   : > { %765 = vst [vmem:[%s15220_s26 + $0x980] sm:$0xff] %v764_v48  ;;  %767 = vst [vmem:[%s15220_s26 + $0x988] sm:$0xff] %v766_v49  ;;  %v770_v51 = vld [vmem:[%s15215_s25 + $0x1b98] sm:$0xff]  ;;  %v772_v52 = vld [vmem:[%s15215_s25 + $0x1ba0] sm:$0xff] }
  0xac   : > { %769 = vst [vmem:[%s15220_s26 + $0x990] sm:$0xff] %v768_v50  ;;  %771 = vst [vmem:[%s15220_s26 + $0x998] sm:$0xff] %v770_v51  ;;  %v774_v53 = vld [vmem:[%s15215_s25 + $0x1ba8] sm:$0xff]  ;;  %v776_v54 = vld [vmem:[%s15215_s25 + $0x1bb0] sm:$0xff] }
  0xad   : > { %773 = vst [vmem:[%s15220_s26 + $0x9a0] sm:$0xff] %v772_v52  ;;  %v778_v55 = vld [vmem:[%s15215_s25 + $0x1bb8] sm:$0xff]  ;;  %775 = vst [vmem:[%s15220_s26 + $0x9a8] sm:$0xff] %v774_v53  ;;  %v780_v56 = vld [vmem:[%s15215_s25 + $0x1bc0] sm:$0xff] }
  0xae   : > { %777 = vst [vmem:[%s15220_s26 + $0x9b0] sm:$0xff] %v776_v54  ;;  %779 = vst [vmem:[%s15220_s26 + $0x9b8] sm:$0xff] %v778_v55  ;;  %v782_v57 = vld [vmem:[%s15215_s25 + $0x1bc8] sm:$0xff]  ;;  %v784_v58 = vld [vmem:[%s15215_s25 + $0x1bd0] sm:$0xff] }
  0xaf   : > { %781 = vst [vmem:[%s15220_s26 + $0x9c0] sm:$0xff] %v780_v56  ;;  %783 = vst [vmem:[%s15220_s26 + $0x9c8] sm:$0xff] %v782_v57  ;;  %v786_v59 = vld [vmem:[%s15215_s25 + $0x1bd8] sm:$0xff]  ;;  %v788_v60 = vld [vmem:[%s15215_s25 + $0x1be0] sm:$0xff] }
  0xb0   : > { %785 = vst [vmem:[%s15220_s26 + $0x9d0] sm:$0xff] %v784_v58  ;;  %v790_v61 = vld [vmem:[%s15215_s25 + $0x1be8] sm:$0xff]  ;;  %787 = vst [vmem:[%s15220_s26 + $0x9d8] sm:$0xff] %v786_v59  ;;  %v792_v62 = vld [vmem:[%s15215_s25 + $0x1bf0] sm:$0xff] }
  0xb1   : > { %789 = vst [vmem:[%s15220_s26 + $0x9e0] sm:$0xff] %v788_v60  ;;  %791 = vst [vmem:[%s15220_s26 + $0x9e8] sm:$0xff] %v790_v61  ;;  %v794_v63 = vld [vmem:[%s15215_s25 + $0x1bf8] sm:$0xff]  ;;  %v796_v0 = vld [vmem:[%s15215_s25 + $0x1c00] sm:$0xff] }
  0xb2   : > { %793 = vst [vmem:[%s15220_s26 + $0x9f0] sm:$0xff] %v792_v62  ;;  %795 = vst [vmem:[%s15220_s26 + $0x9f8] sm:$0xff] %v794_v63  ;;  %v798_v1 = vld [vmem:[%s15215_s25 + $0x1c08] sm:$0xff]  ;;  %v800_v2 = vld [vmem:[%s15215_s25 + $0x1c10] sm:$0xff] }
  0xb3   : > { %797 = vst [vmem:[%s15220_s26 + $0xa00] sm:$0xff] %v796_v0  ;;  %v802_v3 = vld [vmem:[%s15215_s25 + $0x1c18] sm:$0xff]  ;;  %799 = vst [vmem:[%s15220_s26 + $0xa08] sm:$0xff] %v798_v1  ;;  %v804_v4 = vld [vmem:[%s15215_s25 + $0x1c20] sm:$0xff] }
  0xb4   : > { %801 = vst [vmem:[%s15220_s26 + $0xa10] sm:$0xff] %v800_v2  ;;  %803 = vst [vmem:[%s15220_s26 + $0xa18] sm:$0xff] %v802_v3  ;;  %v806_v5 = vld [vmem:[%s15215_s25 + $0x1c28] sm:$0xff]  ;;  %v808_v6 = vld [vmem:[%s15215_s25 + $0x1c30] sm:$0xff] }
  0xb5   : > { %805 = vst [vmem:[%s15220_s26 + $0xa20] sm:$0xff] %v804_v4  ;;  %807 = vst [vmem:[%s15220_s26 + $0xa28] sm:$0xff] %v806_v5  ;;  %v810_v7 = vld [vmem:[%s15215_s25 + $0x1c38] sm:$0xff]  ;;  %v812_v8 = vld [vmem:[%s15215_s25 + $0x1c40] sm:$0xff] }
  0xb6   : > { %809 = vst [vmem:[%s15220_s26 + $0xa30] sm:$0xff] %v808_v6  ;;  %v814_v9 = vld [vmem:[%s15215_s25 + $0x1c48] sm:$0xff]  ;;  %811 = vst [vmem:[%s15220_s26 + $0xa38] sm:$0xff] %v810_v7  ;;  %v816_v10 = vld [vmem:[%s15215_s25 + $0x1c50] sm:$0xff] }
  0xb7   : > { %813 = vst [vmem:[%s15220_s26 + $0xa40] sm:$0xff] %v812_v8  ;;  %815 = vst [vmem:[%s15220_s26 + $0xa48] sm:$0xff] %v814_v9  ;;  %v818_v11 = vld [vmem:[%s15215_s25 + $0x1c58] sm:$0xff]  ;;  %v820_v12 = vld [vmem:[%s15215_s25 + $0x1c60] sm:$0xff] }
  0xb8   : > { %817 = vst [vmem:[%s15220_s26 + $0xa50] sm:$0xff] %v816_v10  ;;  %819 = vst [vmem:[%s15220_s26 + $0xa58] sm:$0xff] %v818_v11  ;;  %v822_v13 = vld [vmem:[%s15215_s25 + $0x1c68] sm:$0xff]  ;;  %v824_v14 = vld [vmem:[%s15215_s25 + $0x1c70] sm:$0xff] }
  0xb9   : > { %821 = vst [vmem:[%s15220_s26 + $0xa60] sm:$0xff] %v820_v12  ;;  %v826_v15 = vld [vmem:[%s15215_s25 + $0x1c78] sm:$0xff]  ;;  %823 = vst [vmem:[%s15220_s26 + $0xa68] sm:$0xff] %v822_v13  ;;  %v828_v16 = vld [vmem:[%s15215_s25 + $0x1c80] sm:$0xff] }
  0xba   : > { %825 = vst [vmem:[%s15220_s26 + $0xa70] sm:$0xff] %v824_v14  ;;  %827 = vst [vmem:[%s15220_s26 + $0xa78] sm:$0xff] %v826_v15  ;;  %v830_v17 = vld [vmem:[%s15215_s25 + $0x1c88] sm:$0xff]  ;;  %v832_v18 = vld [vmem:[%s15215_s25 + $0x1c90] sm:$0xff] }
  0xbb   : > { %829 = vst [vmem:[%s15220_s26 + $0xa80] sm:$0xff] %v828_v16  ;;  %831 = vst [vmem:[%s15220_s26 + $0xa88] sm:$0xff] %v830_v17  ;;  %v834_v19 = vld [vmem:[%s15215_s25 + $0x1c98] sm:$0xff]  ;;  %v836_v20 = vld [vmem:[%s15215_s25 + $0x1ca0] sm:$0xff] }
  0xbc   : > { %833 = vst [vmem:[%s15220_s26 + $0xa90] sm:$0xff] %v832_v18  ;;  %v838_v21 = vld [vmem:[%s15215_s25 + $0x1ca8] sm:$0xff]  ;;  %835 = vst [vmem:[%s15220_s26 + $0xa98] sm:$0xff] %v834_v19  ;;  %v840_v22 = vld [vmem:[%s15215_s25 + $0x1cb0] sm:$0xff] }
  0xbd   : > { %837 = vst [vmem:[%s15220_s26 + $0xaa0] sm:$0xff] %v836_v20  ;;  %839 = vst [vmem:[%s15220_s26 + $0xaa8] sm:$0xff] %v838_v21  ;;  %v842_v23 = vld [vmem:[%s15215_s25 + $0x1cb8] sm:$0xff]  ;;  %v844_v24 = vld [vmem:[%s15215_s25 + $0x1cc0] sm:$0xff] }
  0xbe   : > { %841 = vst [vmem:[%s15220_s26 + $0xab0] sm:$0xff] %v840_v22  ;;  %843 = vst [vmem:[%s15220_s26 + $0xab8] sm:$0xff] %v842_v23  ;;  %v846_v25 = vld [vmem:[%s15215_s25 + $0x1cc8] sm:$0xff]  ;;  %v848_v26 = vld [vmem:[%s15215_s25 + $0x1cd0] sm:$0xff] }
  0xbf   : > { %845 = vst [vmem:[%s15220_s26 + $0xac0] sm:$0xff] %v844_v24  ;;  %v850_v27 = vld [vmem:[%s15215_s25 + $0x1cd8] sm:$0xff]  ;;  %847 = vst [vmem:[%s15220_s26 + $0xac8] sm:$0xff] %v846_v25  ;;  %v852_v28 = vld [vmem:[%s15215_s25 + $0x1ce0] sm:$0xff] }
  0xc0   : > { %849 = vst [vmem:[%s15220_s26 + $0xad0] sm:$0xff] %v848_v26  ;;  %851 = vst [vmem:[%s15220_s26 + $0xad8] sm:$0xff] %v850_v27  ;;  %v854_v29 = vld [vmem:[%s15215_s25 + $0x1ce8] sm:$0xff]  ;;  %v856_v30 = vld [vmem:[%s15215_s25 + $0x1cf0] sm:$0xff] }
  0xc1   : > { %853 = vst [vmem:[%s15220_s26 + $0xae0] sm:$0xff] %v852_v28  ;;  %855 = vst [vmem:[%s15220_s26 + $0xae8] sm:$0xff] %v854_v29  ;;  %v858_v31 = vld [vmem:[%s15215_s25 + $0x1cf8] sm:$0xff]  ;;  %v860_v32 = vld [vmem:[%s15215_s25 + $0x1d00] sm:$0xff] }
  0xc2   : > { %857 = vst [vmem:[%s15220_s26 + $0xaf0] sm:$0xff] %v856_v30  ;;  %v862_v33 = vld [vmem:[%s15215_s25 + $0x1d08] sm:$0xff]  ;;  %859 = vst [vmem:[%s15220_s26 + $0xaf8] sm:$0xff] %v858_v31  ;;  %v864_v34 = vld [vmem:[%s15215_s25 + $0x1d10] sm:$0xff] }
  0xc3   : > { %861 = vst [vmem:[%s15220_s26 + $0xb00] sm:$0xff] %v860_v32  ;;  %863 = vst [vmem:[%s15220_s26 + $0xb08] sm:$0xff] %v862_v33  ;;  %v866_v35 = vld [vmem:[%s15215_s25 + $0x1d18] sm:$0xff]  ;;  %v868_v36 = vld [vmem:[%s15215_s25 + $0x1d20] sm:$0xff] }
  0xc4   : > { %865 = vst [vmem:[%s15220_s26 + $0xb10] sm:$0xff] %v864_v34  ;;  %867 = vst [vmem:[%s15220_s26 + $0xb18] sm:$0xff] %v866_v35  ;;  %v870_v37 = vld [vmem:[%s15215_s25 + $0x1d28] sm:$0xff]  ;;  %v872_v38 = vld [vmem:[%s15215_s25 + $0x1d30] sm:$0xff] }
  0xc5   : > { %869 = vst [vmem:[%s15220_s26 + $0xb20] sm:$0xff] %v868_v36  ;;  %v874_v39 = vld [vmem:[%s15215_s25 + $0x1d38] sm:$0xff]  ;;  %871 = vst [vmem:[%s15220_s26 + $0xb28] sm:$0xff] %v870_v37  ;;  %v876_v40 = vld [vmem:[%s15215_s25 + $0x1d40] sm:$0xff] }
  0xc6   : > { %873 = vst [vmem:[%s15220_s26 + $0xb30] sm:$0xff] %v872_v38  ;;  %875 = vst [vmem:[%s15220_s26 + $0xb38] sm:$0xff] %v874_v39  ;;  %v878_v41 = vld [vmem:[%s15215_s25 + $0x1d48] sm:$0xff]  ;;  %v880_v42 = vld [vmem:[%s15215_s25 + $0x1d50] sm:$0xff] }
  0xc7   : > { %877 = vst [vmem:[%s15220_s26 + $0xb40] sm:$0xff] %v876_v40  ;;  %879 = vst [vmem:[%s15220_s26 + $0xb48] sm:$0xff] %v878_v41  ;;  %v882_v43 = vld [vmem:[%s15215_s25 + $0x1d58] sm:$0xff]  ;;  %v884_v44 = vld [vmem:[%s15215_s25 + $0x1d60] sm:$0xff] }
  0xc8   : > { %881 = vst [vmem:[%s15220_s26 + $0xb50] sm:$0xff] %v880_v42  ;;  %v886_v45 = vld [vmem:[%s15215_s25 + $0x1d68] sm:$0xff]  ;;  %883 = vst [vmem:[%s15220_s26 + $0xb58] sm:$0xff] %v882_v43  ;;  %v888_v46 = vld [vmem:[%s15215_s25 + $0x1d70] sm:$0xff] }
  0xc9   : > { %885 = vst [vmem:[%s15220_s26 + $0xb60] sm:$0xff] %v884_v44  ;;  %887 = vst [vmem:[%s15220_s26 + $0xb68] sm:$0xff] %v886_v45  ;;  %v890_v47 = vld [vmem:[%s15215_s25 + $0x1d78] sm:$0xff]  ;;  %v892_v48 = vld [vmem:[%s15215_s25 + $0x1d80] sm:$0xff] }
  0xca   : > { %889 = vst [vmem:[%s15220_s26 + $0xb70] sm:$0xff] %v888_v46  ;;  %891 = vst [vmem:[%s15220_s26 + $0xb78] sm:$0xff] %v890_v47  ;;  %v894_v49 = vld [vmem:[%s15215_s25 + $0x1d88] sm:$0xff]  ;;  %v896_v50 = vld [vmem:[%s15215_s25 + $0x1d90] sm:$0xff] }
  0xcb   : > { %893 = vst [vmem:[%s15220_s26 + $0xb80] sm:$0xff] %v892_v48  ;;  %v898_v51 = vld [vmem:[%s15215_s25 + $0x1d98] sm:$0xff]  ;;  %895 = vst [vmem:[%s15220_s26 + $0xb88] sm:$0xff] %v894_v49  ;;  %v900_v52 = vld [vmem:[%s15215_s25 + $0x1da0] sm:$0xff] }
  0xcc   : > { %897 = vst [vmem:[%s15220_s26 + $0xb90] sm:$0xff] %v896_v50  ;;  %899 = vst [vmem:[%s15220_s26 + $0xb98] sm:$0xff] %v898_v51  ;;  %v902_v53 = vld [vmem:[%s15215_s25 + $0x1da8] sm:$0xff]  ;;  %v904_v54 = vld [vmem:[%s15215_s25 + $0x1db0] sm:$0xff] }
  0xcd   : > { %901 = vst [vmem:[%s15220_s26 + $0xba0] sm:$0xff] %v900_v52  ;;  %903 = vst [vmem:[%s15220_s26 + $0xba8] sm:$0xff] %v902_v53  ;;  %v906_v55 = vld [vmem:[%s15215_s25 + $0x1db8] sm:$0xff]  ;;  %v908_v56 = vld [vmem:[%s15215_s25 + $0x1dc0] sm:$0xff] }
  0xce   : > { %905 = vst [vmem:[%s15220_s26 + $0xbb0] sm:$0xff] %v904_v54  ;;  %v910_v57 = vld [vmem:[%s15215_s25 + $0x1dc8] sm:$0xff]  ;;  %907 = vst [vmem:[%s15220_s26 + $0xbb8] sm:$0xff] %v906_v55  ;;  %v912_v58 = vld [vmem:[%s15215_s25 + $0x1dd0] sm:$0xff] }
  0xcf   : > { %909 = vst [vmem:[%s15220_s26 + $0xbc0] sm:$0xff] %v908_v56  ;;  %911 = vst [vmem:[%s15220_s26 + $0xbc8] sm:$0xff] %v910_v57  ;;  %v914_v59 = vld [vmem:[%s15215_s25 + $0x1dd8] sm:$0xff]  ;;  %v916_v60 = vld [vmem:[%s15215_s25 + $0x1de0] sm:$0xff] }
  0xd0   : > { %913 = vst [vmem:[%s15220_s26 + $0xbd0] sm:$0xff] %v912_v58  ;;  %915 = vst [vmem:[%s15220_s26 + $0xbd8] sm:$0xff] %v914_v59  ;;  %v918_v61 = vld [vmem:[%s15215_s25 + $0x1de8] sm:$0xff]  ;;  %v920_v62 = vld [vmem:[%s15215_s25 + $0x1df0] sm:$0xff] }
  0xd1   : > { %917 = vst [vmem:[%s15220_s26 + $0xbe0] sm:$0xff] %v916_v60  ;;  %v922_v63 = vld [vmem:[%s15215_s25 + $0x1df8] sm:$0xff]  ;;  %919 = vst [vmem:[%s15220_s26 + $0xbe8] sm:$0xff] %v918_v61 }
  0xd2   : > { %921 = vst [vmem:[%s15220_s26 + $0xbf0] sm:$0xff] %v920_v62  ;;  %923 = vst [vmem:[%s15220_s26 + $0xbf8] sm:$0xff] %v922_v63 }
  0xd3 PF: > { %p13867_p5 = scmp.ge.s32.totalorder %s15155_s14, 1  ;;  %p928_p6 = scmp.lt.s32.totalorder %s15155_s14, 5 }
  0xd5   : > { %p929_p7 = pnand %p13867_p5, %p928_p6 }
  0xd6   : > { %s935_s27 = sand.u32 (!%p929_p7), 1, %s15147_s12   ;;  %s957_s28 = smul.u32 (!%p929_p7), 384, %s15195_s15  ;;  %v1448_v0 = vlaneseq (!%p929_p7)  ;;  %v15157_v1 = vmov (!%p929_p7), 1966171168  }
  0xd7   : > { %932 = sbr.rel (%p929_p7) target bundleno = 1625 (0x659), region = 51  ;;  %v1446_v2 = vunpack.c.l.s4 (!%p929_p7), %v15157_v1  ;;  %p14252_p9 = scmp.ne.s32.totalorder (!%p929_p7), %s15195_s15, 0 }
  0xd8   : > { %s15022_s29 = smul.u32 (!%p929_p7), 3072, %s935_s27  ;;  %p958_p8 = scmp.lt.s32.totalorder (!%p929_p7), %s957_s28, 1535  ;;  %v1449_v3 = vshrl.u32 (!%p929_p7), %v1448_v0, 7 }
  0xd9   : > { %v1447_v4 = vunpack.c.0.s8 (!%p929_p7), %v1446_v2 }
  0xda   : > { %s15991_s30 = scalar_lea.vmem (!%p929_p7), [#allocation2], %s15022_s29 }
  0xdb   : > { %v1012_v5 = vld [vmem:[%s15991_s30] sm:$0xff] (!%p929_p7)  ;;  %v15997_v11 = vsub.s32 (!%p929_p7), %v1447_v4, %v1449_v3  ;;  %v1013_v12 = vld [vmem:[%s15991_s30 + $0x8] sm:$0xff] (!%p929_p7)  ;;  %v1014_v27 = vld [vmem:[%s15991_s30 + $0x10] sm:$0xff] (!%p929_p7) }
  0xdc   : > { %v1204_v6 = vld [vmem:[%s15991_s30 + $0x600] sm:$0x11] (!%p929_p7)  ;;  %v1205_v13 = vld [vmem:[%s15991_s30 + $0x608] sm:$0x11] (!%p929_p7)  ;;  %v1206_v28 = vld [vmem:[%s15991_s30 + $0x610] sm:$0x11] (!%p929_p7) }
  0xdd   : > { %v1108_v7 = vld [vmem:[%s15991_s30 + $0x300] sm:$0xff] (!%p929_p7)  ;;  %v13869_v8 = vcombine.high (!%p929_p7), %v1012_v5, %v1204_v6  ;;  %v13868_v10 = vcombine.low (!%p929_p7), %v1012_v5, %v1204_v6  ;;  %v13871_v16 = vcombine.high (!%p929_p7), %v1013_v12, %v1205_v13  ;;  %v1109_v17 = vld [vmem:[%s15991_s30 + $0x308] sm:$0xff] (!%p929_p7)  ;;  %v13870_v30 = vcombine.low (!%p929_p7), %v1013_v12, %v1205_v13  ;;  %v1110_v32 = vld [vmem:[%s15991_s30 + $0x310] sm:$0xff] (!%p929_p7) }
  0xde   : > { %s16766_s28 = smov (!%p958_p8, %s957_s28), 1535  ;;  %v1300_v9 = vld [vmem:[%s15991_s30 + $0x900] sm:$0x11]  ;;  %v1301_v18 = vld [vmem:[%s15991_s30 + $0x908] sm:$0x11]  ;;  %v13873_v39 = vcombine.high %v1014_v27, %v1206_v28  ;;  %v1015_v47 = vld [vmem:[%s15991_s30 + $0x18] sm:$0xff]  ;;  %v13872_v50 = vcombine.low %v1014_v27, %v1206_v28 }
  0xdf   : > { %v14061_v14 = vcombine.high %v1108_v7, %v1300_v9  ;;  %v14060_v15 = vcombine.low %v1108_v7, %v1300_v9  ;;  %s16004_s6 = scalar_lea.vmem %s16758_s0, %s16766_s28  ;;  %6100 = vmatprep.subr.bf16.mxu1 %v13869_v8  ;;  %v14063_v21 = vcombine.high %v1109_v17, %v1301_v18  ;;  %v1302_v33 = vld [vmem:[%s15991_s30 + $0x910] sm:$0x11]  ;;  %v14062_v36 = vcombine.low %v1109_v17, %v1301_v18  ;;  %v1207_v48 = vld [vmem:[%s15991_s30 + $0x618] sm:$0x11]  ;;  %v1016_v59 = vld [vmem:[%s15991_s30 + $0x20] sm:$0xff] }
  0xe0   : > { %v964_v19 = vld [vmem:[%s16004_s6] sm:$0xff]  ;;  %6101 = vmatpush1.bf16.xpose.msra.mxu1 %v13868_v10  ;;  %v14065_v41 = vcombine.high %v1110_v32, %v1302_v33  ;;  %v1111_v51 = vld [vmem:[%s15991_s30 + $0x318] sm:$0xff]  ;;  %v14064_v53 = vcombine.low %v1110_v32, %v1302_v33  ;;  %v13875_v56 = vcombine.high %v1015_v47, %v1207_v48  ;;  %v13874_v61 = vcombine.low %v1015_v47, %v1207_v48  ;;  %v965_v5 = vld [vmem:[%s16004_s6 + $0x8] sm:$0xff] }
  0xe1   : > { %v988_v20 = vld [vmem:[%s16004_s6 + $0xc0] sm:$0xff]  ;;  %9940 = vmatprep.subr.bf16.mxu0 %v14061_v14  ;;  %v1451_v22 = vrot.slane %v964_v19, %v15997_v11  ;;  %6140 = vmatprep.subr.bf16.mxu1 %v13871_v16  ;;  %v1444_v34 = vcombine.high %v964_v19, %v964_v19  ;;  %v1303_v52 = vld [vmem:[%s15991_s30 + $0x918] sm:$0x11]  ;;  %v989_v7 = vld [vmem:[%s16004_s6 + $0xc8] sm:$0xff]  ;;  %v1500_v8 = vrot.slane %v965_v5, %v15997_v11  ;;  %vm13792_vm0 = vcmask (!%p14252_p9), 74752  }
  0xe2   : > { %9941 = vmatpush1.bf16.xpose.msra.mxu0 %v14060_v15  ;;  %v2627_v23 = vrot.slane %v988_v20, %v15997_v11  ;;  %v2620_v38 = vcombine.high %v988_v20, %v988_v20  ;;  %v14067_v57 = vcombine.high %v1111_v51, %v1303_v52  ;;  %v1208_v60 = vld [vmem:[%s15991_s30 + $0x620] sm:$0x11]  ;;  %v14066_v1 = vcombine.low %v1111_v51, %v1303_v52  ;;  %v1017_v14 = vld [vmem:[%s15991_s30 + $0x28] sm:$0xff]  ;;  %v1210_v27 = vld [vmem:[%s15991_s30 + $0x630] sm:$0x11] }
  0xe3   : > { %v1459_v24 = vcombine.high %v1451_v22, %v1451_v22  ;;  %9980 = vmatprep.subr.bf16.mxu0 %v14063_v21  ;;  %v1467_v26 = vrot.slane %v1451_v22, %v15997_v11  ;;  %v1458_v42 = vrot.slane %v1444_v34, %v15997_v11  ;;  %v1112_v63 = vld [vmem:[%s15991_s30 + $0x320] sm:$0xff]  ;;  %v13877_v4 = vcombine.high %v1016_v59, %v1208_v60  ;;  %v1209_v15 = vld [vmem:[%s15991_s30 + $0x628] sm:$0x11]  ;;  %v1115_v48 = vld [vmem:[%s15991_s30 + $0x338] sm:$0xff] }
  0xe4   : > { %v2635_v25 = vcombine.high %v2627_v23, %v2627_v23  ;;  %v2643_v31 = vrot.slane %v2627_v23, %v15997_v11  ;;  %v2634_v43 = vrot.slane %v2620_v38, %v15997_v11  ;;  %v1304_v0 = vld [vmem:[%s15991_s30 + $0x920] sm:$0x11]  ;;  %v2676_v9 = vrot.slane %v989_v7, %v15997_v11  ;;  %v1113_v18 = vld [vmem:[%s15991_s30 + $0x328] sm:$0xff] }
  0xe5   : > { %v1481_v29 = vrot.slane %v1459_v24, %v15997_v11  ;;  %v1460_v44 = vcombine.high %v1458_v42, %v1458_v42  ;;  %v1489_v46 = vcombine.high %v1467_v26, %v1467_v26  ;;  %v1474_v58 = vrot.slane %v1458_v42, %v15997_v11  ;;  %v1305_v19 = vld [vmem:[%s15991_s30 + $0x928] sm:$0x11] }
  0xe6   : > { %v2657_v35 = vrot.slane %v2635_v25, %v15997_v11  ;;  %v2636_v45 = vcombine.high %v2634_v43, %v2634_v43  ;;  %v2665_v49 = vcombine.high %v2643_v31, %v2643_v31  ;;  %v2650_v62 = vrot.slane %v2634_v43, %v15997_v11 }
  0xe7   : > { %v1491_v37 = vcombine.high %v1481_v29, %v1481_v29  ;;  %6132 = vmatprep.mubr.bf16.mxu1 %v1481_v29  ;;  %v1488_v54 = vrot.slane %v1460_v44, %v15997_v11  ;;  %v14069_v6 = vcombine.high %v1112_v63, %v1304_v0  ;;  %v1508_v10 = vcombine.high %v1500_v8, %v1500_v8  ;;  %v1019_v44 = vld [vmem:[%s15991_s30 + $0x38] sm:$0xff] }
  0xe8   : > { %v2667_v40 = vcombine.high %v2657_v35, %v2657_v35  ;;  %9972 = vmatprep.mubr.bf16.mxu0 %v2657_v35  ;;  %6133 = vmatmul.mubr.bf16.vlgmr.msra.gmra.mrb[0].mxu1 %v1467_v26  ;;  %v2664_v55 = vrot.slane %v2636_v45, %v15997_v11  ;;  %v2684_v12 = vcombine.high %v2676_v9, %v2676_v9  ;;  %v1018_v26 = vld [vmem:[%s15991_s30 + $0x30] sm:$0xff]  ;;  %v1211_v45 = vld [vmem:[%s15991_s30 + $0x638] sm:$0x11] }
  0xe9   : > { %9973 = vmatmul.mubr.bf16.vlgmr.msra.gmra.mrb[0].mxu0 %v2643_v31  ;;  %6141 = vmatpush1.bf16.xpose.msra.mxu1 %v13870_v30  ;;  %v1492_v2 = vcombine.high %v1488_v54, %v1488_v54  ;;  %v1490_v13 = vcombine.high %v1474_v58, %v1474_v58  ;;  %v13876_v16 = vcombine.low %v1016_v59, %v1208_v60  ;;  %v1114_v30 = vld [vmem:[%s15991_s30 + $0x330] sm:$0xff]  ;;  %v1116_v60 = vld [vmem:[%s15991_s30 + $0x340] sm:$0xff] }
  0xea   : > { %9981 = vmatpush1.bf16.xpose.msra.mxu0 %v14062_v36  ;;  %6172 = vmatprep.mubr.bf16.mxu1 %v1491_v37  ;;  %v2668_v3 = vcombine.high %v2664_v55, %v2664_v55  ;;  %v2666_v17 = vcombine.high %v2650_v62, %v2650_v62  ;;  %v14068_v20 = vcombine.low %v1112_v63, %v1304_v0  ;;  %v1306_v31 = vld [vmem:[%s15991_s30 + $0x930] sm:$0x11] }
  0xeb   : > { %10012 = vmatprep.mubr.bf16.mxu0 %v2667_v40  ;;  %6180 = vmatprep.subr.bf16.mxu1 %v13873_v39  ;;  %v1530_v21 = vrot.slane %v1508_v10, %v15997_v11  ;;  %v2706_v22 = vrot.slane %v2684_v12, %v15997_v11  ;;  %v13879_v23 = vcombine.high %v1017_v14, %v1209_v15  ;;  %v1021_v10 = vld [vmem:[%s15991_s30 + $0x48] sm:$0xff] }
  0xec   : > { %10020 = vmatprep.subr.bf16.mxu0 %v14065_v41  ;;  %v14071_v24 = vcombine.high %v1113_v18, %v1305_v19  ;;  %v1516_v25 = vrot.slane %v1500_v8, %v15997_v11  ;;  %v13878_v28 = vcombine.low %v1017_v14, %v1209_v15  ;;  %v2692_v29 = vrot.slane %v2676_v9, %v15997_v11  ;;  %v1213_v12 = vld [vmem:[%s15991_s30 + $0x648] sm:$0x11] }
  0xed   : > { %v14070_v32 = vcombine.low %v1113_v18, %v1305_v19  ;;  %v1540_v33 = vcombine.high %v1530_v21, %v1530_v21  ;;  %v1493_v34 = vcombine.high %v965_v5, %v965_v5  ;;  %v2716_v35 = vcombine.high %v2706_v22, %v2706_v22  ;;  %v1117_v15 = vld [vmem:[%s15991_s30 + $0x348] sm:$0xff] }
  0xee   : > { %v13881_v36 = vcombine.high %v1018_v26, %v1210_v27  ;;  %v2669_v37 = vcombine.high %v989_v7, %v989_v7  ;;  %v14073_v38 = vcombine.high %v1114_v30, %v1306_v31  ;;  %v1538_v43 = vcombine.high %v1516_v25, %v1516_v25 }
  0xef   : > { %v1507_v39 = vrot.slane %v1493_v34, %v15997_v11  ;;  %v2714_v47 = vcombine.high %v2692_v29, %v2692_v29 }
  0xf0   : > { %v2683_v40 = vrot.slane %v2669_v37, %v15997_v11 }
  0xf1   : > { %v1509_v41 = vcombine.high %v1507_v39, %v1507_v39 }
  0xf2   : > { %v2685_v42 = vcombine.high %v2683_v40, %v2683_v40  ;;  %v2699_v59 = vrot.slane %v2683_v40, %v15997_v11 }
  0xf3   : > { %v1537_v51 = vrot.slane %v1509_v41, %v15997_v11  ;;  %v1023_v41 = vld [vmem:[%s15991_s30 + $0x58] sm:$0xff] }
  0xf4   : > { %6173 = vmatmul.mubr.bf16.vlgmr.msra.gmra.mrb[0].mxu1 %v1489_v46  ;;  %v13880_v46 = vcombine.low %v1018_v26, %v1210_v27  ;;  %v2713_v52 = vrot.slane %v2685_v42, %v15997_v11  ;;  %v2715_v14 = vcombine.high %v2699_v59, %v2699_v59  ;;  %v1118_v27 = vld [vmem:[%s15991_s30 + $0x350] sm:$0xff]  ;;  %v1215_v42 = vld [vmem:[%s15991_s30 + $0x658] sm:$0x11] }
  0xf5   : > { %10013 = vmatmul.mubr.bf16.vlgmr.msra.gmra.mrb[0].mxu0 %v2665_v49  ;;  %6181 = vmatpush1.bf16.xpose.msra.mxu1 %v13872_v50  ;;  %v1307_v49 = vld [vmem:[%s15991_s30 + $0x938] sm:$0x11]  ;;  %v14072_v50 = vcombine.low %v1114_v30, %v1306_v31  ;;  %v1541_v63 = vcombine.high %v1537_v51, %v1537_v51 }
  0xf6   : > { %10021 = vmatpush1.bf16.xpose.msra.mxu0 %v14064_v53  ;;  %6212 = vmatprep.mubr.bf16.mxu1 %v1488_v54  ;;  %v13883_v53 = vcombine.high %v1019_v44, %v1211_v45  ;;  %v14075_v54 = vcombine.high %v1115_v48, %v1307_v49  ;;  %v2717_v0 = vcombine.high %v2713_v52, %v2713_v52 }
  0xf7   : > { %10052 = vmatprep.mubr.bf16.mxu0 %v2664_v55  ;;  %6220 = vmatprep.subr.bf16.mxu1 %v13875_v56  ;;  %v1523_v55 = vrot.slane %v1507_v39, %v15997_v11  ;;  %v1020_v56 = vld [vmem:[%s15991_s30 + $0x40] sm:$0xff] }
  0xf8   : > { %10060 = vmatprep.subr.bf16.mxu0 %v14067_v57  ;;  %v1212_v57 = vld [vmem:[%s15991_s30 + $0x640] sm:$0x11] }
  0xf9   : > { %v1539_v9 = vcombine.high %v1523_v55, %v1523_v55 }
 0x100   : > { %6213 = vmatmul.mubr.bf16.vlgmr.msra.gmra.mrb[0].mxu1 %v1474_v58  ;;  %v13882_v58 = vcombine.low %v1019_v44, %v1211_v45  ;;  %v1119_v45 = vld [vmem:[%s15991_s30 + $0x358] sm:$0xff] }
 0x101   : > { %10053 = vmatmul.mubr.bf16.vlgmr.msra.gmra.mrb[0].mxu0 %v2650_v62  ;;  %6221 = vmatpush1.bf16.xpose.msra.mxu1 %v13874_v61  ;;  %v1308_v61 = vld [vmem:[%s15991_s30 + $0x940] sm:$0x11]  ;;  %v14074_v62 = vcombine.low %v1115_v48, %v1307_v49 }
 0x102   : > { %10061 = vmatpush1.bf16.xpose.msra.mxu0 %v14066_v1  ;;  %6252 = vmatprep.mubr.bf16.mxu1 %v1492_v2  ;;  %v13885_v1 = vcombine.high %v1020_v56, %v1212_v57  ;;  %v966_v2 = vld [vmem:[%s16004_s6 + $0x10] sm:$0xff] }
 0x103   : > { %10092 = vmatprep.mubr.bf16.mxu0 %v2668_v3  ;;  %6260 = vmatprep.subr.bf16.mxu1 %v13877_v4  ;;  %v14077_v3 = vcombine.high %v1116_v60, %v1308_v61  ;;  %v990_v4 = vld [vmem:[%s16004_s6 + $0xd0] sm:$0xff]  ;;  %v1549_v5 = vrot.slane %v966_v2, %v15997_v11  ;;  %v1542_v31 = vcombine.high %v966_v2, %v966_v2 }
 0x104   : > { %10100 = vmatprep.subr.bf16.mxu0 %v14069_v6  ;;  %v2725_v6 = vrot.slane %v990_v4, %v15997_v11  ;;  %v2718_v34 = vcombine.high %v990_v4, %v990_v4 }
 0x105   : > { %v1557_v7 = vcombine.high %v1549_v5, %v1549_v5 }
 0x106   : > { %v2733_v8 = vcombine.high %v2725_v6, %v2725_v6  ;;  %v2741_v26 = vrot.slane %v2725_v6, %v15997_v11  ;;  %v2732_v37 = vrot.slane %v2718_v34, %v15997_v11 }
 0x107   : > { %v1579_v18 = vrot.slane %v1557_v7, %v15997_v11  ;;  %v1025_v7 = vld [vmem:[%s15991_s30 + $0x68] sm:$0xff] }
 0x108   : > { %v2755_v19 = vrot.slane %v2733_v8, %v15997_v11  ;;  %v2734_v39 = vcombine.high %v2732_v37, %v2732_v37  ;;  %v2763_v44 = vcombine.high %v2741_v26, %v2741_v26  ;;  %v1217_v8 = vld [vmem:[%s15991_s30 + $0x668] sm:$0x11] }
 0x109   : > { %v1589_v30 = vcombine.high %v1579_v18, %v1579_v18 }
 0x10a   : > { %v2762_v49 = vrot.slane %v2734_v39, %v15997_v11  ;;  %v1219_v39 = vld [vmem:[%s15991_s30 + $0x678] sm:$0x11] }
 0x10c   : > { %6253 = vmatmul.mubr.bf16.vlgmr.msra.gmra.mrb[0].mxu1 %v1490_v13  ;;  %v13884_v13 = vcombine.low %v1020_v56, %v1212_v57  ;;  %v2748_v56 = vrot.slane %v2732_v37, %v15997_v11  ;;  %v1120_v57 = vld [vmem:[%s15991_s30 + $0x360] sm:$0xff] }
 0x10d   : > { %10093 = vmatmul.mubr.bf16.vlgmr.msra.gmra.mrb[0].mxu0 %v2666_v17  ;;  %6261 = vmatpush1.bf16.xpose.msra.mxu1 %v13876_v16  ;;  %v1309_v16 = vld [vmem:[%s15991_s30 + $0x948] sm:$0x11]  ;;  %v14076_v17 = vcombine.low %v1116_v60, %v1308_v61  ;;  %v2766_v61 = vcombine.high %v2762_v49, %v2762_v49 }
 0x10e   : > { %10101 = vmatpush1.bf16.xpose.msra.mxu0 %v14068_v20  ;;  %6292 = vmatprep.mubr.bf16.mxu1 %v1530_v21  ;;  %v13887_v20 = vcombine.high %v1021_v10, %v1213_v12  ;;  %v14079_v21 = vcombine.high %v1117_v15, %v1309_v16 }
 0x10f   : > { %10132 = vmatprep.mubr.bf16.mxu0 %v2706_v22  ;;  %6300 = vmatprep.subr.bf16.mxu1 %v13879_v23  ;;  %v1565_v22 = vrot.slane %v1549_v5, %v15997_v11  ;;  %v1022_v23 = vld [vmem:[%s15991_s30 + $0x50] sm:$0xff] }
 0x110   : > { %10140 = vmatprep.subr.bf16.mxu0 %v14071_v24  ;;  %v1214_v24 = vld [vmem:[%s15991_s30 + $0x650] sm:$0x11] }
 0x111   : > { %v1587_v40 = vcombine.high %v1565_v22, %v1565_v22 }
 0x118   : > { %6293 = vmatmul.mubr.bf16.vlgmr.msra.gmra.mrb[0].mxu1 %v1516_v25  ;;  %v13886_v25 = vcombine.low %v1021_v10, %v1213_v12  ;;  %v2764_v10 = vcombine.high %v2748_v56, %v2748_v56  ;;  %v1121_v12 = vld [vmem:[%s15991_s30 + $0x368] sm:$0xff] }
 0x119   : > { %10133 = vmatmul.mubr.bf16.vlgmr.msra.gmra.mrb[0].mxu0 %v2692_v29  ;;  %6301 = vmatpush1.bf16.xpose.msra.mxu1 %v13878_v28  ;;  %v1310_v28 = vld [vmem:[%s15991_s30 + $0x950] sm:$0x11]  ;;  %v14078_v29 = vcombine.low %v1117_v15, %v1309_v16 }
 0x11a   : > { %10141 = vmatpush1.bf16.xpose.msra.mxu0 %v14070_v32  ;;  %6332 = vmatprep.mubr.bf16.mxu1 %v1540_v33  ;;  %v2765_v32 = vcombine.high %v2755_v19, %v2755_v19  ;;  %v13889_v33 = vcombine.high %v1022_v23, %v1214_v24 }
 0x11b   : > { %10172 = vmatprep.mubr.bf16.mxu0 %v2716_v35  ;;  %6340 = vmatprep.subr.bf16.mxu1 %v13881_v36  ;;  %v14081_v35 = vcombine.high %v1118_v27, %v1310_v28  ;;  %v1556_v36 = vrot.slane %v1542_v31, %v15997_v11 }
 0x11c   : > { %10180 = vmatprep.subr.bf16.mxu0 %v14073_v38 }
 0x11d   : > { %v1558_v38 = vcombine.high %v1556_v36, %v1556_v36 }
 0x11f   : > { %v1586_v48 = vrot.slane %v1558_v38, %v15997_v11  ;;  %v1027_v38 = vld [vmem:[%s15991_s30 + $0x78] sm:$0xff] }
 0x121   : > { %v1590_v60 = vcombine.high %v1586_v48, %v1586_v48 }
 0x124   : > { %6333 = vmatmul.mubr.bf16.vlgmr.msra.gmra.mrb[0].mxu1 %v1538_v43  ;;  %v13888_v43 = vcombine.low %v1022_v23, %v1214_v24  ;;  %v1122_v24 = vld [vmem:[%s15991_s30 + $0x370] sm:$0xff] }
 0x125   : > { %10173 = vmatmul.mubr.bf16.vlgmr.msra.gmra.mrb[0].mxu0 %v2714_v47  ;;  %6341 = vmatpush1.bf16.xpose.msra.mxu1 %v13880_v46  ;;  %v1311_v46 = vld [vmem:[%s15991_s30 + $0x958] sm:$0x11]  ;;  %v14080_v47 = vcombine.low %v1118_v27, %v1310_v28 }
 0x126   : > { %10181 = vmatpush1.bf16.xpose.msra.mxu0 %v14072_v50  ;;  %6372 = vmatprep.mubr.bf16.mxu1 %v1537_v51  ;;  %v13891_v50 = vcombine.high %v1023_v41, %v1215_v42  ;;  %v14083_v51 = vcombine.high %v1119_v45, %v1311_v46 }
 0x127   : > { %10212 = vmatprep.mubr.bf16.mxu0 %v2713_v52  ;;  %6380 = vmatprep.subr.bf16.mxu1 %v13883_v53  ;;  %v1572_v52 = vrot.slane %v1556_v36, %v15997_v11  ;;  %v1024_v53 = vld [vmem:[%s15991_s30 + $0x60] sm:$0xff] }
 0x128   : > { %10220 = vmatprep.subr.bf16.mxu0 %v14075_v54  ;;  %v1216_v54 = vld [vmem:[%s15991_s30 + $0x660] sm:$0x11] }
 0x129   : > { %v1588_v6 = vcombine.high %v1572_v52, %v1572_v52 }
 0x130   : > { %6373 = vmatmul.mubr.bf16.vlgmr.msra.gmra.mrb[0].mxu1 %v1523_v55  ;;  %v13890_v55 = vcombine.low %v1023_v41, %v1215_v42  ;;  %v1123_v42 = vld [vmem:[%s15991_s30 + $0x378] sm:$0xff] }
 0x131   : > { %10213 = vmatmul.mubr.bf16.vlgmr.msra.gmra.mrb[0].mxu0 %v2699_v59  ;;  %6381 = vmatpush1.bf16.xpose.msra.mxu1 %v13882_v58  ;;  %v1312_v58 = vld [vmem:[%s15991_s30 + $0x960] sm:$0x11]  ;;  %v14082_v59 = vcombine.low %v1119_v45, %v1311_v46 }
 0x132   : > { %10221 = vmatpush1.bf16.xpose.msra.mxu0 %v14074_v62  ;;  %6412 = vmatprep.mubr.bf16.mxu1 %v1541_v63  ;;  %v13893_v62 = vcombine.high %v1024_v53, %v1216_v54  ;;  %v967_v63 = vld [vmem:[%s16004_s6 + $0x18] sm:$0xff] }
 0x133   : > { %10252 = vmatprep.mubr.bf16.mxu0 %v2717_v0  ;;  %6420 = vmatprep.subr.bf16.mxu1 %v13885_v1  ;;  %v14085_v0 = vcombine.high %v1120_v57, %v1312_v58  ;;  %v991_v1 = vld [vmem:[%s16004_s6 + $0xd8] sm:$0xff]  ;;  %v1598_v2 = vrot.slane %v967_v63, %v15997_v11  ;;  %v1591_v28 = vcombine.high %v967_v63, %v967_v63 }
 0x134   : > { %10260 = vmatprep.subr.bf16.mxu0 %v14077_v3  ;;  %v2774_v3 = vrot.slane %v991_v1, %v15997_v11  ;;  %v2767_v31 = vcombine.high %v991_v1, %v991_v1 }
 0x135   : > { %v1606_v4 = vcombine.high %v1598_v2, %v1598_v2 }
 0x136   : > { %v2782_v5 = vcombine.high %v2774_v3, %v2774_v3  ;;  %v2790_v23 = vrot.slane %v2774_v3, %v15997_v11  ;;  %v2781_v34 = vrot.slane %v2767_v31, %v15997_v11 }
 0x137   : > { %v1628_v15 = vrot.slane %v1606_v4, %v15997_v11  ;;  %v1029_v4 = vld [vmem:[%s15991_s30 + $0x88] sm:$0xff] }
 0x138   : > { %v2804_v16 = vrot.slane %v2782_v5, %v15997_v11  ;;  %v2783_v36 = vcombine.high %v2781_v34, %v2781_v34  ;;  %v2812_v41 = vcombine.high %v2790_v23, %v2790_v23  ;;  %v1221_v5 = vld [vmem:[%s15991_s30 + $0x688] sm:$0x11] }
 0x139   : > { %v1638_v27 = vcombine.high %v1628_v15, %v1628_v15 }
 0x13a   : > { %v2811_v46 = vrot.slane %v2783_v36, %v15997_v11  ;;  %v1223_v36 = vld [vmem:[%s15991_s30 + $0x698] sm:$0x11] }
 0x13c   : > { %6413 = vmatmul.mubr.bf16.vlgmr.msra.gmra.mrb[0].mxu1 %v1539_v9  ;;  %v13892_v9 = vcombine.low %v1024_v53, %v1216_v54  ;;  %v2797_v53 = vrot.slane %v2781_v34, %v15997_v11  ;;  %v1124_v54 = vld [vmem:[%s15991_s30 + $0x380] sm:$0xff] }
 0x13d   : > { %10253 = vmatmul.mubr.bf16.vlgmr.msra.gmra.mrb[0].mxu0 %v2715_v14  ;;  %6421 = vmatpush1.bf16.xpose.msra.mxu1 %v13884_v13  ;;  %v1313_v13 = vld [vmem:[%s15991_s30 + $0x968] sm:$0x11]  ;;  %v14084_v14 = vcombine.low %v1120_v57, %v1312_v58  ;;  %v2815_v58 = vcombine.high %v2811_v46, %v2811_v46 }
 0x13e   : > { %10261 = vmatpush1.bf16.xpose.msra.mxu0 %v14076_v17  ;;  %6452 = vmatprep.mubr.bf16.mxu1 %v1579_v18  ;;  %v13895_v17 = vcombine.high %v1025_v7, %v1217_v8  ;;  %v14087_v18 = vcombine.high %v1121_v12, %v1313_v13 }
 0x13f   : > { %10292 = vmatprep.mubr.bf16.mxu0 %v2755_v19  ;;  %6460 = vmatprep.subr.bf16.mxu1 %v13887_v20  ;;  %v1614_v19 = vrot.slane %v1598_v2, %v15997_v11  ;;  %v1026_v20 = vld [vmem:[%s15991_s30 + $0x70] sm:$0xff] }
 0x140   : > { %10300 = vmatprep.subr.bf16.mxu0 %v14079_v21  ;;  %v1218_v21 = vld [vmem:[%s15991_s30 + $0x670] sm:$0x11] }
 0x141   : > { %v1636_v37 = vcombine.high %v1614_v19, %v1614_v19 }
 0x148   : > { %6453 = vmatmul.mubr.bf16.vlgmr.msra.gmra.mrb[0].mxu1 %v1565_v22  ;;  %v13894_v22 = vcombine.low %v1025_v7, %v1217_v8  ;;  %v2813_v7 = vcombine.high %v2797_v53, %v2797_v53  ;;  %v1125_v8 = vld [vmem:[%s15991_s30 + $0x388] sm:$0xff] }
 0x149   : > { %10293 = vmatmul.mubr.bf16.vlgmr.msra.gmra.mrb[0].mxu0 %v2741_v26  ;;  %6461 = vmatpush1.bf16.xpose.msra.mxu1 %v13886_v25  ;;  %v1314_v25 = vld [vmem:[%s15991_s30 + $0x970] sm:$0x11]  ;;  %v14086_v26 = vcombine.low %v1121_v12, %v1313_v13 }
 0x14a   : > { %10301 = vmatpush1.bf16.xpose.msra.mxu0 %v14078_v29  ;;  %6492 = vmatprep.mubr.bf16.mxu1 %v1589_v30  ;;  %v2814_v29 = vcombine.high %v2804_v16, %v2804_v16  ;;  %v13897_v30 = vcombine.high %v1026_v20, %v1218_v21 }
 0x14b   : > { %10332 = vmatprep.mubr.bf16.mxu0 %v2765_v32  ;;  %6500 = vmatprep.subr.bf16.mxu1 %v13889_v33  ;;  %v14089_v32 = vcombine.high %v1122_v24, %v1314_v25  ;;  %v1605_v33 = vrot.slane %v1591_v28, %v15997_v11 }
 0x14c   : > { %10340 = vmatprep.subr.bf16.mxu0 %v14081_v35 }
 0x14d   : > { %v1607_v35 = vcombine.high %v1605_v33, %v1605_v33 }
 0x14f   : > { %v1635_v45 = vrot.slane %v1607_v35, %v15997_v11  ;;  %v1031_v35 = vld [vmem:[%s15991_s30 + $0x98] sm:$0xff] }
 0x151   : > { %v1639_v57 = vcombine.high %v1635_v45, %v1635_v45 }
 0x154   : > { %6493 = vmatmul.mubr.bf16.vlgmr.msra.gmra.mrb[0].mxu1 %v1587_v40  ;;  %v13896_v40 = vcombine.low %v1026_v20, %v1218_v21  ;;  %v1126_v21 = vld [vmem:[%s15991_s30 + $0x390] sm:$0xff] }
 0x155   : > { %10333 = vmatmul.mubr.bf16.vlgmr.msra.gmra.mrb[0].mxu0 %v2763_v44  ;;  %6501 = vmatpush1.bf16.xpose.msra.mxu1 %v13888_v43  ;;  %v1315_v43 = vld [vmem:[%s15991_s30 + $0x978] sm:$0x11]  ;;  %v14088_v44 = vcombine.low %v1122_v24, %v1314_v25 }
 0x156   : > { %10341 = vmatpush1.bf16.xpose.msra.mxu0 %v14080_v47  ;;  %6532 = vmatprep.mubr.bf16.mxu1 %v1586_v48  ;;  %v13899_v47 = vcombine.high %v1027_v38, %v1219_v39  ;;  %v14091_v48 = vcombine.high %v1123_v42, %v1315_v43 }
 0x157   : > { %10372 = vmatprep.mubr.bf16.mxu0 %v2762_v49  ;;  %6540 = vmatprep.subr.bf16.mxu1 %v13891_v50  ;;  %v1621_v49 = vrot.slane %v1605_v33, %v15997_v11  ;;  %v1028_v50 = vld [vmem:[%s15991_s30 + $0x80] sm:$0xff] }
 0x158   : > { %10380 = vmatprep.subr.bf16.mxu0 %v14083_v51  ;;  %v1220_v51 = vld [vmem:[%s15991_s30 + $0x680] sm:$0x11] }
 0x159   : > { %v1637_v3 = vcombine.high %v1621_v49, %v1621_v49 }
 0x160   : > { %6533 = vmatmul.mubr.bf16.vlgmr.msra.gmra.mrb[0].mxu1 %v1572_v52  ;;  %v13898_v52 = vcombine.low %v1027_v38, %v1219_v39  ;;  %v1127_v39 = vld [vmem:[%s15991_s30 + $0x398] sm:$0xff] }
 0x161   : > { %10373 = vmatmul.mubr.bf16.vlgmr.msra.gmra.mrb[0].mxu0 %v2748_v56  ;;  %6541 = vmatpush1.bf16.xpose.msra.mxu1 %v13890_v55  ;;  %v1316_v55 = vld [vmem:[%s15991_s30 + $0x980] sm:$0x11]  ;;  %v14090_v56 = vcombine.low %v1123_v42, %v1315_v43 }
 0x162   : > { %10381 = vmatpush1.bf16.xpose.msra.mxu0 %v14082_v59  ;;  %6572 = vmatprep.mubr.bf16.mxu1 %v1590_v60  ;;  %v13901_v59 = vcombine.high %v1028_v50, %v1220_v51  ;;  %v968_v60 = vld [vmem:[%s16004_s6 + $0x20] sm:$0xff] }
 0x163   : > { %10412 = vmatprep.mubr.bf16.mxu0 %v2766_v61  ;;  %6580 = vmatprep.subr.bf16.mxu1 %v13893_v62  ;;  %v14093_v61 = vcombine.high %v1124_v54, %v1316_v55  ;;  %v992_v62 = vld [vmem:[%s16004_s6 + $0xe0] sm:$0xff]  ;;  %v1647_v63 = vrot.slane %v968_v60, %v15997_v11  ;;  %v1640_v25 = vcombine.high %v968_v60, %v968_v60 }
 0x164   : > { %10420 = vmatprep.subr.bf16.mxu0 %v14085_v0  ;;  %v2823_v0 = vrot.slane %v992_v62, %v15997_v11  ;;  %v2816_v28 = vcombine.high %v992_v62, %v992_v62 }
 0x165   : > { %v1655_v1 = vcombine.high %v1647_v63, %v1647_v63 }
 0x166   : > { %v2831_v2 = vcombine.high %v2823_v0, %v2823_v0  ;;  %v2839_v20 = vrot.slane %v2823_v0, %v15997_v11  ;;  %v2830_v31 = vrot.slane %v2816_v28, %v15997_v11 }
 0x167   : > { %v1677_v12 = vrot.slane %v1655_v1, %v15997_v11  ;;  %v1033_v1 = vld [vmem:[%s15991_s30 + $0xa8] sm:$0xff] }
 0x168   : > { %v2853_v13 = vrot.slane %v2831_v2, %v15997_v11  ;;  %v2832_v33 = vcombine.high %v2830_v31, %v2830_v31  ;;  %v2861_v38 = vcombine.high %v2839_v20, %v2839_v20  ;;  %v1225_v2 = vld [vmem:[%s15991_s30 + $0x6a8] sm:$0x11] }
 0x169   : > { %v1687_v24 = vcombine.high %v1677_v12, %v1677_v12 }
 0x16a   : > { %v2860_v43 = vrot.slane %v2832_v33, %v15997_v11  ;;  %v1227_v33 = vld [vmem:[%s15991_s30 + $0x6b8] sm:$0x11] }
 0x16c   : > { %6573 = vmatmul.mubr.bf16.vlgmr.msra.gmra.mrb[0].mxu1 %v1588_v6  ;;  %v13900_v6 = vcombine.low %v1028_v50, %v1220_v51  ;;  %v2846_v50 = vrot.slane %v2830_v31, %v15997_v11  ;;  %v1128_v51 = vld [vmem:[%s15991_s30 + $0x3a0] sm:$0xff] }
 0x16d   : > { %10413 = vmatmul.mubr.bf16.vlgmr.msra.gmra.mrb[0].mxu0 %v2764_v10  ;;  %6581 = vmatpush1.bf16.xpose.msra.mxu1 %v13892_v9  ;;  %v1317_v9 = vld [vmem:[%s15991_s30 + $0x988] sm:$0x11]  ;;  %v14092_v10 = vcombine.low %v1124_v54, %v1316_v55  ;;  %v2864_v55 = vcombine.high %v2860_v43, %v2860_v43 }
 0x16e   : > { %10421 = vmatpush1.bf16.xpose.msra.mxu0 %v14084_v14  ;;  %6612 = vmatprep.mubr.bf16.mxu1 %v1628_v15  ;;  %v13903_v14 = vcombine.high %v1029_v4, %v1221_v5  ;;  %v14095_v15 = vcombine.high %v1125_v8, %v1317_v9 }
 0x16f   : > { %10452 = vmatprep.mubr.bf16.mxu0 %v2804_v16  ;;  %6620 = vmatprep.subr.bf16.mxu1 %v13895_v17  ;;  %v1663_v16 = vrot.slane %v1647_v63, %v15997_v11  ;;  %v1030_v17 = vld [vmem:[%s15991_s30 + $0x90] sm:$0xff] }
 0x170   : > { %10460 = vmatprep.subr.bf16.mxu0 %v14087_v18  ;;  %v1222_v18 = vld [vmem:[%s15991_s30 + $0x690] sm:$0x11] }
 0x171   : > { %v1685_v34 = vcombine.high %v1663_v16, %v1663_v16 }
 0x178   : > { %6613 = vmatmul.mubr.bf16.vlgmr.msra.gmra.mrb[0].mxu1 %v1614_v19  ;;  %v13902_v19 = vcombine.low %v1029_v4, %v1221_v5  ;;  %v2862_v4 = vcombine.high %v2846_v50, %v2846_v50  ;;  %v1129_v5 = vld [vmem:[%s15991_s30 + $0x3a8] sm:$0xff] }
 0x179   : > { %10453 = vmatmul.mubr.bf16.vlgmr.msra.gmra.mrb[0].mxu0 %v2790_v23  ;;  %6621 = vmatpush1.bf16.xpose.msra.mxu1 %v13894_v22  ;;  %v1318_v22 = vld [vmem:[%s15991_s30 + $0x990] sm:$0x11]  ;;  %v14094_v23 = vcombine.low %v1125_v8, %v1317_v9 }
 0x17a   : > { %10461 = vmatpush1.bf16.xpose.msra.mxu0 %v14086_v26  ;;  %6652 = vmatprep.mubr.bf16.mxu1 %v1638_v27  ;;  %v2863_v26 = vcombine.high %v2853_v13, %v2853_v13  ;;  %v13905_v27 = vcombine.high %v1030_v17, %v1222_v18 }
 0x17b   : > { %10492 = vmatprep.mubr.bf16.mxu0 %v2814_v29  ;;  %6660 = vmatprep.subr.bf16.mxu1 %v13897_v30  ;;  %v14097_v29 = vcombine.high %v1126_v21, %v1318_v22  ;;  %v1654_v30 = vrot.slane %v1640_v25, %v15997_v11 }
 0x17c   : > { %10500 = vmatprep.subr.bf16.mxu0 %v14089_v32 }
 0x17d   : > { %v1656_v32 = vcombine.high %v1654_v30, %v1654_v30 }
 0x17f   : > { %v1684_v42 = vrot.slane %v1656_v32, %v15997_v11  ;;  %v1035_v32 = vld [vmem:[%s15991_s30 + $0xb8] sm:$0xff] }
 0x181   : > { %v1688_v54 = vcombine.high %v1684_v42, %v1684_v42 }
 0x184   : > { %6653 = vmatmul.mubr.bf16.vlgmr.msra.gmra.mrb[0].mxu1 %v1636_v37  ;;  %v13904_v37 = vcombine.low %v1030_v17, %v1222_v18  ;;  %v1130_v18 = vld [vmem:[%s15991_s30 + $0x3b0] sm:$0xff] }
 0x185   : > { %10493 = vmatmul.mubr.bf16.vlgmr.msra.gmra.mrb[0].mxu0 %v2812_v41  ;;  %6661 = vmatpush1.bf16.xpose.msra.mxu1 %v13896_v40  ;;  %v1319_v40 = vld [vmem:[%s15991_s30 + $0x998] sm:$0x11]  ;;  %v14096_v41 = vcombine.low %v1126_v21, %v1318_v22 }
 0x186   : > { %10501 = vmatpush1.bf16.xpose.msra.mxu0 %v14088_v44  ;;  %6692 = vmatprep.mubr.bf16.mxu1 %v1635_v45  ;;  %v13907_v44 = vcombine.high %v1031_v35, %v1223_v36  ;;  %v14099_v45 = vcombine.high %v1127_v39, %v1319_v40 }
 0x187   : > { %10532 = vmatprep.mubr.bf16.mxu0 %v2811_v46  ;;  %6700 = vmatprep.subr.bf16.mxu1 %v13899_v47  ;;  %v1670_v46 = vrot.slane %v1654_v30, %v15997_v11  ;;  %v1032_v47 = vld [vmem:[%s15991_s30 + $0xa0] sm:$0xff] }
 0x188   : > { %10540 = vmatprep.subr.bf16.mxu0 %v14091_v48  ;;  %v1224_v48 = vld [vmem:[%s15991_s30 + $0x6a0] sm:$0x11] }
 0x189   : > { %v1686_v0 = vcombine.high %v1670_v46, %v1670_v46 }
 0x190   : > { %6693 = vmatmul.mubr.bf16.vlgmr.msra.gmra.mrb[0].mxu1 %v1621_v49  ;;  %v13906_v49 = vcombine.low %v1031_v35, %v1223_v36  ;;  %v1131_v36 = vld [vmem:[%s15991_s30 + $0x3b8] sm:$0xff] }
 0x191   : > { %10533 = vmatmul.mubr.bf16.vlgmr.msra.gmra.mrb[0].mxu0 %v2797_v53  ;;  %6701 = vmatpush1.bf16.xpose.msra.mxu1 %v13898_v52  ;;  %v1320_v52 = vld [vmem:[%s15991_s30 + $0x9a0] sm:$0x11]  ;;  %v14098_v53 = vcombine.low %v1127_v39, %v1319_v40 }
 0x192   : > { %10541 = vmatpush1.bf16.xpose.msra.mxu0 %v14090_v56  ;;  %6732 = vmatprep.mubr.bf16.mxu1 %v1639_v57  ;;  %v13909_v56 = vcombine.high %v1032_v47, %v1224_v48  ;;  %v969_v57 = vld [vmem:[%s16004_s6 + $0x28] sm:$0xff] }
 0x193   : > { %10572 = vmatprep.mubr.bf16.mxu0 %v2815_v58  ;;  %6740 = vmatprep.subr.bf16.mxu1 %v13901_v59  ;;  %v14101_v58 = vcombine.high %v1128_v51, %v1320_v52  ;;  %v993_v59 = vld [vmem:[%s16004_s6 + $0xe8] sm:$0xff]  ;;  %v1696_v60 = vrot.slane %v969_v57, %v15997_v11  ;;  %v1689_v22 = vcombine.high %v969_v57, %v969_v57 }
 0x194   : > { %10580 = vmatprep.subr.bf16.mxu0 %v14093_v61  ;;  %v2872_v61 = vrot.slane %v993_v59, %v15997_v11  ;;  %v2865_v25 = vcombine.high %v993_v59, %v993_v59 }
 0x195   : > { %v1704_v62 = vcombine.high %v1696_v60, %v1696_v60 }
 0x196   : > { %v2880_v63 = vcombine.high %v2872_v61, %v2872_v61  ;;  %v2888_v17 = vrot.slane %v2872_v61, %v15997_v11  ;;  %v2879_v28 = vrot.slane %v2865_v25, %v15997_v11 }
 0x197   : > { %v1726_v8 = vrot.slane %v1704_v62, %v15997_v11  ;;  %v1037_v62 = vld [vmem:[%s15991_s30 + $0xc8] sm:$0xff] }
 0x198   : > { %v2902_v9 = vrot.slane %v2880_v63, %v15997_v11  ;;  %v2881_v30 = vcombine.high %v2879_v28, %v2879_v28  ;;  %v2910_v35 = vcombine.high %v2888_v17, %v2888_v17  ;;  %v1229_v63 = vld [vmem:[%s15991_s30 + $0x6c8] sm:$0x11] }
 0x199   : > { %v1736_v21 = vcombine.high %v1726_v8, %v1726_v8 }
 0x19a   : > { %v2909_v40 = vrot.slane %v2881_v30, %v15997_v11  ;;  %v1231_v30 = vld [vmem:[%s15991_s30 + $0x6d8] sm:$0x11] }
 0x19c   : > { %6733 = vmatmul.mubr.bf16.vlgmr.msra.gmra.mrb[0].mxu1 %v1637_v3  ;;  %v13908_v3 = vcombine.low %v1032_v47, %v1224_v48  ;;  %v2895_v47 = vrot.slane %v2879_v28, %v15997_v11  ;;  %v1132_v48 = vld [vmem:[%s15991_s30 + $0x3c0] sm:$0xff] }
 0x19d   : > { %10573 = vmatmul.mubr.bf16.vlgmr.msra.gmra.mrb[0].mxu0 %v2813_v7  ;;  %6741 = vmatpush1.bf16.xpose.msra.mxu1 %v13900_v6  ;;  %v1321_v6 = vld [vmem:[%s15991_s30 + $0x9a8] sm:$0x11]  ;;  %v14100_v7 = vcombine.low %v1128_v51, %v1320_v52  ;;  %v2913_v52 = vcombine.high %v2909_v40, %v2909_v40 }
 0x19e   : > { %10581 = vmatpush1.bf16.xpose.msra.mxu0 %v14092_v10  ;;  %6772 = vmatprep.mubr.bf16.mxu1 %v1677_v12  ;;  %v13911_v10 = vcombine.high %v1033_v1, %v1225_v2  ;;  %v14103_v12 = vcombine.high %v1129_v5, %v1321_v6 }
 0x19f   : > { %10612 = vmatprep.mubr.bf16.mxu0 %v2853_v13  ;;  %6780 = vmatprep.subr.bf16.mxu1 %v13903_v14  ;;  %v1712_v13 = vrot.slane %v1696_v60, %v15997_v11  ;;  %v1034_v14 = vld [vmem:[%s15991_s30 + $0xb0] sm:$0xff] }
 0x1a0   : > { %10620 = vmatprep.subr.bf16.mxu0 %v14095_v15  ;;  %v1226_v15 = vld [vmem:[%s15991_s30 + $0x6b0] sm:$0x11] }
 0x1a1   : > { %v1734_v31 = vcombine.high %v1712_v13, %v1712_v13 }
 0x1a8   : > { %6773 = vmatmul.mubr.bf16.vlgmr.msra.gmra.mrb[0].mxu1 %v1663_v16  ;;  %v13910_v16 = vcombine.low %v1033_v1, %v1225_v2  ;;  %v2911_v1 = vcombine.high %v2895_v47, %v2895_v47  ;;  %v1133_v2 = vld [vmem:[%s15991_s30 + $0x3c8] sm:$0xff] }
 0x1a9   : > { %10613 = vmatmul.mubr.bf16.vlgmr.msra.gmra.mrb[0].mxu0 %v2839_v20  ;;  %6781 = vmatpush1.bf16.xpose.msra.mxu1 %v13902_v19  ;;  %v1322_v19 = vld [vmem:[%s15991_s30 + $0x9b0] sm:$0x11]  ;;  %v14102_v20 = vcombine.low %v1129_v5, %v1321_v6 }
 0x1aa   : > { %10621 = vmatpush1.bf16.xpose.msra.mxu0 %v14094_v23  ;;  %6812 = vmatprep.mubr.bf16.mxu1 %v1687_v24  ;;  %v2912_v23 = vcombine.high %v2902_v9, %v2902_v9  ;;  %v13913_v24 = vcombine.high %v1034_v14, %v1226_v15 }
 0x1ab   : > { %10652 = vmatprep.mubr.bf16.mxu0 %v2863_v26  ;;  %6820 = vmatprep.subr.bf16.mxu1 %v13905_v27  ;;  %v14105_v26 = vcombine.high %v1130_v18, %v1322_v19  ;;  %v1703_v27 = vrot.slane %v1689_v22, %v15997_v11 }
 0x1ac   : > { %10660 = vmatprep.subr.bf16.mxu0 %v14097_v29 }
 0x1ad   : > { %v1705_v29 = vcombine.high %v1703_v27, %v1703_v27 }
 0x1af   : > { %v1733_v39 = vrot.slane %v1705_v29, %v15997_v11  ;;  %v1039_v29 = vld [vmem:[%s15991_s30 + $0xd8] sm:$0xff] }
 0x1b1   : > { %v1737_v51 = vcombine.high %v1733_v39, %v1733_v39 }
 0x1b4   : > { %6813 = vmatmul.mubr.bf16.vlgmr.msra.gmra.mrb[0].mxu1 %v1685_v34  ;;  %v13912_v34 = vcombine.low %v1034_v14, %v1226_v15  ;;  %v1134_v15 = vld [vmem:[%s15991_s30 + $0x3d0] sm:$0xff] }
 0x1b5   : > { %10653 = vmatmul.mubr.bf16.vlgmr.msra.gmra.mrb[0].mxu0 %v2861_v38  ;;  %6821 = vmatpush1.bf16.xpose.msra.mxu1 %v13904_v37  ;;  %v1323_v37 = vld [vmem:[%s15991_s30 + $0x9b8] sm:$0x11]  ;;  %v14104_v38 = vcombine.low %v1130_v18, %v1322_v19 }
 0x1b6   : > { %10661 = vmatpush1.bf16.xpose.msra.mxu0 %v14096_v41  ;;  %6852 = vmatprep.mubr.bf16.mxu1 %v1684_v42  ;;  %v13915_v41 = vcombine.high %v1035_v32, %v1227_v33  ;;  %v14107_v42 = vcombine.high %v1131_v36, %v1323_v37 }
 0x1b7   : > { %10692 = vmatprep.mubr.bf16.mxu0 %v2860_v43  ;;  %6860 = vmatprep.subr.bf16.mxu1 %v13907_v44  ;;  %v1719_v43 = vrot.slane %v1703_v27, %v15997_v11  ;;  %v1036_v44 = vld [vmem:[%s15991_s30 + $0xc0] sm:$0xff] }
 0x1b8   : > { %10700 = vmatprep.subr.bf16.mxu0 %v14099_v45  ;;  %v1228_v45 = vld [vmem:[%s15991_s30 + $0x6c0] sm:$0x11] }
 0x1b9   : > { %v1735_v61 = vcombine.high %v1719_v43, %v1719_v43 }
 0x1c0   : > { %6853 = vmatmul.mubr.bf16.vlgmr.msra.gmra.mrb[0].mxu1 %v1670_v46  ;;  %v13914_v46 = vcombine.low %v1035_v32, %v1227_v33  ;;  %v1135_v33 = vld [vmem:[%s15991_s30 + $0x3d8] sm:$0xff] }
 0x1c1   : > { %10693 = vmatmul.mubr.bf16.vlgmr.msra.gmra.mrb[0].mxu0 %v2846_v50  ;;  %6861 = vmatpush1.bf16.xpose.msra.mxu1 %v13906_v49  ;;  %v1324_v49 = vld [vmem:[%s15991_s30 + $0x9c0] sm:$0x11]  ;;  %v14106_v50 = vcombine.low %v1131_v36, %v1323_v37 }
 0x1c2   : > { %10701 = vmatpush1.bf16.xpose.msra.mxu0 %v14098_v53  ;;  %6892 = vmatprep.mubr.bf16.mxu1 %v1688_v54  ;;  %v13917_v53 = vcombine.high %v1036_v44, %v1228_v45  ;;  %v970_v54 = vld [vmem:[%s16004_s6 + $0x30] sm:$0xff] }
 0x1c3   : > { %10732 = vmatprep.mubr.bf16.mxu0 %v2864_v55  ;;  %6900 = vmatprep.subr.bf16.mxu1 %v13909_v56  ;;  %v14109_v55 = vcombine.high %v1132_v48, %v1324_v49  ;;  %v994_v56 = vld [vmem:[%s16004_s6 + $0xf0] sm:$0xff]  ;;  %v1745_v57 = vrot.slane %v970_v54, %v15997_v11  ;;  %v1738_v19 = vcombine.high %v970_v54, %v970_v54 }
 0x1c4   : > { %10740 = vmatprep.subr.bf16.mxu0 %v14101_v58  ;;  %v2921_v58 = vrot.slane %v994_v56, %v15997_v11  ;;  %v2914_v22 = vcombine.high %v994_v56, %v994_v56 }
 0x1c5   : > { %v1753_v59 = vcombine.high %v1745_v57, %v1745_v57 }
 0x1c6   : > { %v2929_v60 = vcombine.high %v2921_v58, %v2921_v58  ;;  %v2937_v14 = vrot.slane %v2921_v58, %v15997_v11  ;;  %v2928_v25 = vrot.slane %v2914_v22, %v15997_v11 }
 0x1c7   : > { %v1775_v5 = vrot.slane %v1753_v59, %v15997_v11  ;;  %v1041_v59 = vld [vmem:[%s15991_s30 + $0xe8] sm:$0xff] }
 0x1c8   : > { %v2951_v6 = vrot.slane %v2929_v60, %v15997_v11  ;;  %v2930_v27 = vcombine.high %v2928_v25, %v2928_v25  ;;  %v2959_v32 = vcombine.high %v2937_v14, %v2937_v14  ;;  %v1233_v60 = vld [vmem:[%s15991_s30 + $0x6e8] sm:$0x11] }
 0x1c9   : > { %v1785_v18 = vcombine.high %v1775_v5, %v1775_v5 }
 0x1ca   : > { %v2958_v37 = vrot.slane %v2930_v27, %v15997_v11  ;;  %v1235_v27 = vld [vmem:[%s15991_s30 + $0x6f8] sm:$0x11] }
 0x1cc   : > { %6893 = vmatmul.mubr.bf16.vlgmr.msra.gmra.mrb[0].mxu1 %v1686_v0  ;;  %v13916_v0 = vcombine.low %v1036_v44, %v1228_v45  ;;  %v2944_v44 = vrot.slane %v2928_v25, %v15997_v11  ;;  %v1136_v45 = vld [vmem:[%s15991_s30 + $0x3e0] sm:$0xff] }
 0x1cd   : > { %10733 = vmatmul.mubr.bf16.vlgmr.msra.gmra.mrb[0].mxu0 %v2862_v4  ;;  %6901 = vmatpush1.bf16.xpose.msra.mxu1 %v13908_v3  ;;  %v1325_v3 = vld [vmem:[%s15991_s30 + $0x9c8] sm:$0x11]  ;;  %v14108_v4 = vcombine.low %v1132_v48, %v1324_v49  ;;  %v2962_v49 = vcombine.high %v2958_v37, %v2958_v37 }
 0x1ce   : > { %10741 = vmatpush1.bf16.xpose.msra.mxu0 %v14100_v7  ;;  %6932 = vmatprep.mubr.bf16.mxu1 %v1726_v8  ;;  %v13919_v7 = vcombine.high %v1037_v62, %v1229_v63  ;;  %v14111_v8 = vcombine.high %v1133_v2, %v1325_v3 }
 0x1cf   : > { %10772 = vmatprep.mubr.bf16.mxu0 %v2902_v9  ;;  %6940 = vmatprep.subr.bf16.mxu1 %v13911_v10  ;;  %v1761_v9 = vrot.slane %v1745_v57, %v15997_v11  ;;  %v1038_v10 = vld [vmem:[%s15991_s30 + $0xd0] sm:$0xff] }
 0x1d0   : > { %10780 = vmatprep.subr.bf16.mxu0 %v14103_v12  ;;  %v1230_v12 = vld [vmem:[%s15991_s30 + $0x6d0] sm:$0x11] }
 0x1d1   : > { %v1783_v28 = vcombine.high %v1761_v9, %v1761_v9 }
 0x1d8   : > { %6933 = vmatmul.mubr.bf16.vlgmr.msra.gmra.mrb[0].mxu1 %v1712_v13  ;;  %v13918_v13 = vcombine.low %v1037_v62, %v1229_v63  ;;  %v2960_v62 = vcombine.high %v2944_v44, %v2944_v44  ;;  %v1137_v63 = vld [vmem:[%s15991_s30 + $0x3e8] sm:$0xff] }
 0x1d9   : > { %10773 = vmatmul.mubr.bf16.vlgmr.msra.gmra.mrb[0].mxu0 %v2888_v17  ;;  %6941 = vmatpush1.bf16.xpose.msra.mxu1 %v13910_v16  ;;  %v1326_v16 = vld [vmem:[%s15991_s30 + $0x9d0] sm:$0x11]  ;;  %v14110_v17 = vcombine.low %v1133_v2, %v1325_v3 }
 0x1da   : > { %10781 = vmatpush1.bf16.xpose.msra.mxu0 %v14102_v20  ;;  %6972 = vmatprep.mubr.bf16.mxu1 %v1736_v21  ;;  %v2961_v20 = vcombine.high %v2951_v6, %v2951_v6  ;;  %v13921_v21 = vcombine.high %v1038_v10, %v1230_v12 }
 0x1db   : > { %10812 = vmatprep.mubr.bf16.mxu0 %v2912_v23  ;;  %6980 = vmatprep.subr.bf16.mxu1 %v13913_v24  ;;  %v14113_v23 = vcombine.high %v1134_v15, %v1326_v16  ;;  %v1752_v24 = vrot.slane %v1738_v19, %v15997_v11 }
 0x1dc   : > { %10820 = vmatprep.subr.bf16.mxu0 %v14105_v26 }
 0x1dd   : > { %v1754_v26 = vcombine.high %v1752_v24, %v1752_v24 }
 0x1df   : > { %v1782_v36 = vrot.slane %v1754_v26, %v15997_v11  ;;  %v1043_v26 = vld [vmem:[%s15991_s30 + $0xf8] sm:$0xff] }
 0x1e1   : > { %v1786_v48 = vcombine.high %v1782_v36, %v1782_v36 }
 0x1e4   : > { %6973 = vmatmul.mubr.bf16.vlgmr.msra.gmra.mrb[0].mxu1 %v1734_v31  ;;  %v13920_v31 = vcombine.low %v1038_v10, %v1230_v12  ;;  %v1138_v12 = vld [vmem:[%s15991_s30 + $0x3f0] sm:$0xff] }
 0x1e5   : > { %10813 = vmatmul.mubr.bf16.vlgmr.msra.gmra.mrb[0].mxu0 %v2910_v35  ;;  %6981 = vmatpush1.bf16.xpose.msra.mxu1 %v13912_v34  ;;  %v1327_v34 = vld [vmem:[%s15991_s30 + $0x9d8] sm:$0x11]  ;;  %v14112_v35 = vcombine.low %v1134_v15, %v1326_v16 }
 0x1e6   : > { %10821 = vmatpush1.bf16.xpose.msra.mxu0 %v14104_v38  ;;  %7012 = vmatprep.mubr.bf16.mxu1 %v1733_v39  ;;  %v13923_v38 = vcombine.high %v1039_v29, %v1231_v30  ;;  %v14115_v39 = vcombine.high %v1135_v33, %v1327_v34 }
 0x1e7   : > { %10852 = vmatprep.mubr.bf16.mxu0 %v2909_v40  ;;  %7020 = vmatprep.subr.bf16.mxu1 %v13915_v41  ;;  %v1768_v40 = vrot.slane %v1752_v24, %v15997_v11  ;;  %v1040_v41 = vld [vmem:[%s15991_s30 + $0xe0] sm:$0xff] }
 0x1e8   : > { %10860 = vmatprep.subr.bf16.mxu0 %v14107_v42  ;;  %v1232_v42 = vld [vmem:[%s15991_s30 + $0x6e0] sm:$0x11] }
 0x1e9   : > { %v1784_v58 = vcombine.high %v1768_v40, %v1768_v40 }
 0x1f0   : > { %7013 = vmatmul.mubr.bf16.vlgmr.msra.gmra.mrb[0].mxu1 %v1719_v43  ;;  %v13922_v43 = vcombine.low %v1039_v29, %v1231_v30  ;;  %v1139_v30 = vld [vmem:[%s15991_s30 + $0x3f8] sm:$0xff] }
 0x1f1   : > { %10853 = vmatmul.mubr.bf16.vlgmr.msra.gmra.mrb[0].mxu0 %v2895_v47  ;;  %7021 = vmatpush1.bf16.xpose.msra.mxu1 %v13914_v46  ;;  %v1328_v46 = vld [vmem:[%s15991_s30 + $0x9e0] sm:$0x11]  ;;  %v14114_v47 = vcombine.low %v1135_v33, %v1327_v34 }
 0x1f2   : > { %10861 = vmatpush1.bf16.xpose.msra.mxu0 %v14106_v50  ;;  %7052 = vmatprep.mubr.bf16.mxu1 %v1737_v51  ;;  %v13925_v50 = vcombine.high %v1040_v41, %v1232_v42  ;;  %v971_v51 = vld [vmem:[%s16004_s6 + $0x38] sm:$0xff] }
 0x1f3   : > { %10892 = vmatprep.mubr.bf16.mxu0 %v2913_v52  ;;  %7060 = vmatprep.subr.bf16.mxu1 %v13917_v53  ;;  %v14117_v52 = vcombine.high %v1136_v45, %v1328_v46  ;;  %v995_v53 = vld [vmem:[%s16004_s6 + $0xf8] sm:$0xff]  ;;  %v1794_v54 = vrot.slane %v971_v51, %v15997_v11  ;;  %v1787_v16 = vcombine.high %v971_v51, %v971_v51 }
 0x1f4   : > { %10900 = vmatprep.subr.bf16.mxu0 %v14109_v55  ;;  %v2970_v55 = vrot.slane %v995_v53, %v15997_v11  ;;  %v2963_v19 = vcombine.high %v995_v53, %v995_v53 }
 0x1f5   : > { %v1802_v56 = vcombine.high %v1794_v54, %v1794_v54 }
 0x1f6   : > { %v2978_v57 = vcombine.high %v2970_v55, %v2970_v55  ;;  %v2986_v10 = vrot.slane %v2970_v55, %v15997_v11  ;;  %v2977_v22 = vrot.slane %v2963_v19, %v15997_v11 }
 0x1f7   : > { %v1824_v2 = vrot.slane %v1802_v56, %v15997_v11  ;;  %v1045_v56 = vld [vmem:[%s15991_s30 + $0x108] sm:$0xff] }
 0x1f8   : > { %v3000_v3 = vrot.slane %v2978_v57, %v15997_v11  ;;  %v2979_v24 = vcombine.high %v2977_v22, %v2977_v22  ;;  %v3008_v29 = vcombine.high %v2986_v10, %v2986_v10  ;;  %v1237_v57 = vld [vmem:[%s15991_s30 + $0x708] sm:$0x11] }
 0x1f9   : > { %v1834_v15 = vcombine.high %v1824_v2, %v1824_v2 }
 0x1fa   : > { %v3007_v34 = vrot.slane %v2979_v24, %v15997_v11  ;;  %v1239_v24 = vld [vmem:[%s15991_s30 + $0x718] sm:$0x11] }
 0x1fc   : > { %7053 = vmatmul.mubr.bf16.vlgmr.msra.gmra.mrb[0].mxu1 %v1735_v61  ;;  %v13924_v61 = vcombine.low %v1040_v41, %v1232_v42  ;;  %v2993_v41 = vrot.slane %v2977_v22, %v15997_v11  ;;  %v1140_v42 = vld [vmem:[%s15991_s30 + $0x400] sm:$0xff] }
 0x1fd   : > { %10893 = vmatmul.mubr.bf16.vlgmr.msra.gmra.mrb[0].mxu0 %v2911_v1  ;;  %7061 = vmatpush1.bf16.xpose.msra.mxu1 %v13916_v0  ;;  %v1329_v0 = vld [vmem:[%s15991_s30 + $0x9e8] sm:$0x11]  ;;  %v14116_v1 = vcombine.low %v1136_v45, %v1328_v46  ;;  %v3011_v46 = vcombine.high %v3007_v34, %v3007_v34 }
 0x1fe   : > { %10901 = vmatpush1.bf16.xpose.msra.mxu0 %v14108_v4  ;;  %7092 = vmatprep.mubr.bf16.mxu1 %v1775_v5  ;;  %v13927_v4 = vcombine.high %v1041_v59, %v1233_v60  ;;  %v14119_v5 = vcombine.high %v1137_v63, %v1329_v0 }
 0x1ff   : > { %10932 = vmatprep.mubr.bf16.mxu0 %v2951_v6  ;;  %7100 = vmatprep.subr.bf16.mxu1 %v13919_v7  ;;  %v1810_v6 = vrot.slane %v1794_v54, %v15997_v11  ;;  %v1042_v7 = vld [vmem:[%s15991_s30 + $0xf0] sm:$0xff] }
 0x200   : > { %10940 = vmatprep.subr.bf16.mxu0 %v14111_v8  ;;  %v1234_v8 = vld [vmem:[%s15991_s30 + $0x6f0] sm:$0x11] }
 0x201   : > { %v1832_v25 = vcombine.high %v1810_v6, %v1810_v6 }
 0x208   : > { %7093 = vmatmul.mubr.bf16.vlgmr.msra.gmra.mrb[0].mxu1 %v1761_v9  ;;  %v13926_v9 = vcombine.low %v1041_v59, %v1233_v60  ;;  %v3009_v59 = vcombine.high %v2993_v41, %v2993_v41  ;;  %v1141_v60 = vld [vmem:[%s15991_s30 + $0x408] sm:$0xff] }
 0x209   : > { %10933 = vmatmul.mubr.bf16.vlgmr.msra.gmra.mrb[0].mxu0 %v2937_v14  ;;  %7101 = vmatpush1.bf16.xpose.msra.mxu1 %v13918_v13  ;;  %v1330_v13 = vld [vmem:[%s15991_s30 + $0x9f0] sm:$0x11]  ;;  %v14118_v14 = vcombine.low %v1137_v63, %v1329_v0 }
 0x20a   : > { %10941 = vmatpush1.bf16.xpose.msra.mxu0 %v14110_v17  ;;  %7132 = vmatprep.mubr.bf16.mxu1 %v1785_v18  ;;  %v3010_v17 = vcombine.high %v3000_v3, %v3000_v3  ;;  %v13929_v18 = vcombine.high %v1042_v7, %v1234_v8 }
 0x20b   : > { %10972 = vmatprep.mubr.bf16.mxu0 %v2961_v20  ;;  %7140 = vmatprep.subr.bf16.mxu1 %v13921_v21  ;;  %v14121_v20 = vcombine.high %v1138_v12, %v1330_v13  ;;  %v1801_v21 = vrot.slane %v1787_v16, %v15997_v11 }
 0x20c   : > { %10980 = vmatprep.subr.bf16.mxu0 %v14113_v23 }
 0x20d   : > { %v1803_v23 = vcombine.high %v1801_v21, %v1801_v21 }
 0x20f   : > { %v1831_v33 = vrot.slane %v1803_v23, %v15997_v11  ;;  %v1047_v23 = vld [vmem:[%s15991_s30 + $0x118] sm:$0xff] }
 0x211   : > { %v1835_v45 = vcombine.high %v1831_v33, %v1831_v33 }
 0x214   : > { %7133 = vmatmul.mubr.bf16.vlgmr.msra.gmra.mrb[0].mxu1 %v1783_v28  ;;  %v13928_v28 = vcombine.low %v1042_v7, %v1234_v8  ;;  %v1142_v8 = vld [vmem:[%s15991_s30 + $0x410] sm:$0xff] }
 0x215   : > { %10973 = vmatmul.mubr.bf16.vlgmr.msra.gmra.mrb[0].mxu0 %v2959_v32  ;;  %7141 = vmatpush1.bf16.xpose.msra.mxu1 %v13920_v31  ;;  %v1331_v31 = vld [vmem:[%s15991_s30 + $0x9f8] sm:$0x11]  ;;  %v14120_v32 = vcombine.low %v1138_v12, %v1330_v13 }
 0x216   : > { %10981 = vmatpush1.bf16.xpose.msra.mxu0 %v14112_v35  ;;  %7172 = vmatprep.mubr.bf16.mxu1 %v1782_v36  ;;  %v13931_v35 = vcombine.high %v1043_v26, %v1235_v27  ;;  %v14123_v36 = vcombine.high %v1139_v30, %v1331_v31 }
 0x217   : > { %11012 = vmatprep.mubr.bf16.mxu0 %v2958_v37  ;;  %7180 = vmatprep.subr.bf16.mxu1 %v13923_v38  ;;  %v1817_v37 = vrot.slane %v1801_v21, %v15997_v11  ;;  %v1044_v38 = vld [vmem:[%s15991_s30 + $0x100] sm:$0xff] }
 0x218   : > { %11020 = vmatprep.subr.bf16.mxu0 %v14115_v39  ;;  %v1236_v39 = vld [vmem:[%s15991_s30 + $0x700] sm:$0x11] }
 0x219   : > { %v1833_v55 = vcombine.high %v1817_v37, %v1817_v37 }
 0x220   : > { %7173 = vmatmul.mubr.bf16.vlgmr.msra.gmra.mrb[0].mxu1 %v1768_v40  ;;  %v13930_v40 = vcombine.low %v1043_v26, %v1235_v27  ;;  %v1143_v27 = vld [vmem:[%s15991_s30 + $0x418] sm:$0xff] }
 0x221   : > { %11013 = vmatmul.mubr.bf16.vlgmr.msra.gmra.mrb[0].mxu0 %v2944_v44  ;;  %7181 = vmatpush1.bf16.xpose.msra.mxu1 %v13922_v43  ;;  %v1332_v43 = vld [vmem:[%s15991_s30 + $0xa00] sm:$0x11]  ;;  %v14122_v44 = vcombine.low %v1139_v30, %v1331_v31 }
 0x222   : > { %11021 = vmatpush1.bf16.xpose.msra.mxu0 %v14114_v47  ;;  %7212 = vmatprep.mubr.bf16.mxu1 %v1786_v48  ;;  %v13933_v47 = vcombine.high %v1044_v38, %v1236_v39  ;;  %v972_v48 = vld [vmem:[%s16004_s6 + $0x40] sm:$0xff] }
 0x223   : > { %11052 = vmatprep.mubr.bf16.mxu0 %v2962_v49  ;;  %7220 = vmatprep.subr.bf16.mxu1 %v13925_v50  ;;  %v14125_v49 = vcombine.high %v1140_v42, %v1332_v43  ;;  %v996_v50 = vld [vmem:[%s16004_s6 + $0x100] sm:$0xff]  ;;  %v1843_v51 = vrot.slane %v972_v48, %v15997_v11  ;;  %v1836_v13 = vcombine.high %v972_v48, %v972_v48 }
 0x224   : > { %11060 = vmatprep.subr.bf16.mxu0 %v14117_v52  ;;  %v3019_v52 = vrot.slane %v996_v50, %v15997_v11  ;;  %v3012_v16 = vcombine.high %v996_v50, %v996_v50 }
 0x225   : > { %v1851_v53 = vcombine.high %v1843_v51, %v1843_v51 }
 0x226   : > { %v3027_v54 = vcombine.high %v3019_v52, %v3019_v52  ;;  %v3035_v7 = vrot.slane %v3019_v52, %v15997_v11  ;;  %v3026_v19 = vrot.slane %v3012_v16, %v15997_v11 }
 0x227   : > { %v1873_v63 = vrot.slane %v1851_v53, %v15997_v11  ;;  %v1049_v53 = vld [vmem:[%s15991_s30 + $0x128] sm:$0xff] }
 0x228   : > { %v3049_v0 = vrot.slane %v3027_v54, %v15997_v11  ;;  %v3028_v21 = vcombine.high %v3026_v19, %v3026_v19  ;;  %v3057_v26 = vcombine.high %v3035_v7, %v3035_v7  ;;  %v1241_v54 = vld [vmem:[%s15991_s30 + $0x728] sm:$0x11] }
 0x229   : > { %v1883_v12 = vcombine.high %v1873_v63, %v1873_v63 }
 0x22a   : > { %v3056_v31 = vrot.slane %v3028_v21, %v15997_v11  ;;  %v1243_v21 = vld [vmem:[%s15991_s30 + $0x738] sm:$0x11] }
 0x22c   : > { %7213 = vmatmul.mubr.bf16.vlgmr.msra.gmra.mrb[0].mxu1 %v1784_v58  ;;  %v13932_v58 = vcombine.low %v1044_v38, %v1236_v39  ;;  %v3042_v38 = vrot.slane %v3026_v19, %v15997_v11  ;;  %v1144_v39 = vld [vmem:[%s15991_s30 + $0x420] sm:$0xff] }
 0x22d   : > { %11053 = vmatmul.mubr.bf16.vlgmr.msra.gmra.mrb[0].mxu0 %v2960_v62  ;;  %7221 = vmatpush1.bf16.xpose.msra.mxu1 %v13924_v61  ;;  %v1333_v61 = vld [vmem:[%s15991_s30 + $0xa08] sm:$0x11]  ;;  %v14124_v62 = vcombine.low %v1140_v42, %v1332_v43  ;;  %v3060_v43 = vcombine.high %v3056_v31, %v3056_v31 }
 0x22e   : > { %11061 = vmatpush1.bf16.xpose.msra.mxu0 %v14116_v1  ;;  %7252 = vmatprep.mubr.bf16.mxu1 %v1824_v2  ;;  %v13935_v1 = vcombine.high %v1045_v56, %v1237_v57  ;;  %v14127_v2 = vcombine.high %v1141_v60, %v1333_v61 }
 0x22f   : > { %11092 = vmatprep.mubr.bf16.mxu0 %v3000_v3  ;;  %7260 = vmatprep.subr.bf16.mxu1 %v13927_v4  ;;  %v1859_v3 = vrot.slane %v1843_v51, %v15997_v11  ;;  %v1046_v4 = vld [vmem:[%s15991_s30 + $0x110] sm:$0xff] }
 0x230   : > { %11100 = vmatprep.subr.bf16.mxu0 %v14119_v5  ;;  %v1238_v5 = vld [vmem:[%s15991_s30 + $0x710] sm:$0x11] }
 0x231   : > { %v1881_v22 = vcombine.high %v1859_v3, %v1859_v3 }
 0x238   : > { %7253 = vmatmul.mubr.bf16.vlgmr.msra.gmra.mrb[0].mxu1 %v1810_v6  ;;  %v13934_v6 = vcombine.low %v1045_v56, %v1237_v57  ;;  %v3058_v56 = vcombine.high %v3042_v38, %v3042_v38  ;;  %v1145_v57 = vld [vmem:[%s15991_s30 + $0x428] sm:$0xff] }
 0x239   : > { %11093 = vmatmul.mubr.bf16.vlgmr.msra.gmra.mrb[0].mxu0 %v2986_v10  ;;  %7261 = vmatpush1.bf16.xpose.msra.mxu1 %v13926_v9  ;;  %v1334_v9 = vld [vmem:[%s15991_s30 + $0xa10] sm:$0x11]  ;;  %v14126_v10 = vcombine.low %v1141_v60, %v1333_v61 }
 0x23a   : > { %11101 = vmatpush1.bf16.xpose.msra.mxu0 %v14118_v14  ;;  %7292 = vmatprep.mubr.bf16.mxu1 %v1834_v15  ;;  %v3059_v14 = vcombine.high %v3049_v0, %v3049_v0  ;;  %v13937_v15 = vcombine.high %v1046_v4, %v1238_v5 }
 0x23b   : > { %11132 = vmatprep.mubr.bf16.mxu0 %v3010_v17  ;;  %7300 = vmatprep.subr.bf16.mxu1 %v13929_v18  ;;  %v14129_v17 = vcombine.high %v1142_v8, %v1334_v9  ;;  %v1850_v18 = vrot.slane %v1836_v13, %v15997_v11 }
 0x23c   : > { %11140 = vmatprep.subr.bf16.mxu0 %v14121_v20 }
 0x23d   : > { %v1852_v20 = vcombine.high %v1850_v18, %v1850_v18 }
 0x23f   : > { %v1880_v30 = vrot.slane %v1852_v20, %v15997_v11  ;;  %v1051_v20 = vld [vmem:[%s15991_s30 + $0x138] sm:$0xff] }
 0x241   : > { %v1884_v42 = vcombine.high %v1880_v30, %v1880_v30 }
 0x244   : > { %7293 = vmatmul.mubr.bf16.vlgmr.msra.gmra.mrb[0].mxu1 %v1832_v25  ;;  %v13936_v25 = vcombine.low %v1046_v4, %v1238_v5  ;;  %v1146_v5 = vld [vmem:[%s15991_s30 + $0x430] sm:$0xff] }
 0x245   : > { %11133 = vmatmul.mubr.bf16.vlgmr.msra.gmra.mrb[0].mxu0 %v3008_v29  ;;  %7301 = vmatpush1.bf16.xpose.msra.mxu1 %v13928_v28  ;;  %v1335_v28 = vld [vmem:[%s15991_s30 + $0xa18] sm:$0x11]  ;;  %v14128_v29 = vcombine.low %v1142_v8, %v1334_v9 }
 0x246   : > { %11141 = vmatpush1.bf16.xpose.msra.mxu0 %v14120_v32  ;;  %7332 = vmatprep.mubr.bf16.mxu1 %v1831_v33  ;;  %v13939_v32 = vcombine.high %v1047_v23, %v1239_v24  ;;  %v14131_v33 = vcombine.high %v1143_v27, %v1335_v28 }
 0x247   : > { %11172 = vmatprep.mubr.bf16.mxu0 %v3007_v34  ;;  %7340 = vmatprep.subr.bf16.mxu1 %v13931_v35  ;;  %v1866_v34 = vrot.slane %v1850_v18, %v15997_v11  ;;  %v1048_v35 = vld [vmem:[%s15991_s30 + $0x120] sm:$0xff] }
 0x248   : > { %11180 = vmatprep.subr.bf16.mxu0 %v14123_v36  ;;  %v1240_v36 = vld [vmem:[%s15991_s30 + $0x720] sm:$0x11] }
 0x249   : > { %v1882_v52 = vcombine.high %v1866_v34, %v1866_v34 }
 0x250   : > { %7333 = vmatmul.mubr.bf16.vlgmr.msra.gmra.mrb[0].mxu1 %v1817_v37  ;;  %v13938_v37 = vcombine.low %v1047_v23, %v1239_v24  ;;  %v1147_v24 = vld [vmem:[%s15991_s30 + $0x438] sm:$0xff] }
 0x251   : > { %11173 = vmatmul.mubr.bf16.vlgmr.msra.gmra.mrb[0].mxu0 %v2993_v41  ;;  %7341 = vmatpush1.bf16.xpose.msra.mxu1 %v13930_v40  ;;  %v1336_v40 = vld [vmem:[%s15991_s30 + $0xa20] sm:$0x11]  ;;  %v14130_v41 = vcombine.low %v1143_v27, %v1335_v28 }
 0x252   : > { %11181 = vmatpush1.bf16.xpose.msra.mxu0 %v14122_v44  ;;  %7372 = vmatprep.mubr.bf16.mxu1 %v1835_v45  ;;  %v13941_v44 = vcombine.high %v1048_v35, %v1240_v36  ;;  %v973_v45 = vld [vmem:[%s16004_s6 + $0x48] sm:$0xff] }
 0x253   : > { %11212 = vmatprep.mubr.bf16.mxu0 %v3011_v46  ;;  %7380 = vmatprep.subr.bf16.mxu1 %v13933_v47  ;;  %v14133_v46 = vcombine.high %v1144_v39, %v1336_v40  ;;  %v997_v47 = vld [vmem:[%s16004_s6 + $0x108] sm:$0xff]  ;;  %v1892_v48 = vrot.slane %v973_v45, %v15997_v11  ;;  %v1885_v9 = vcombine.high %v973_v45, %v973_v45 }
 0x254   : > { %11220 = vmatprep.subr.bf16.mxu0 %v14125_v49  ;;  %v3068_v49 = vrot.slane %v997_v47, %v15997_v11  ;;  %v3061_v13 = vcombine.high %v997_v47, %v997_v47 }
 0x255   : > { %v1900_v50 = vcombine.high %v1892_v48, %v1892_v48 }
 0x256   : > { %v3076_v51 = vcombine.high %v3068_v49, %v3068_v49  ;;  %v3084_v4 = vrot.slane %v3068_v49, %v15997_v11  ;;  %v3075_v16 = vrot.slane %v3061_v13, %v15997_v11 }
 0x257   : > { %v1922_v60 = vrot.slane %v1900_v50, %v15997_v11  ;;  %v1053_v50 = vld [vmem:[%s15991_s30 + $0x148] sm:$0xff] }
 0x258   : > { %v3098_v61 = vrot.slane %v3076_v51, %v15997_v11  ;;  %v3077_v18 = vcombine.high %v3075_v16, %v3075_v16  ;;  %v3106_v23 = vcombine.high %v3084_v4, %v3084_v4  ;;  %v1245_v51 = vld [vmem:[%s15991_s30 + $0x748] sm:$0x11] }
 0x259   : > { %v1932_v8 = vcombine.high %v1922_v60, %v1922_v60 }
 0x25a   : > { %v3105_v28 = vrot.slane %v3077_v18, %v15997_v11  ;;  %v1247_v18 = vld [vmem:[%s15991_s30 + $0x758] sm:$0x11] }
 0x25c   : > { %7373 = vmatmul.mubr.bf16.vlgmr.msra.gmra.mrb[0].mxu1 %v1833_v55  ;;  %v13940_v55 = vcombine.low %v1048_v35, %v1240_v36  ;;  %v3091_v35 = vrot.slane %v3075_v16, %v15997_v11  ;;  %v1148_v36 = vld [vmem:[%s15991_s30 + $0x440] sm:$0xff] }
 0x25d   : > { %11213 = vmatmul.mubr.bf16.vlgmr.msra.gmra.mrb[0].mxu0 %v3009_v59  ;;  %7381 = vmatpush1.bf16.xpose.msra.mxu1 %v13932_v58  ;;  %v1337_v58 = vld [vmem:[%s15991_s30 + $0xa28] sm:$0x11]  ;;  %v14132_v59 = vcombine.low %v1144_v39, %v1336_v40  ;;  %v3109_v40 = vcombine.high %v3105_v28, %v3105_v28 }
 0x25e   : > { %11221 = vmatpush1.bf16.xpose.msra.mxu0 %v14124_v62  ;;  %7412 = vmatprep.mubr.bf16.mxu1 %v1873_v63  ;;  %v13943_v62 = vcombine.high %v1049_v53, %v1241_v54  ;;  %v14135_v63 = vcombine.high %v1145_v57, %v1337_v58 }
 0x25f   : > { %11252 = vmatprep.mubr.bf16.mxu0 %v3049_v0  ;;  %7420 = vmatprep.subr.bf16.mxu1 %v13935_v1  ;;  %v1908_v0 = vrot.slane %v1892_v48, %v15997_v11  ;;  %v1050_v1 = vld [vmem:[%s15991_s30 + $0x130] sm:$0xff] }
 0x260   : > { %11260 = vmatprep.subr.bf16.mxu0 %v14127_v2  ;;  %v1242_v2 = vld [vmem:[%s15991_s30 + $0x730] sm:$0x11] }
 0x261   : > { %v1930_v19 = vcombine.high %v1908_v0, %v1908_v0 }
 0x268   : > { %7413 = vmatmul.mubr.bf16.vlgmr.msra.gmra.mrb[0].mxu1 %v1859_v3  ;;  %v13942_v3 = vcombine.low %v1049_v53, %v1241_v54  ;;  %v3107_v53 = vcombine.high %v3091_v35, %v3091_v35  ;;  %v1149_v54 = vld [vmem:[%s15991_s30 + $0x448] sm:$0xff] }
 0x269   : > { %11253 = vmatmul.mubr.bf16.vlgmr.msra.gmra.mrb[0].mxu0 %v3035_v7  ;;  %7421 = vmatpush1.bf16.xpose.msra.mxu1 %v13934_v6  ;;  %v1338_v6 = vld [vmem:[%s15991_s30 + $0xa30] sm:$0x11]  ;;  %v14134_v7 = vcombine.low %v1145_v57, %v1337_v58 }
 0x26a   : > { %11261 = vmatpush1.bf16.xpose.msra.mxu0 %v14126_v10  ;;  %7452 = vmatprep.mubr.bf16.mxu1 %v1883_v12  ;;  %v3108_v10 = vcombine.high %v3098_v61, %v3098_v61  ;;  %v13945_v12 = vcombine.high %v1050_v1, %v1242_v2 }
 0x26b   : > { %11292 = vmatprep.mubr.bf16.mxu0 %v3059_v14  ;;  %7460 = vmatprep.subr.bf16.mxu1 %v13937_v15  ;;  %v14137_v14 = vcombine.high %v1146_v5, %v1338_v6  ;;  %v1899_v15 = vrot.slane %v1885_v9, %v15997_v11 }
 0x26c   : > { %11300 = vmatprep.subr.bf16.mxu0 %v14129_v17 }
 0x26d   : > { %v1901_v17 = vcombine.high %v1899_v15, %v1899_v15 }
 0x26f   : > { %v1929_v27 = vrot.slane %v1901_v17, %v15997_v11  ;;  %v1055_v17 = vld [vmem:[%s15991_s30 + $0x158] sm:$0xff] }
 0x271   : > { %v1933_v39 = vcombine.high %v1929_v27, %v1929_v27 }
 0x274   : > { %7453 = vmatmul.mubr.bf16.vlgmr.msra.gmra.mrb[0].mxu1 %v1881_v22  ;;  %v13944_v22 = vcombine.low %v1050_v1, %v1242_v2  ;;  %v1150_v2 = vld [vmem:[%s15991_s30 + $0x450] sm:$0xff] }
 0x275   : > { %11293 = vmatmul.mubr.bf16.vlgmr.msra.gmra.mrb[0].mxu0 %v3057_v26  ;;  %7461 = vmatpush1.bf16.xpose.msra.mxu1 %v13936_v25  ;;  %v1339_v25 = vld [vmem:[%s15991_s30 + $0xa38] sm:$0x11]  ;;  %v14136_v26 = vcombine.low %v1146_v5, %v1338_v6 }
 0x276   : > { %11301 = vmatpush1.bf16.xpose.msra.mxu0 %v14128_v29  ;;  %7492 = vmatprep.mubr.bf16.mxu1 %v1880_v30  ;;  %v13947_v29 = vcombine.high %v1051_v20, %v1243_v21  ;;  %v14139_v30 = vcombine.high %v1147_v24, %v1339_v25 }
 0x277   : > { %11332 = vmatprep.mubr.bf16.mxu0 %v3056_v31  ;;  %7500 = vmatprep.subr.bf16.mxu1 %v13939_v32  ;;  %v1915_v31 = vrot.slane %v1899_v15, %v15997_v11  ;;  %v1052_v32 = vld [vmem:[%s15991_s30 + $0x140] sm:$0xff] }
 0x278   : > { %11340 = vmatprep.subr.bf16.mxu0 %v14131_v33  ;;  %v1244_v33 = vld [vmem:[%s15991_s30 + $0x740] sm:$0x11] }
 0x279   : > { %v1931_v49 = vcombine.high %v1915_v31, %v1915_v31 }
 0x280   : > { %7493 = vmatmul.mubr.bf16.vlgmr.msra.gmra.mrb[0].mxu1 %v1866_v34  ;;  %v13946_v34 = vcombine.low %v1051_v20, %v1243_v21  ;;  %v1151_v21 = vld [vmem:[%s15991_s30 + $0x458] sm:$0xff] }
 0x281   : > { %11333 = vmatmul.mubr.bf16.vlgmr.msra.gmra.mrb[0].mxu0 %v3042_v38  ;;  %7501 = vmatpush1.bf16.xpose.msra.mxu1 %v13938_v37  ;;  %v1340_v37 = vld [vmem:[%s15991_s30 + $0xa40] sm:$0x11]  ;;  %v14138_v38 = vcombine.low %v1147_v24, %v1339_v25 }
 0x282   : > { %11341 = vmatpush1.bf16.xpose.msra.mxu0 %v14130_v41  ;;  %7532 = vmatprep.mubr.bf16.mxu1 %v1884_v42  ;;  %v13949_v41 = vcombine.high %v1052_v32, %v1244_v33  ;;  %v974_v42 = vld [vmem:[%s16004_s6 + $0x50] sm:$0xff] }
 0x283   : > { %11372 = vmatprep.mubr.bf16.mxu0 %v3060_v43  ;;  %7540 = vmatprep.subr.bf16.mxu1 %v13941_v44  ;;  %v14141_v43 = vcombine.high %v1148_v36, %v1340_v37  ;;  %v998_v44 = vld [vmem:[%s16004_s6 + $0x110] sm:$0xff]  ;;  %v1941_v45 = vrot.slane %v974_v42, %v15997_v11  ;;  %v1934_v6 = vcombine.high %v974_v42, %v974_v42 }
 0x284   : > { %11380 = vmatprep.subr.bf16.mxu0 %v14133_v46  ;;  %v3117_v46 = vrot.slane %v998_v44, %v15997_v11  ;;  %v3110_v9 = vcombine.high %v998_v44, %v998_v44 }
 0x285   : > { %v1949_v47 = vcombine.high %v1941_v45, %v1941_v45 }
 0x286   : > { %v3125_v48 = vcombine.high %v3117_v46, %v3117_v46  ;;  %v3133_v1 = vrot.slane %v3117_v46, %v15997_v11  ;;  %v3124_v13 = vrot.slane %v3110_v9, %v15997_v11 }
 0x287   : > { %v1971_v57 = vrot.slane %v1949_v47, %v15997_v11  ;;  %v1057_v47 = vld [vmem:[%s15991_s30 + $0x168] sm:$0xff] }
 0x288   : > { %v3147_v58 = vrot.slane %v3125_v48, %v15997_v11  ;;  %v3126_v15 = vcombine.high %v3124_v13, %v3124_v13  ;;  %v3155_v20 = vcombine.high %v3133_v1, %v3133_v1  ;;  %v1249_v48 = vld [vmem:[%s15991_s30 + $0x768] sm:$0x11] }
 0x289   : > { %v1981_v5 = vcombine.high %v1971_v57, %v1971_v57 }
 0x28a   : > { %v3154_v25 = vrot.slane %v3126_v15, %v15997_v11  ;;  %v1251_v15 = vld [vmem:[%s15991_s30 + $0x778] sm:$0x11] }
 0x28c   : > { %7533 = vmatmul.mubr.bf16.vlgmr.msra.gmra.mrb[0].mxu1 %v1882_v52  ;;  %v13948_v52 = vcombine.low %v1052_v32, %v1244_v33  ;;  %v3140_v32 = vrot.slane %v3124_v13, %v15997_v11  ;;  %v1152_v33 = vld [vmem:[%s15991_s30 + $0x460] sm:$0xff] }
 0x28d   : > { %11373 = vmatmul.mubr.bf16.vlgmr.msra.gmra.mrb[0].mxu0 %v3058_v56  ;;  %7541 = vmatpush1.bf16.xpose.msra.mxu1 %v13940_v55  ;;  %v1341_v55 = vld [vmem:[%s15991_s30 + $0xa48] sm:$0x11]  ;;  %v14140_v56 = vcombine.low %v1148_v36, %v1340_v37  ;;  %v3158_v37 = vcombine.high %v3154_v25, %v3154_v25 }
 0x28e   : > { %11381 = vmatpush1.bf16.xpose.msra.mxu0 %v14132_v59  ;;  %7572 = vmatprep.mubr.bf16.mxu1 %v1922_v60  ;;  %v13951_v59 = vcombine.high %v1053_v50, %v1245_v51  ;;  %v14143_v60 = vcombine.high %v1149_v54, %v1341_v55 }
 0x28f   : > { %11412 = vmatprep.mubr.bf16.mxu0 %v3098_v61  ;;  %7580 = vmatprep.subr.bf16.mxu1 %v13943_v62  ;;  %v1957_v61 = vrot.slane %v1941_v45, %v15997_v11  ;;  %v1054_v62 = vld [vmem:[%s15991_s30 + $0x150] sm:$0xff] }
 0x290   : > { %11420 = vmatprep.subr.bf16.mxu0 %v14135_v63  ;;  %v1246_v63 = vld [vmem:[%s15991_s30 + $0x750] sm:$0x11] }
 0x291   : > { %v1979_v16 = vcombine.high %v1957_v61, %v1957_v61 }
 0x298   : > { %7573 = vmatmul.mubr.bf16.vlgmr.msra.gmra.mrb[0].mxu1 %v1908_v0  ;;  %v13950_v0 = vcombine.low %v1053_v50, %v1245_v51  ;;  %v3156_v50 = vcombine.high %v3140_v32, %v3140_v32  ;;  %v1153_v51 = vld [vmem:[%s15991_s30 + $0x468] sm:$0xff] }
 0x299   : > { %11413 = vmatmul.mubr.bf16.vlgmr.msra.gmra.mrb[0].mxu0 %v3084_v4  ;;  %7581 = vmatpush1.bf16.xpose.msra.mxu1 %v13942_v3  ;;  %v1342_v3 = vld [vmem:[%s15991_s30 + $0xa50] sm:$0x11]  ;;  %v14142_v4 = vcombine.low %v1149_v54, %v1341_v55 }
 0x29a   : > { %11421 = vmatpush1.bf16.xpose.msra.mxu0 %v14134_v7  ;;  %7612 = vmatprep.mubr.bf16.mxu1 %v1932_v8  ;;  %v3157_v7 = vcombine.high %v3147_v58, %v3147_v58  ;;  %v13953_v8 = vcombine.high %v1054_v62, %v1246_v63 }
 0x29b   : > { %11452 = vmatprep.mubr.bf16.mxu0 %v3108_v10  ;;  %7620 = vmatprep.subr.bf16.mxu1 %v13945_v12  ;;  %v14145_v10 = vcombine.high %v1150_v2, %v1342_v3  ;;  %v1948_v12 = vrot.slane %v1934_v6, %v15997_v11 }
 0x29c   : > { %11460 = vmatprep.subr.bf16.mxu0 %v14137_v14 }
 0x29d   : > { %v1950_v14 = vcombine.high %v1948_v12, %v1948_v12 }
 0x29f   : > { %v1978_v24 = vrot.slane %v1950_v14, %v15997_v11  ;;  %v1059_v14 = vld [vmem:[%s15991_s30 + $0x178] sm:$0xff] }
 0x2a1   : > { %v1982_v36 = vcombine.high %v1978_v24, %v1978_v24 }
 0x2a4   : > { %7613 = vmatmul.mubr.bf16.vlgmr.msra.gmra.mrb[0].mxu1 %v1930_v19  ;;  %v13952_v19 = vcombine.low %v1054_v62, %v1246_v63  ;;  %v1154_v63 = vld [vmem:[%s15991_s30 + $0x470] sm:$0xff] }
 0x2a5   : > { %11453 = vmatmul.mubr.bf16.vlgmr.msra.gmra.mrb[0].mxu0 %v3106_v23  ;;  %7621 = vmatpush1.bf16.xpose.msra.mxu1 %v13944_v22  ;;  %v1343_v22 = vld [vmem:[%s15991_s30 + $0xa58] sm:$0x11]  ;;  %v14144_v23 = vcombine.low %v1150_v2, %v1342_v3 }
 0x2a6   : > { %11461 = vmatpush1.bf16.xpose.msra.mxu0 %v14136_v26  ;;  %7652 = vmatprep.mubr.bf16.mxu1 %v1929_v27  ;;  %v13955_v26 = vcombine.high %v1055_v17, %v1247_v18  ;;  %v14147_v27 = vcombine.high %v1151_v21, %v1343_v22 }
 0x2a7   : > { %11492 = vmatprep.mubr.bf16.mxu0 %v3105_v28  ;;  %7660 = vmatprep.subr.bf16.mxu1 %v13947_v29  ;;  %v1964_v28 = vrot.slane %v1948_v12, %v15997_v11  ;;  %v1056_v29 = vld [vmem:[%s15991_s30 + $0x160] sm:$0xff] }
 0x2a8   : > { %11500 = vmatprep.subr.bf16.mxu0 %v14139_v30  ;;  %v1248_v30 = vld [vmem:[%s15991_s30 + $0x760] sm:$0x11] }
 0x2a9   : > { %v1980_v46 = vcombine.high %v1964_v28, %v1964_v28 }
 0x2b0   : > { %7653 = vmatmul.mubr.bf16.vlgmr.msra.gmra.mrb[0].mxu1 %v1915_v31  ;;  %v13954_v31 = vcombine.low %v1055_v17, %v1247_v18  ;;  %v1155_v18 = vld [vmem:[%s15991_s30 + $0x478] sm:$0xff] }
 0x2b1   : > { %11493 = vmatmul.mubr.bf16.vlgmr.msra.gmra.mrb[0].mxu0 %v3091_v35  ;;  %7661 = vmatpush1.bf16.xpose.msra.mxu1 %v13946_v34  ;;  %v1344_v34 = vld [vmem:[%s15991_s30 + $0xa60] sm:$0x11]  ;;  %v14146_v35 = vcombine.low %v1151_v21, %v1343_v22 }
 0x2b2   : > { %11501 = vmatpush1.bf16.xpose.msra.mxu0 %v14138_v38  ;;  %7692 = vmatprep.mubr.bf16.mxu1 %v1933_v39  ;;  %v13957_v38 = vcombine.high %v1056_v29, %v1248_v30  ;;  %v975_v39 = vld [vmem:[%s16004_s6 + $0x58] sm:$0xff] }
 0x2b3   : > { %11532 = vmatprep.mubr.bf16.mxu0 %v3109_v40  ;;  %7700 = vmatprep.subr.bf16.mxu1 %v13949_v41  ;;  %v14149_v40 = vcombine.high %v1152_v33, %v1344_v34  ;;  %v999_v41 = vld [vmem:[%s16004_s6 + $0x118] sm:$0xff]  ;;  %v1990_v42 = vrot.slane %v975_v39, %v15997_v11  ;;  %v1983_v3 = vcombine.high %v975_v39, %v975_v39 }
 0x2b4   : > { %11540 = vmatprep.subr.bf16.mxu0 %v14141_v43  ;;  %v3166_v43 = vrot.slane %v999_v41, %v15997_v11  ;;  %v3159_v6 = vcombine.high %v999_v41, %v999_v41 }
 0x2b5   : > { %v1998_v44 = vcombine.high %v1990_v42, %v1990_v42 }
 0x2b6   : > { %v3174_v45 = vcombine.high %v3166_v43, %v3166_v43  ;;  %v3182_v62 = vrot.slane %v3166_v43, %v15997_v11  ;;  %v3173_v9 = vrot.slane %v3159_v6, %v15997_v11 }
 0x2b7   : > { %v2020_v54 = vrot.slane %v1998_v44, %v15997_v11  ;;  %v1061_v44 = vld [vmem:[%s15991_s30 + $0x188] sm:$0xff] }
 0x2b8   : > { %v3196_v55 = vrot.slane %v3174_v45, %v15997_v11  ;;  %v3175_v12 = vcombine.high %v3173_v9, %v3173_v9  ;;  %v3204_v17 = vcombine.high %v3182_v62, %v3182_v62  ;;  %v1253_v45 = vld [vmem:[%s15991_s30 + $0x788] sm:$0x11] }
 0x2b9   : > { %v2030_v2 = vcombine.high %v2020_v54, %v2020_v54 }
 0x2ba   : > { %v3203_v22 = vrot.slane %v3175_v12, %v15997_v11  ;;  %v1255_v12 = vld [vmem:[%s15991_s30 + $0x798] sm:$0x11] }
 0x2bc   : > { %7693 = vmatmul.mubr.bf16.vlgmr.msra.gmra.mrb[0].mxu1 %v1931_v49  ;;  %v13956_v49 = vcombine.low %v1056_v29, %v1248_v30  ;;  %v3189_v29 = vrot.slane %v3173_v9, %v15997_v11  ;;  %v1156_v30 = vld [vmem:[%s15991_s30 + $0x480] sm:$0xff] }
 0x2bd   : > { %11533 = vmatmul.mubr.bf16.vlgmr.msra.gmra.mrb[0].mxu0 %v3107_v53  ;;  %7701 = vmatpush1.bf16.xpose.msra.mxu1 %v13948_v52  ;;  %v1345_v52 = vld [vmem:[%s15991_s30 + $0xa68] sm:$0x11]  ;;  %v14148_v53 = vcombine.low %v1152_v33, %v1344_v34  ;;  %v3207_v34 = vcombine.high %v3203_v22, %v3203_v22 }
 0x2be   : > { %11541 = vmatpush1.bf16.xpose.msra.mxu0 %v14140_v56  ;;  %7732 = vmatprep.mubr.bf16.mxu1 %v1971_v57  ;;  %v13959_v56 = vcombine.high %v1057_v47, %v1249_v48  ;;  %v14151_v57 = vcombine.high %v1153_v51, %v1345_v52 }
 0x2bf   : > { %11572 = vmatprep.mubr.bf16.mxu0 %v3147_v58  ;;  %7740 = vmatprep.subr.bf16.mxu1 %v13951_v59  ;;  %v2006_v58 = vrot.slane %v1990_v42, %v15997_v11  ;;  %v1058_v59 = vld [vmem:[%s15991_s30 + $0x170] sm:$0xff] }
 0x2c0   : > { %11580 = vmatprep.subr.bf16.mxu0 %v14143_v60  ;;  %v1250_v60 = vld [vmem:[%s15991_s30 + $0x770] sm:$0x11] }
 0x2c1   : > { %v2028_v13 = vcombine.high %v2006_v58, %v2006_v58 }
 0x2c8   : > { %7733 = vmatmul.mubr.bf16.vlgmr.msra.gmra.mrb[0].mxu1 %v1957_v61  ;;  %v13958_v61 = vcombine.low %v1057_v47, %v1249_v48  ;;  %v3205_v47 = vcombine.high %v3189_v29, %v3189_v29  ;;  %v1157_v48 = vld [vmem:[%s15991_s30 + $0x488] sm:$0xff] }
 0x2c9   : > { %11573 = vmatmul.mubr.bf16.vlgmr.msra.gmra.mrb[0].mxu0 %v3133_v1  ;;  %7741 = vmatpush1.bf16.xpose.msra.mxu1 %v13950_v0  ;;  %v1346_v0 = vld [vmem:[%s15991_s30 + $0xa70] sm:$0x11]  ;;  %v14150_v1 = vcombine.low %v1153_v51, %v1345_v52 }
 0x2ca   : > { %11581 = vmatpush1.bf16.xpose.msra.mxu0 %v14142_v4  ;;  %7772 = vmatprep.mubr.bf16.mxu1 %v1981_v5  ;;  %v3206_v4 = vcombine.high %v3196_v55, %v3196_v55  ;;  %v13961_v5 = vcombine.high %v1058_v59, %v1250_v60 }
 0x2cb   : > { %11612 = vmatprep.mubr.bf16.mxu0 %v3157_v7  ;;  %7780 = vmatprep.subr.bf16.mxu1 %v13953_v8  ;;  %v14153_v7 = vcombine.high %v1154_v63, %v1346_v0  ;;  %v1997_v8 = vrot.slane %v1983_v3, %v15997_v11 }
 0x2cc   : > { %11620 = vmatprep.subr.bf16.mxu0 %v14145_v10 }
 0x2cd   : > { %v1999_v10 = vcombine.high %v1997_v8, %v1997_v8 }
 0x2cf   : > { %v2027_v21 = vrot.slane %v1999_v10, %v15997_v11  ;;  %v1063_v10 = vld [vmem:[%s15991_s30 + $0x198] sm:$0xff] }
 0x2d1   : > { %v2031_v33 = vcombine.high %v2027_v21, %v2027_v21 }
 0x2d4   : > { %7773 = vmatmul.mubr.bf16.vlgmr.msra.gmra.mrb[0].mxu1 %v1979_v16  ;;  %v13960_v16 = vcombine.low %v1058_v59, %v1250_v60  ;;  %v1158_v60 = vld [vmem:[%s15991_s30 + $0x490] sm:$0xff] }
 0x2d5   : > { %11613 = vmatmul.mubr.bf16.vlgmr.msra.gmra.mrb[0].mxu0 %v3155_v20  ;;  %7781 = vmatpush1.bf16.xpose.msra.mxu1 %v13952_v19  ;;  %v1347_v19 = vld [vmem:[%s15991_s30 + $0xa78] sm:$0x11]  ;;  %v14152_v20 = vcombine.low %v1154_v63, %v1346_v0 }
 0x2d6   : > { %11621 = vmatpush1.bf16.xpose.msra.mxu0 %v14144_v23  ;;  %7812 = vmatprep.mubr.bf16.mxu1 %v1978_v24  ;;  %v13963_v23 = vcombine.high %v1059_v14, %v1251_v15  ;;  %v14155_v24 = vcombine.high %v1155_v18, %v1347_v19 }
 0x2d7   : > { %11652 = vmatprep.mubr.bf16.mxu0 %v3154_v25  ;;  %7820 = vmatprep.subr.bf16.mxu1 %v13955_v26  ;;  %v2013_v25 = vrot.slane %v1997_v8, %v15997_v11  ;;  %v1060_v26 = vld [vmem:[%s15991_s30 + $0x180] sm:$0xff] }
 0x2d8   : > { %11660 = vmatprep.subr.bf16.mxu0 %v14147_v27  ;;  %v1252_v27 = vld [vmem:[%s15991_s30 + $0x780] sm:$0x11] }
 0x2d9   : > { %v2029_v43 = vcombine.high %v2013_v25, %v2013_v25 }
 0x2e0   : > { %7813 = vmatmul.mubr.bf16.vlgmr.msra.gmra.mrb[0].mxu1 %v1964_v28  ;;  %v13962_v28 = vcombine.low %v1059_v14, %v1251_v15  ;;  %v1159_v15 = vld [vmem:[%s15991_s30 + $0x498] sm:$0xff] }
 0x2e1   : > { %11653 = vmatmul.mubr.bf16.vlgmr.msra.gmra.mrb[0].mxu0 %v3140_v32  ;;  %7821 = vmatpush1.bf16.xpose.msra.mxu1 %v13954_v31  ;;  %v1348_v31 = vld [vmem:[%s15991_s30 + $0xa80] sm:$0x11]  ;;  %v14154_v32 = vcombine.low %v1155_v18, %v1347_v19 }
 0x2e2   : > { %11661 = vmatpush1.bf16.xpose.msra.mxu0 %v14146_v35  ;;  %7852 = vmatprep.mubr.bf16.mxu1 %v1982_v36  ;;  %v13965_v35 = vcombine.high %v1060_v26, %v1252_v27  ;;  %v976_v36 = vld [vmem:[%s16004_s6 + $0x60] sm:$0xff] }
 0x2e3   : > { %11692 = vmatprep.mubr.bf16.mxu0 %v3158_v37  ;;  %7860 = vmatprep.subr.bf16.mxu1 %v13957_v38  ;;  %v14157_v37 = vcombine.high %v1156_v30, %v1348_v31  ;;  %v1000_v38 = vld [vmem:[%s16004_s6 + $0x120] sm:$0xff]  ;;  %v2039_v39 = vrot.slane %v976_v36, %v15997_v11  ;;  %v2032_v0 = vcombine.high %v976_v36, %v976_v36 }
 0x2e4   : > { %11700 = vmatprep.subr.bf16.mxu0 %v14149_v40  ;;  %v3215_v40 = vrot.slane %v1000_v38, %v15997_v11  ;;  %v3208_v3 = vcombine.high %v1000_v38, %v1000_v38 }
 0x2e5   : > { %v2047_v41 = vcombine.high %v2039_v39, %v2039_v39 }
 0x2e6   : > { %v3223_v42 = vcombine.high %v3215_v40, %v3215_v40  ;;  %v3231_v59 = vrot.slane %v3215_v40, %v15997_v11  ;;  %v3222_v6 = vrot.slane %v3208_v3, %v15997_v11 }
 0x2e7   : > { %v2069_v51 = vrot.slane %v2047_v41, %v15997_v11  ;;  %v1065_v41 = vld [vmem:[%s15991_s30 + $0x1a8] sm:$0xff] }
 0x2e8   : > { %v3245_v52 = vrot.slane %v3223_v42, %v15997_v11  ;;  %v3224_v8 = vcombine.high %v3222_v6, %v3222_v6  ;;  %v3253_v14 = vcombine.high %v3231_v59, %v3231_v59  ;;  %v1257_v42 = vld [vmem:[%s15991_s30 + $0x7a8] sm:$0x11] }
 0x2e9   : > { %v2079_v63 = vcombine.high %v2069_v51, %v2069_v51 }
 0x2ea   : > { %v3252_v19 = vrot.slane %v3224_v8, %v15997_v11  ;;  %v1259_v8 = vld [vmem:[%s15991_s30 + $0x7b8] sm:$0x11] }
 0x2ec   : > { %7853 = vmatmul.mubr.bf16.vlgmr.msra.gmra.mrb[0].mxu1 %v1980_v46  ;;  %v13964_v46 = vcombine.low %v1060_v26, %v1252_v27  ;;  %v3238_v26 = vrot.slane %v3222_v6, %v15997_v11  ;;  %v1160_v27 = vld [vmem:[%s15991_s30 + $0x4a0] sm:$0xff] }
 0x2ed   : > { %11693 = vmatmul.mubr.bf16.vlgmr.msra.gmra.mrb[0].mxu0 %v3156_v50  ;;  %7861 = vmatpush1.bf16.xpose.msra.mxu1 %v13956_v49  ;;  %v1349_v49 = vld [vmem:[%s15991_s30 + $0xa88] sm:$0x11]  ;;  %v14156_v50 = vcombine.low %v1156_v30, %v1348_v31  ;;  %v3256_v31 = vcombine.high %v3252_v19, %v3252_v19 }
 0x2ee   : > { %11701 = vmatpush1.bf16.xpose.msra.mxu0 %v14148_v53  ;;  %7892 = vmatprep.mubr.bf16.mxu1 %v2020_v54  ;;  %v13967_v53 = vcombine.high %v1061_v44, %v1253_v45  ;;  %v14159_v54 = vcombine.high %v1157_v48, %v1349_v49 }
 0x2ef   : > { %11732 = vmatprep.mubr.bf16.mxu0 %v3196_v55  ;;  %7900 = vmatprep.subr.bf16.mxu1 %v13959_v56  ;;  %v2055_v55 = vrot.slane %v2039_v39, %v15997_v11  ;;  %v1062_v56 = vld [vmem:[%s15991_s30 + $0x190] sm:$0xff] }
 0x2f0   : > { %11740 = vmatprep.subr.bf16.mxu0 %v14151_v57  ;;  %v1254_v57 = vld [vmem:[%s15991_s30 + $0x790] sm:$0x11] }
 0x2f1   : > { %v2077_v9 = vcombine.high %v2055_v55, %v2055_v55 }
 0x2f8   : > { %7893 = vmatmul.mubr.bf16.vlgmr.msra.gmra.mrb[0].mxu1 %v2006_v58  ;;  %v13966_v58 = vcombine.low %v1061_v44, %v1253_v45  ;;  %v3254_v44 = vcombine.high %v3238_v26, %v3238_v26  ;;  %v1161_v45 = vld [vmem:[%s15991_s30 + $0x4a8] sm:$0xff] }
 0x2f9   : > { %11733 = vmatmul.mubr.bf16.vlgmr.msra.gmra.mrb[0].mxu0 %v3182_v62  ;;  %7901 = vmatpush1.bf16.xpose.msra.mxu1 %v13958_v61  ;;  %v1350_v61 = vld [vmem:[%s15991_s30 + $0xa90] sm:$0x11]  ;;  %v14158_v62 = vcombine.low %v1157_v48, %v1349_v49 }
 0x2fa   : > { %11741 = vmatpush1.bf16.xpose.msra.mxu0 %v14150_v1  ;;  %7932 = vmatprep.mubr.bf16.mxu1 %v2030_v2  ;;  %v3255_v1 = vcombine.high %v3245_v52, %v3245_v52  ;;  %v13969_v2 = vcombine.high %v1062_v56, %v1254_v57 }
 0x2fb   : > { %11772 = vmatprep.mubr.bf16.mxu0 %v3206_v4  ;;  %7940 = vmatprep.subr.bf16.mxu1 %v13961_v5  ;;  %v14161_v4 = vcombine.high %v1158_v60, %v1350_v61  ;;  %v2046_v5 = vrot.slane %v2032_v0, %v15997_v11 }
 0x2fc   : > { %11780 = vmatprep.subr.bf16.mxu0 %v14153_v7 }
 0x2fd   : > { %v2048_v7 = vcombine.high %v2046_v5, %v2046_v5 }
 0x2ff   : > { %v2076_v18 = vrot.slane %v2048_v7, %v15997_v11  ;;  %v1067_v7 = vld [vmem:[%s15991_s30 + $0x1b8] sm:$0xff] }
 0x301   : > { %v2080_v30 = vcombine.high %v2076_v18, %v2076_v18 }
 0x304   : > { %7933 = vmatmul.mubr.bf16.vlgmr.msra.gmra.mrb[0].mxu1 %v2028_v13  ;;  %v13968_v13 = vcombine.low %v1062_v56, %v1254_v57  ;;  %v1162_v57 = vld [vmem:[%s15991_s30 + $0x4b0] sm:$0xff] }
 0x305   : > { %11773 = vmatmul.mubr.bf16.vlgmr.msra.gmra.mrb[0].mxu0 %v3204_v17  ;;  %7941 = vmatpush1.bf16.xpose.msra.mxu1 %v13960_v16  ;;  %v1351_v16 = vld [vmem:[%s15991_s30 + $0xa98] sm:$0x11]  ;;  %v14160_v17 = vcombine.low %v1158_v60, %v1350_v61 }
 0x306   : > { %11781 = vmatpush1.bf16.xpose.msra.mxu0 %v14152_v20  ;;  %7972 = vmatprep.mubr.bf16.mxu1 %v2027_v21  ;;  %v13971_v20 = vcombine.high %v1063_v10, %v1255_v12  ;;  %v14163_v21 = vcombine.high %v1159_v15, %v1351_v16 }
 0x307   : > { %11812 = vmatprep.mubr.bf16.mxu0 %v3203_v22  ;;  %7980 = vmatprep.subr.bf16.mxu1 %v13963_v23  ;;  %v2062_v22 = vrot.slane %v2046_v5, %v15997_v11  ;;  %v1064_v23 = vld [vmem:[%s15991_s30 + $0x1a0] sm:$0xff] }
 0x308   : > { %11820 = vmatprep.subr.bf16.mxu0 %v14155_v24  ;;  %v1256_v24 = vld [vmem:[%s15991_s30 + $0x7a0] sm:$0x11] }
 0x309   : > { %v2078_v40 = vcombine.high %v2062_v22, %v2062_v22 }
 0x310   : > { %7973 = vmatmul.mubr.bf16.vlgmr.msra.gmra.mrb[0].mxu1 %v2013_v25  ;;  %v13970_v25 = vcombine.low %v1063_v10, %v1255_v12  ;;  %v1163_v12 = vld [vmem:[%s15991_s30 + $0x4b8] sm:$0xff] }
 0x311   : > { %11813 = vmatmul.mubr.bf16.vlgmr.msra.gmra.mrb[0].mxu0 %v3189_v29  ;;  %7981 = vmatpush1.bf16.xpose.msra.mxu1 %v13962_v28  ;;  %v1352_v28 = vld [vmem:[%s15991_s30 + $0xaa0] sm:$0x11]  ;;  %v14162_v29 = vcombine.low %v1159_v15, %v1351_v16 }
 0x312   : > { %11821 = vmatpush1.bf16.xpose.msra.mxu0 %v14154_v32  ;;  %8012 = vmatprep.mubr.bf16.mxu1 %v2031_v33  ;;  %v13973_v32 = vcombine.high %v1064_v23, %v1256_v24  ;;  %v977_v33 = vld [vmem:[%s16004_s6 + $0x68] sm:$0xff] }
 0x313   : > { %11852 = vmatprep.mubr.bf16.mxu0 %v3207_v34  ;;  %8020 = vmatprep.subr.bf16.mxu1 %v13965_v35  ;;  %v14165_v34 = vcombine.high %v1160_v27, %v1352_v28  ;;  %v1001_v35 = vld [vmem:[%s16004_s6 + $0x128] sm:$0xff]  ;;  %v2088_v36 = vrot.slane %v977_v33, %v15997_v11  ;;  %v2081_v61 = vcombine.high %v977_v33, %v977_v33 }
 0x314   : > { %11860 = vmatprep.subr.bf16.mxu0 %v14157_v37  ;;  %v3264_v37 = vrot.slane %v1001_v35, %v15997_v11  ;;  %v3257_v0 = vcombine.high %v1001_v35, %v1001_v35 }
 0x315   : > { %v2096_v38 = vcombine.high %v2088_v36, %v2088_v36 }
 0x316   : > { %v3272_v39 = vcombine.high %v3264_v37, %v3264_v37  ;;  %v3280_v56 = vrot.slane %v3264_v37, %v15997_v11  ;;  %v3271_v3 = vrot.slane %v3257_v0, %v15997_v11 }
 0x317   : > { %v2118_v48 = vrot.slane %v2096_v38, %v15997_v11  ;;  %v1069_v38 = vld [vmem:[%s15991_s30 + $0x1c8] sm:$0xff] }
 0x318   : > { %v3294_v49 = vrot.slane %v3272_v39, %v15997_v11  ;;  %v3273_v5 = vcombine.high %v3271_v3, %v3271_v3  ;;  %v3302_v10 = vcombine.high %v3280_v56, %v3280_v56  ;;  %v1261_v39 = vld [vmem:[%s15991_s30 + $0x7c8] sm:$0x11] }
 0x319   : > { %v2128_v60 = vcombine.high %v2118_v48, %v2118_v48 }
 0x31a   : > { %v3301_v16 = vrot.slane %v3273_v5, %v15997_v11  ;;  %v1263_v5 = vld [vmem:[%s15991_s30 + $0x7d8] sm:$0x11] }
 0x31c   : > { %8013 = vmatmul.mubr.bf16.vlgmr.msra.gmra.mrb[0].mxu1 %v2029_v43  ;;  %v13972_v43 = vcombine.low %v1064_v23, %v1256_v24  ;;  %v3287_v23 = vrot.slane %v3271_v3, %v15997_v11  ;;  %v1164_v24 = vld [vmem:[%s15991_s30 + $0x4c0] sm:$0xff] }
 0x31d   : > { %11853 = vmatmul.mubr.bf16.vlgmr.msra.gmra.mrb[0].mxu0 %v3205_v47  ;;  %8021 = vmatpush1.bf16.xpose.msra.mxu1 %v13964_v46  ;;  %v1353_v46 = vld [vmem:[%s15991_s30 + $0xaa8] sm:$0x11]  ;;  %v14164_v47 = vcombine.low %v1160_v27, %v1352_v28  ;;  %v3305_v28 = vcombine.high %v3301_v16, %v3301_v16 }
 0x31e   : > { %11861 = vmatpush1.bf16.xpose.msra.mxu0 %v14156_v50  ;;  %8052 = vmatprep.mubr.bf16.mxu1 %v2069_v51  ;;  %v13975_v50 = vcombine.high %v1065_v41, %v1257_v42  ;;  %v14167_v51 = vcombine.high %v1161_v45, %v1353_v46 }
 0x31f   : > { %11892 = vmatprep.mubr.bf16.mxu0 %v3245_v52  ;;  %8060 = vmatprep.subr.bf16.mxu1 %v13967_v53  ;;  %v2104_v52 = vrot.slane %v2088_v36, %v15997_v11  ;;  %v1066_v53 = vld [vmem:[%s15991_s30 + $0x1b0] sm:$0xff] }
 0x320   : > { %11900 = vmatprep.subr.bf16.mxu0 %v14159_v54  ;;  %v1258_v54 = vld [vmem:[%s15991_s30 + $0x7b0] sm:$0x11] }
 0x321   : > { %v2126_v6 = vcombine.high %v2104_v52, %v2104_v52 }
 0x328   : > { %8053 = vmatmul.mubr.bf16.vlgmr.msra.gmra.mrb[0].mxu1 %v2055_v55  ;;  %v13974_v55 = vcombine.low %v1065_v41, %v1257_v42  ;;  %v3303_v41 = vcombine.high %v3287_v23, %v3287_v23  ;;  %v1165_v42 = vld [vmem:[%s15991_s30 + $0x4c8] sm:$0xff] }
 0x329   : > { %11893 = vmatmul.mubr.bf16.vlgmr.msra.gmra.mrb[0].mxu0 %v3231_v59  ;;  %8061 = vmatpush1.bf16.xpose.msra.mxu1 %v13966_v58  ;;  %v1354_v58 = vld [vmem:[%s15991_s30 + $0xab0] sm:$0x11]  ;;  %v14166_v59 = vcombine.low %v1161_v45, %v1353_v46 }
 0x32a   : > { %11901 = vmatpush1.bf16.xpose.msra.mxu0 %v14158_v62  ;;  %8092 = vmatprep.mubr.bf16.mxu1 %v2079_v63  ;;  %v3304_v62 = vcombine.high %v3294_v49, %v3294_v49  ;;  %v13977_v63 = vcombine.high %v1066_v53, %v1258_v54 }
 0x32b   : > { %11932 = vmatprep.mubr.bf16.mxu0 %v3255_v1  ;;  %8100 = vmatprep.subr.bf16.mxu1 %v13969_v2  ;;  %v14169_v1 = vcombine.high %v1162_v57, %v1354_v58  ;;  %v2095_v2 = vrot.slane %v2081_v61, %v15997_v11 }
 0x32c   : > { %11940 = vmatprep.subr.bf16.mxu0 %v14161_v4 }
 0x32d   : > { %v2097_v4 = vcombine.high %v2095_v2, %v2095_v2 }
 0x32f   : > { %v2125_v15 = vrot.slane %v2097_v4, %v15997_v11  ;;  %v1071_v4 = vld [vmem:[%s15991_s30 + $0x1d8] sm:$0xff] }
 0x331   : > { %v2129_v27 = vcombine.high %v2125_v15, %v2125_v15 }
 0x334   : > { %8093 = vmatmul.mubr.bf16.vlgmr.msra.gmra.mrb[0].mxu1 %v2077_v9  ;;  %v13976_v9 = vcombine.low %v1066_v53, %v1258_v54  ;;  %v1166_v54 = vld [vmem:[%s15991_s30 + $0x4d0] sm:$0xff] }
 0x335   : > { %11933 = vmatmul.mubr.bf16.vlgmr.msra.gmra.mrb[0].mxu0 %v3253_v14  ;;  %8101 = vmatpush1.bf16.xpose.msra.mxu1 %v13968_v13  ;;  %v1355_v13 = vld [vmem:[%s15991_s30 + $0xab8] sm:$0x11]  ;;  %v14168_v14 = vcombine.low %v1162_v57, %v1354_v58 }
 0x336   : > { %11941 = vmatpush1.bf16.xpose.msra.mxu0 %v14160_v17  ;;  %8132 = vmatprep.mubr.bf16.mxu1 %v2076_v18  ;;  %v13979_v17 = vcombine.high %v1067_v7, %v1259_v8  ;;  %v14171_v18 = vcombine.high %v1163_v12, %v1355_v13 }
 0x337   : > { %11972 = vmatprep.mubr.bf16.mxu0 %v3252_v19  ;;  %8140 = vmatprep.subr.bf16.mxu1 %v13971_v20  ;;  %v2111_v19 = vrot.slane %v2095_v2, %v15997_v11  ;;  %v1068_v20 = vld [vmem:[%s15991_s30 + $0x1c0] sm:$0xff] }
 0x338   : > { %11980 = vmatprep.subr.bf16.mxu0 %v14163_v21  ;;  %v1260_v21 = vld [vmem:[%s15991_s30 + $0x7c0] sm:$0x11] }
 0x339   : > { %v2127_v37 = vcombine.high %v2111_v19, %v2111_v19 }
 0x340   : > { %8133 = vmatmul.mubr.bf16.vlgmr.msra.gmra.mrb[0].mxu1 %v2062_v22  ;;  %v13978_v22 = vcombine.low %v1067_v7, %v1259_v8  ;;  %v1167_v8 = vld [vmem:[%s15991_s30 + $0x4d8] sm:$0xff] }
 0x341   : > { %11973 = vmatmul.mubr.bf16.vlgmr.msra.gmra.mrb[0].mxu0 %v3238_v26  ;;  %8141 = vmatpush1.bf16.xpose.msra.mxu1 %v13970_v25  ;;  %v1356_v25 = vld [vmem:[%s15991_s30 + $0xac0] sm:$0x11]  ;;  %v14170_v26 = vcombine.low %v1163_v12, %v1355_v13 }
 0x342   : > { %11981 = vmatpush1.bf16.xpose.msra.mxu0 %v14162_v29  ;;  %8172 = vmatprep.mubr.bf16.mxu1 %v2080_v30  ;;  %v13981_v29 = vcombine.high %v1068_v20, %v1260_v21  ;;  %v978_v30 = vld [vmem:[%s16004_s6 + $0x70] sm:$0xff] }
 0x343   : > { %12012 = vmatprep.mubr.bf16.mxu0 %v3256_v31  ;;  %8180 = vmatprep.subr.bf16.mxu1 %v13973_v32  ;;  %v14173_v31 = vcombine.high %v1164_v24, %v1356_v25  ;;  %v1002_v32 = vld [vmem:[%s16004_s6 + $0x130] sm:$0xff]  ;;  %v2137_v33 = vrot.slane %v978_v30, %v15997_v11  ;;  %v2130_v58 = vcombine.high %v978_v30, %v978_v30 }
 0x344   : > { %12020 = vmatprep.subr.bf16.mxu0 %v14165_v34  ;;  %v3313_v34 = vrot.slane %v1002_v32, %v15997_v11  ;;  %v3306_v61 = vcombine.high %v1002_v32, %v1002_v32 }
 0x345   : > { %v2145_v35 = vcombine.high %v2137_v33, %v2137_v33 }
 0x346   : > { %v3321_v36 = vcombine.high %v3313_v34, %v3313_v34  ;;  %v3329_v53 = vrot.slane %v3313_v34, %v15997_v11  ;;  %v3320_v0 = vrot.slane %v3306_v61, %v15997_v11 }
 0x347   : > { %v2167_v45 = vrot.slane %v2145_v35, %v15997_v11  ;;  %v1073_v35 = vld [vmem:[%s15991_s30 + $0x1e8] sm:$0xff] }
 0x348   : > { %v3343_v46 = vrot.slane %v3321_v36, %v15997_v11  ;;  %v3322_v2 = vcombine.high %v3320_v0, %v3320_v0  ;;  %v3351_v7 = vcombine.high %v3329_v53, %v3329_v53  ;;  %v1265_v36 = vld [vmem:[%s15991_s30 + $0x7e8] sm:$0x11] }
 0x349   : > { %v2177_v57 = vcombine.high %v2167_v45, %v2167_v45 }
 0x34a   : > { %v3350_v13 = vrot.slane %v3322_v2, %v15997_v11  ;;  %v1267_v2 = vld [vmem:[%s15991_s30 + $0x7f8] sm:$0x11] }
 0x34c   : > { %8173 = vmatmul.mubr.bf16.vlgmr.msra.gmra.mrb[0].mxu1 %v2078_v40  ;;  %v13980_v40 = vcombine.low %v1068_v20, %v1260_v21  ;;  %v3336_v20 = vrot.slane %v3320_v0, %v15997_v11  ;;  %v1168_v21 = vld [vmem:[%s15991_s30 + $0x4e0] sm:$0xff] }
 0x34d   : > { %12013 = vmatmul.mubr.bf16.vlgmr.msra.gmra.mrb[0].mxu0 %v3254_v44  ;;  %8181 = vmatpush1.bf16.xpose.msra.mxu1 %v13972_v43  ;;  %v1357_v43 = vld [vmem:[%s15991_s30 + $0xac8] sm:$0x11]  ;;  %v14172_v44 = vcombine.low %v1164_v24, %v1356_v25  ;;  %v3354_v25 = vcombine.high %v3350_v13, %v3350_v13 }
 0x34e   : > { %12021 = vmatpush1.bf16.xpose.msra.mxu0 %v14164_v47  ;;  %8212 = vmatprep.mubr.bf16.mxu1 %v2118_v48  ;;  %v13983_v47 = vcombine.high %v1069_v38, %v1261_v39  ;;  %v14175_v48 = vcombine.high %v1165_v42, %v1357_v43 }
 0x34f   : > { %12052 = vmatprep.mubr.bf16.mxu0 %v3294_v49  ;;  %8220 = vmatprep.subr.bf16.mxu1 %v13975_v50  ;;  %v2153_v49 = vrot.slane %v2137_v33, %v15997_v11  ;;  %v1070_v50 = vld [vmem:[%s15991_s30 + $0x1d0] sm:$0xff] }
 0x350   : > { %12060 = vmatprep.subr.bf16.mxu0 %v14167_v51  ;;  %v1262_v51 = vld [vmem:[%s15991_s30 + $0x7d0] sm:$0x11] }
 0x351   : > { %v2175_v3 = vcombine.high %v2153_v49, %v2153_v49 }
 0x358   : > { %8213 = vmatmul.mubr.bf16.vlgmr.msra.gmra.mrb[0].mxu1 %v2104_v52  ;;  %v13982_v52 = vcombine.low %v1069_v38, %v1261_v39  ;;  %v3352_v38 = vcombine.high %v3336_v20, %v3336_v20  ;;  %v1169_v39 = vld [vmem:[%s15991_s30 + $0x4e8] sm:$0xff] }
 0x359   : > { %12053 = vmatmul.mubr.bf16.vlgmr.msra.gmra.mrb[0].mxu0 %v3280_v56  ;;  %8221 = vmatpush1.bf16.xpose.msra.mxu1 %v13974_v55  ;;  %v1358_v55 = vld [vmem:[%s15991_s30 + $0xad0] sm:$0x11]  ;;  %v14174_v56 = vcombine.low %v1165_v42, %v1357_v43 }
 0x35a   : > { %12061 = vmatpush1.bf16.xpose.msra.mxu0 %v14166_v59  ;;  %8252 = vmatprep.mubr.bf16.mxu1 %v2128_v60  ;;  %v3353_v59 = vcombine.high %v3343_v46, %v3343_v46  ;;  %v13985_v60 = vcombine.high %v1070_v50, %v1262_v51 }
 0x35b   : > { %12092 = vmatprep.mubr.bf16.mxu0 %v3304_v62  ;;  %8260 = vmatprep.subr.bf16.mxu1 %v13977_v63  ;;  %v14177_v62 = vcombine.high %v1166_v54, %v1358_v55  ;;  %v2144_v63 = vrot.slane %v2130_v58, %v15997_v11 }
 0x35c   : > { %12100 = vmatprep.subr.bf16.mxu0 %v14169_v1 }
 0x35d   : > { %v2146_v1 = vcombine.high %v2144_v63, %v2144_v63 }
 0x35f   : > { %v2174_v12 = vrot.slane %v2146_v1, %v15997_v11  ;;  %v1075_v1 = vld [vmem:[%s15991_s30 + $0x1f8] sm:$0xff] }
 0x361   : > { %v2178_v24 = vcombine.high %v2174_v12, %v2174_v12 }
 0x364   : > { %8253 = vmatmul.mubr.bf16.vlgmr.msra.gmra.mrb[0].mxu1 %v2126_v6  ;;  %v13984_v6 = vcombine.low %v1070_v50, %v1262_v51  ;;  %v1170_v51 = vld [vmem:[%s15991_s30 + $0x4f0] sm:$0xff] }
 0x365   : > { %12093 = vmatmul.mubr.bf16.vlgmr.msra.gmra.mrb[0].mxu0 %v3302_v10  ;;  %8261 = vmatpush1.bf16.xpose.msra.mxu1 %v13976_v9  ;;  %v1359_v9 = vld [vmem:[%s15991_s30 + $0xad8] sm:$0x11]  ;;  %v14176_v10 = vcombine.low %v1166_v54, %v1358_v55 }
 0x366   : > { %12101 = vmatpush1.bf16.xpose.msra.mxu0 %v14168_v14  ;;  %8292 = vmatprep.mubr.bf16.mxu1 %v2125_v15  ;;  %v13987_v14 = vcombine.high %v1071_v4, %v1263_v5  ;;  %v14179_v15 = vcombine.high %v1167_v8, %v1359_v9 }
 0x367   : > { %12132 = vmatprep.mubr.bf16.mxu0 %v3301_v16  ;;  %8300 = vmatprep.subr.bf16.mxu1 %v13979_v17  ;;  %v2160_v16 = vrot.slane %v2144_v63, %v15997_v11  ;;  %v1072_v17 = vld [vmem:[%s15991_s30 + $0x1e0] sm:$0xff] }
 0x368   : > { %12140 = vmatprep.subr.bf16.mxu0 %v14171_v18  ;;  %v1264_v18 = vld [vmem:[%s15991_s30 + $0x7e0] sm:$0x11] }
 0x369   : > { %v2176_v34 = vcombine.high %v2160_v16, %v2160_v16 }
 0x370   : > { %8293 = vmatmul.mubr.bf16.vlgmr.msra.gmra.mrb[0].mxu1 %v2111_v19  ;;  %v13986_v19 = vcombine.low %v1071_v4, %v1263_v5  ;;  %v1171_v5 = vld [vmem:[%s15991_s30 + $0x4f8] sm:$0xff] }
 0x371   : > { %12133 = vmatmul.mubr.bf16.vlgmr.msra.gmra.mrb[0].mxu0 %v3287_v23  ;;  %8301 = vmatpush1.bf16.xpose.msra.mxu1 %v13978_v22  ;;  %v1360_v22 = vld [vmem:[%s15991_s30 + $0xae0] sm:$0x11]  ;;  %v14178_v23 = vcombine.low %v1167_v8, %v1359_v9 }
 0x372   : > { %12141 = vmatpush1.bf16.xpose.msra.mxu0 %v14170_v26  ;;  %8332 = vmatprep.mubr.bf16.mxu1 %v2129_v27  ;;  %v13989_v26 = vcombine.high %v1072_v17, %v1264_v18  ;;  %v979_v27 = vld [vmem:[%s16004_s6 + $0x78] sm:$0xff] }
 0x373   : > { %12172 = vmatprep.mubr.bf16.mxu0 %v3305_v28  ;;  %8340 = vmatprep.subr.bf16.mxu1 %v13981_v29  ;;  %v14181_v28 = vcombine.high %v1168_v21, %v1360_v22  ;;  %v1003_v29 = vld [vmem:[%s16004_s6 + $0x138] sm:$0xff]  ;;  %v2186_v30 = vrot.slane %v979_v27, %v15997_v11  ;;  %v2179_v55 = vcombine.high %v979_v27, %v979_v27 }
 0x374   : > { %12180 = vmatprep.subr.bf16.mxu0 %v14173_v31  ;;  %v3362_v31 = vrot.slane %v1003_v29, %v15997_v11  ;;  %v3355_v58 = vcombine.high %v1003_v29, %v1003_v29 }
 0x375   : > { %v2194_v32 = vcombine.high %v2186_v30, %v2186_v30 }
 0x376   : > { %v3370_v33 = vcombine.high %v3362_v31, %v3362_v31  ;;  %v3378_v50 = vrot.slane %v3362_v31, %v15997_v11  ;;  %v3369_v61 = vrot.slane %v3355_v58, %v15997_v11 }
 0x377   : > { %v2216_v42 = vrot.slane %v2194_v32, %v15997_v11  ;;  %v1077_v32 = vld [vmem:[%s15991_s30 + $0x208] sm:$0xff] }
 0x378   : > { %v3392_v43 = vrot.slane %v3370_v33, %v15997_v11  ;;  %v3371_v63 = vcombine.high %v3369_v61, %v3369_v61  ;;  %v3400_v4 = vcombine.high %v3378_v50, %v3378_v50  ;;  %v1269_v33 = vld [vmem:[%s15991_s30 + $0x808] sm:$0x11] }
 0x379   : > { %v2226_v54 = vcombine.high %v2216_v42, %v2216_v42 }
 0x37a   : > { %v3399_v9 = vrot.slane %v3371_v63, %v15997_v11  ;;  %v1271_v63 = vld [vmem:[%s15991_s30 + $0x818] sm:$0x11] }
 0x37c   : > { %8333 = vmatmul.mubr.bf16.vlgmr.msra.gmra.mrb[0].mxu1 %v2127_v37  ;;  %v13988_v37 = vcombine.low %v1072_v17, %v1264_v18  ;;  %v3385_v17 = vrot.slane %v3369_v61, %v15997_v11  ;;  %v1172_v18 = vld [vmem:[%s15991_s30 + $0x500] sm:$0xff] }
 0x37d   : > { %12173 = vmatmul.mubr.bf16.vlgmr.msra.gmra.mrb[0].mxu0 %v3303_v41  ;;  %8341 = vmatpush1.bf16.xpose.msra.mxu1 %v13980_v40  ;;  %v1361_v40 = vld [vmem:[%s15991_s30 + $0xae8] sm:$0x11]  ;;  %v14180_v41 = vcombine.low %v1168_v21, %v1360_v22  ;;  %v3403_v22 = vcombine.high %v3399_v9, %v3399_v9 }
 0x37e   : > { %12181 = vmatpush1.bf16.xpose.msra.mxu0 %v14172_v44  ;;  %8372 = vmatprep.mubr.bf16.mxu1 %v2167_v45  ;;  %v13991_v44 = vcombine.high %v1073_v35, %v1265_v36  ;;  %v14183_v45 = vcombine.high %v1169_v39, %v1361_v40 }
 0x37f   : > { %12212 = vmatprep.mubr.bf16.mxu0 %v3343_v46  ;;  %8380 = vmatprep.subr.bf16.mxu1 %v13983_v47  ;;  %v2202_v46 = vrot.slane %v2186_v30, %v15997_v11  ;;  %v1074_v47 = vld [vmem:[%s15991_s30 + $0x1f0] sm:$0xff] }
 0x380   : > { %12220 = vmatprep.subr.bf16.mxu0 %v14175_v48  ;;  %v1266_v48 = vld [vmem:[%s15991_s30 + $0x7f0] sm:$0x11] }
 0x381   : > { %v2224_v0 = vcombine.high %v2202_v46, %v2202_v46 }
 0x388   : > { %8373 = vmatmul.mubr.bf16.vlgmr.msra.gmra.mrb[0].mxu1 %v2153_v49  ;;  %v13990_v49 = vcombine.low %v1073_v35, %v1265_v36  ;;  %v3401_v35 = vcombine.high %v3385_v17, %v3385_v17  ;;  %v1173_v36 = vld [vmem:[%s15991_s30 + $0x508] sm:$0xff] }
 0x389   : > { %12213 = vmatmul.mubr.bf16.vlgmr.msra.gmra.mrb[0].mxu0 %v3329_v53  ;;  %8381 = vmatpush1.bf16.xpose.msra.mxu1 %v13982_v52  ;;  %v1362_v52 = vld [vmem:[%s15991_s30 + $0xaf0] sm:$0x11]  ;;  %v14182_v53 = vcombine.low %v1169_v39, %v1361_v40 }
 0x38a   : > { %12221 = vmatpush1.bf16.xpose.msra.mxu0 %v14174_v56  ;;  %8412 = vmatprep.mubr.bf16.mxu1 %v2177_v57  ;;  %v3402_v56 = vcombine.high %v3392_v43, %v3392_v43  ;;  %v13993_v57 = vcombine.high %v1074_v47, %v1266_v48 }
 0x38b   : > { %12252 = vmatprep.mubr.bf16.mxu0 %v3353_v59  ;;  %8420 = vmatprep.subr.bf16.mxu1 %v13985_v60  ;;  %v14185_v59 = vcombine.high %v1170_v51, %v1362_v52  ;;  %v2193_v60 = vrot.slane %v2179_v55, %v15997_v11 }
 0x38c   : > { %12260 = vmatprep.subr.bf16.mxu0 %v14177_v62 }
 0x38d   : > { %v2195_v62 = vcombine.high %v2193_v60, %v2193_v60 }
 0x38f   : > { %v2223_v8 = vrot.slane %v2195_v62, %v15997_v11  ;;  %v1079_v62 = vld [vmem:[%s15991_s30 + $0x218] sm:$0xff] }
 0x391   : > { %v2227_v21 = vcombine.high %v2223_v8, %v2223_v8 }
 0x394   : > { %8413 = vmatmul.mubr.bf16.vlgmr.msra.gmra.mrb[0].mxu1 %v2175_v3  ;;  %v13992_v3 = vcombine.low %v1074_v47, %v1266_v48  ;;  %v1174_v48 = vld [vmem:[%s15991_s30 + $0x510] sm:$0xff] }
 0x395   : > { %12253 = vmatmul.mubr.bf16.vlgmr.msra.gmra.mrb[0].mxu0 %v3351_v7  ;;  %8421 = vmatpush1.bf16.xpose.msra.mxu1 %v13984_v6  ;;  %v1363_v6 = vld [vmem:[%s15991_s30 + $0xaf8] sm:$0x11]  ;;  %v14184_v7 = vcombine.low %v1170_v51, %v1362_v52 }
 0x396   : > { %12261 = vmatpush1.bf16.xpose.msra.mxu0 %v14176_v10  ;;  %8452 = vmatprep.mubr.bf16.mxu1 %v2174_v12  ;;  %v13995_v10 = vcombine.high %v1075_v1, %v1267_v2  ;;  %v14187_v12 = vcombine.high %v1171_v5, %v1363_v6 }
 0x397   : > { %12292 = vmatprep.mubr.bf16.mxu0 %v3350_v13  ;;  %8460 = vmatprep.subr.bf16.mxu1 %v13987_v14  ;;  %v2209_v13 = vrot.slane %v2193_v60, %v15997_v11  ;;  %v1076_v14 = vld [vmem:[%s15991_s30 + $0x200] sm:$0xff] }
 0x398   : > { %12300 = vmatprep.subr.bf16.mxu0 %v14179_v15  ;;  %v1268_v15 = vld [vmem:[%s15991_s30 + $0x800] sm:$0x11] }
 0x399   : > { %v2225_v31 = vcombine.high %v2209_v13, %v2209_v13 }
 0x3a0   : > { %8453 = vmatmul.mubr.bf16.vlgmr.msra.gmra.mrb[0].mxu1 %v2160_v16  ;;  %v13994_v16 = vcombine.low %v1075_v1, %v1267_v2  ;;  %v1175_v2 = vld [vmem:[%s15991_s30 + $0x518] sm:$0xff] }
 0x3a1   : > { %12293 = vmatmul.mubr.bf16.vlgmr.msra.gmra.mrb[0].mxu0 %v3336_v20  ;;  %8461 = vmatpush1.bf16.xpose.msra.mxu1 %v13986_v19  ;;  %v1364_v19 = vld [vmem:[%s15991_s30 + $0xb00] sm:$0x11]  ;;  %v14186_v20 = vcombine.low %v1171_v5, %v1363_v6 }
 0x3a2   : > { %12301 = vmatpush1.bf16.xpose.msra.mxu0 %v14178_v23  ;;  %8492 = vmatprep.mubr.bf16.mxu1 %v2178_v24  ;;  %v13997_v23 = vcombine.high %v1076_v14, %v1268_v15  ;;  %v980_v24 = vld [vmem:[%s16004_s6 + $0x80] sm:$0xff] }
 0x3a3   : > { %12332 = vmatprep.mubr.bf16.mxu0 %v3354_v25  ;;  %8500 = vmatprep.subr.bf16.mxu1 %v13989_v26  ;;  %v14189_v25 = vcombine.high %v1172_v18, %v1364_v19  ;;  %v1004_v26 = vld [vmem:[%s16004_s6 + $0x140] sm:$0xff]  ;;  %v2235_v27 = vrot.slane %v980_v24, %v15997_v11  ;;  %v2228_v52 = vcombine.high %v980_v24, %v980_v24 }
 0x3a4   : > { %12340 = vmatprep.subr.bf16.mxu0 %v14181_v28  ;;  %v3411_v28 = vrot.slane %v1004_v26, %v15997_v11  ;;  %v3404_v55 = vcombine.high %v1004_v26, %v1004_v26 }
 0x3a5   : > { %v2243_v29 = vcombine.high %v2235_v27, %v2235_v27 }
 0x3a6   : > { %v3419_v30 = vcombine.high %v3411_v28, %v3411_v28  ;;  %v3427_v47 = vrot.slane %v3411_v28, %v15997_v11  ;;  %v3418_v58 = vrot.slane %v3404_v55, %v15997_v11 }
 0x3a7   : > { %v2265_v39 = vrot.slane %v2243_v29, %v15997_v11  ;;  %v1081_v29 = vld [vmem:[%s15991_s30 + $0x228] sm:$0xff] }
 0x3a8   : > { %v3441_v40 = vrot.slane %v3419_v30, %v15997_v11  ;;  %v3420_v60 = vcombine.high %v3418_v58, %v3418_v58  ;;  %v3449_v1 = vcombine.high %v3427_v47, %v3427_v47  ;;  %v1273_v30 = vld [vmem:[%s15991_s30 + $0x828] sm:$0x11] }
 0x3a9   : > { %v2275_v51 = vcombine.high %v2265_v39, %v2265_v39 }
 0x3aa   : > { %v3448_v6 = vrot.slane %v3420_v60, %v15997_v11  ;;  %v1275_v60 = vld [vmem:[%s15991_s30 + $0x838] sm:$0x11] }
 0x3ac   : > { %8493 = vmatmul.mubr.bf16.vlgmr.msra.gmra.mrb[0].mxu1 %v2176_v34  ;;  %v13996_v34 = vcombine.low %v1076_v14, %v1268_v15  ;;  %v3434_v14 = vrot.slane %v3418_v58, %v15997_v11  ;;  %v1176_v15 = vld [vmem:[%s15991_s30 + $0x520] sm:$0xff] }
 0x3ad   : > { %12333 = vmatmul.mubr.bf16.vlgmr.msra.gmra.mrb[0].mxu0 %v3352_v38  ;;  %8501 = vmatpush1.bf16.xpose.msra.mxu1 %v13988_v37  ;;  %v1365_v37 = vld [vmem:[%s15991_s30 + $0xb08] sm:$0x11]  ;;  %v14188_v38 = vcombine.low %v1172_v18, %v1364_v19  ;;  %v3452_v19 = vcombine.high %v3448_v6, %v3448_v6 }
 0x3ae   : > { %12341 = vmatpush1.bf16.xpose.msra.mxu0 %v14180_v41  ;;  %8532 = vmatprep.mubr.bf16.mxu1 %v2216_v42  ;;  %v13999_v41 = vcombine.high %v1077_v32, %v1269_v33  ;;  %v14191_v42 = vcombine.high %v1173_v36, %v1365_v37 }
 0x3af   : > { %12372 = vmatprep.mubr.bf16.mxu0 %v3392_v43  ;;  %8540 = vmatprep.subr.bf16.mxu1 %v13991_v44  ;;  %v2251_v43 = vrot.slane %v2235_v27, %v15997_v11  ;;  %v1078_v44 = vld [vmem:[%s15991_s30 + $0x210] sm:$0xff] }
 0x3b0   : > { %12380 = vmatprep.subr.bf16.mxu0 %v14183_v45  ;;  %v1270_v45 = vld [vmem:[%s15991_s30 + $0x810] sm:$0x11] }
 0x3b1   : > { %v2273_v61 = vcombine.high %v2251_v43, %v2251_v43 }
 0x3b8   : > { %8533 = vmatmul.mubr.bf16.vlgmr.msra.gmra.mrb[0].mxu1 %v2202_v46  ;;  %v13998_v46 = vcombine.low %v1077_v32, %v1269_v33  ;;  %v3450_v32 = vcombine.high %v3434_v14, %v3434_v14  ;;  %v1177_v33 = vld [vmem:[%s15991_s30 + $0x528] sm:$0xff] }
 0x3b9   : > { %12373 = vmatmul.mubr.bf16.vlgmr.msra.gmra.mrb[0].mxu0 %v3378_v50  ;;  %8541 = vmatpush1.bf16.xpose.msra.mxu1 %v13990_v49  ;;  %v1366_v49 = vld [vmem:[%s15991_s30 + $0xb10] sm:$0x11]  ;;  %v14190_v50 = vcombine.low %v1173_v36, %v1365_v37 }
 0x3ba   : > { %12381 = vmatpush1.bf16.xpose.msra.mxu0 %v14182_v53  ;;  %8572 = vmatprep.mubr.bf16.mxu1 %v2226_v54  ;;  %v3451_v53 = vcombine.high %v3441_v40, %v3441_v40  ;;  %v14001_v54 = vcombine.high %v1078_v44, %v1270_v45 }
 0x3bb   : > { %12412 = vmatprep.mubr.bf16.mxu0 %v3402_v56  ;;  %8580 = vmatprep.subr.bf16.mxu1 %v13993_v57  ;;  %v14193_v56 = vcombine.high %v1174_v48, %v1366_v49  ;;  %v2242_v57 = vrot.slane %v2228_v52, %v15997_v11 }
 0x3bc   : > { %12420 = vmatprep.subr.bf16.mxu0 %v14185_v59 }
 0x3bd   : > { %v2244_v59 = vcombine.high %v2242_v57, %v2242_v57 }
 0x3bf   : > { %v2272_v5 = vrot.slane %v2244_v59, %v15997_v11  ;;  %v1083_v59 = vld [vmem:[%s15991_s30 + $0x238] sm:$0xff] }
 0x3c1   : > { %v2276_v18 = vcombine.high %v2272_v5, %v2272_v5 }
 0x3c4   : > { %8573 = vmatmul.mubr.bf16.vlgmr.msra.gmra.mrb[0].mxu1 %v2224_v0  ;;  %v14000_v0 = vcombine.low %v1078_v44, %v1270_v45  ;;  %v1178_v45 = vld [vmem:[%s15991_s30 + $0x530] sm:$0xff] }
 0x3c5   : > { %12413 = vmatmul.mubr.bf16.vlgmr.msra.gmra.mrb[0].mxu0 %v3400_v4  ;;  %8581 = vmatpush1.bf16.xpose.msra.mxu1 %v13992_v3  ;;  %v1367_v3 = vld [vmem:[%s15991_s30 + $0xb18] sm:$0x11]  ;;  %v14192_v4 = vcombine.low %v1174_v48, %v1366_v49 }
 0x3c6   : > { %12421 = vmatpush1.bf16.xpose.msra.mxu0 %v14184_v7  ;;  %8612 = vmatprep.mubr.bf16.mxu1 %v2223_v8  ;;  %v14003_v7 = vcombine.high %v1079_v62, %v1271_v63  ;;  %v14195_v8 = vcombine.high %v1175_v2, %v1367_v3 }
 0x3c7   : > { %12452 = vmatprep.mubr.bf16.mxu0 %v3399_v9  ;;  %8620 = vmatprep.subr.bf16.mxu1 %v13995_v10  ;;  %v2258_v9 = vrot.slane %v2242_v57, %v15997_v11  ;;  %v1080_v10 = vld [vmem:[%s15991_s30 + $0x220] sm:$0xff] }
 0x3c8   : > { %12460 = vmatprep.subr.bf16.mxu0 %v14187_v12  ;;  %v1272_v12 = vld [vmem:[%s15991_s30 + $0x820] sm:$0x11] }
 0x3c9   : > { %v2274_v28 = vcombine.high %v2258_v9, %v2258_v9 }
 0x3d0   : > { %8613 = vmatmul.mubr.bf16.vlgmr.msra.gmra.mrb[0].mxu1 %v2209_v13  ;;  %v14002_v13 = vcombine.low %v1079_v62, %v1271_v63  ;;  %v1179_v63 = vld [vmem:[%s15991_s30 + $0x538] sm:$0xff] }
 0x3d1   : > { %12453 = vmatmul.mubr.bf16.vlgmr.msra.gmra.mrb[0].mxu0 %v3385_v17  ;;  %8621 = vmatpush1.bf16.xpose.msra.mxu1 %v13994_v16  ;;  %v1368_v16 = vld [vmem:[%s15991_s30 + $0xb20] sm:$0x11]  ;;  %v14194_v17 = vcombine.low %v1175_v2, %v1367_v3 }
 0x3d2   : > { %12461 = vmatpush1.bf16.xpose.msra.mxu0 %v14186_v20  ;;  %8652 = vmatprep.mubr.bf16.mxu1 %v2227_v21  ;;  %v14005_v20 = vcombine.high %v1080_v10, %v1272_v12  ;;  %v981_v21 = vld [vmem:[%s16004_s6 + $0x88] sm:$0xff] }
 0x3d3   : > { %12492 = vmatprep.mubr.bf16.mxu0 %v3403_v22  ;;  %8660 = vmatprep.subr.bf16.mxu1 %v13997_v23  ;;  %v14197_v22 = vcombine.high %v1176_v15, %v1368_v16  ;;  %v1005_v23 = vld [vmem:[%s16004_s6 + $0x148] sm:$0xff]  ;;  %v2284_v24 = vrot.slane %v981_v21, %v15997_v11  ;;  %v2277_v49 = vcombine.high %v981_v21, %v981_v21 }
 0x3d4   : > { %12500 = vmatprep.subr.bf16.mxu0 %v14189_v25  ;;  %v3460_v25 = vrot.slane %v1005_v23, %v15997_v11  ;;  %v3453_v52 = vcombine.high %v1005_v23, %v1005_v23 }
 0x3d5   : > { %v2292_v26 = vcombine.high %v2284_v24, %v2284_v24 }
 0x3d6   : > { %v3468_v27 = vcombine.high %v3460_v25, %v3460_v25  ;;  %v3476_v44 = vrot.slane %v3460_v25, %v15997_v11  ;;  %v3467_v55 = vrot.slane %v3453_v52, %v15997_v11 }
 0x3d7   : > { %v2314_v36 = vrot.slane %v2292_v26, %v15997_v11  ;;  %v1085_v26 = vld [vmem:[%s15991_s30 + $0x248] sm:$0xff] }
 0x3d8   : > { %v3490_v37 = vrot.slane %v3468_v27, %v15997_v11  ;;  %v3469_v57 = vcombine.high %v3467_v55, %v3467_v55  ;;  %v3498_v62 = vcombine.high %v3476_v44, %v3476_v44  ;;  %v1277_v27 = vld [vmem:[%s15991_s30 + $0x848] sm:$0x11] }
 0x3d9   : > { %v2324_v48 = vcombine.high %v2314_v36, %v2314_v36 }
 0x3da   : > { %v3497_v3 = vrot.slane %v3469_v57, %v15997_v11  ;;  %v1279_v57 = vld [vmem:[%s15991_s30 + $0x858] sm:$0x11] }
 0x3dc   : > { %8653 = vmatmul.mubr.bf16.vlgmr.msra.gmra.mrb[0].mxu1 %v2225_v31  ;;  %v14004_v31 = vcombine.low %v1080_v10, %v1272_v12  ;;  %v3483_v10 = vrot.slane %v3467_v55, %v15997_v11  ;;  %v1180_v12 = vld [vmem:[%s15991_s30 + $0x540] sm:$0xff] }
 0x3dd   : > { %12493 = vmatmul.mubr.bf16.vlgmr.msra.gmra.mrb[0].mxu0 %v3401_v35  ;;  %8661 = vmatpush1.bf16.xpose.msra.mxu1 %v13996_v34  ;;  %v1369_v34 = vld [vmem:[%s15991_s30 + $0xb28] sm:$0x11]  ;;  %v14196_v35 = vcombine.low %v1176_v15, %v1368_v16  ;;  %v3501_v16 = vcombine.high %v3497_v3, %v3497_v3 }
 0x3de   : > { %12501 = vmatpush1.bf16.xpose.msra.mxu0 %v14188_v38  ;;  %8692 = vmatprep.mubr.bf16.mxu1 %v2265_v39  ;;  %v14007_v38 = vcombine.high %v1081_v29, %v1273_v30  ;;  %v14199_v39 = vcombine.high %v1177_v33, %v1369_v34 }
 0x3df   : > { %12532 = vmatprep.mubr.bf16.mxu0 %v3441_v40  ;;  %8700 = vmatprep.subr.bf16.mxu1 %v13999_v41  ;;  %v2300_v40 = vrot.slane %v2284_v24, %v15997_v11  ;;  %v1082_v41 = vld [vmem:[%s15991_s30 + $0x230] sm:$0xff] }
 0x3e0   : > { %12540 = vmatprep.subr.bf16.mxu0 %v14191_v42  ;;  %v1274_v42 = vld [vmem:[%s15991_s30 + $0x830] sm:$0x11] }
 0x3e1   : > { %v2322_v58 = vcombine.high %v2300_v40, %v2300_v40 }
 0x3e8   : > { %8693 = vmatmul.mubr.bf16.vlgmr.msra.gmra.mrb[0].mxu1 %v2251_v43  ;;  %v14006_v43 = vcombine.low %v1081_v29, %v1273_v30  ;;  %v3499_v29 = vcombine.high %v3483_v10, %v3483_v10  ;;  %v1181_v30 = vld [vmem:[%s15991_s30 + $0x548] sm:$0xff] }
 0x3e9   : > { %12533 = vmatmul.mubr.bf16.vlgmr.msra.gmra.mrb[0].mxu0 %v3427_v47  ;;  %8701 = vmatpush1.bf16.xpose.msra.mxu1 %v13998_v46  ;;  %v1370_v46 = vld [vmem:[%s15991_s30 + $0xb30] sm:$0x11]  ;;  %v14198_v47 = vcombine.low %v1177_v33, %v1369_v34 }
 0x3ea   : > { %12541 = vmatpush1.bf16.xpose.msra.mxu0 %v14190_v50  ;;  %8732 = vmatprep.mubr.bf16.mxu1 %v2275_v51  ;;  %v3500_v50 = vcombine.high %v3490_v37, %v3490_v37  ;;  %v14009_v51 = vcombine.high %v1082_v41, %v1274_v42 }
 0x3eb   : > { %12572 = vmatprep.mubr.bf16.mxu0 %v3451_v53  ;;  %8740 = vmatprep.subr.bf16.mxu1 %v14001_v54  ;;  %v14201_v53 = vcombine.high %v1178_v45, %v1370_v46  ;;  %v2291_v54 = vrot.slane %v2277_v49, %v15997_v11 }
 0x3ec   : > { %12580 = vmatprep.subr.bf16.mxu0 %v14193_v56 }
 0x3ed   : > { %v2293_v56 = vcombine.high %v2291_v54, %v2291_v54 }
 0x3ef   : > { %v2321_v2 = vrot.slane %v2293_v56, %v15997_v11  ;;  %v1087_v56 = vld [vmem:[%s15991_s30 + $0x258] sm:$0xff] }
 0x3f1   : > { %v2325_v15 = vcombine.high %v2321_v2, %v2321_v2 }
 0x3f4   : > { %8733 = vmatmul.mubr.bf16.vlgmr.msra.gmra.mrb[0].mxu1 %v2273_v61  ;;  %v14008_v61 = vcombine.low %v1082_v41, %v1274_v42  ;;  %v1182_v42 = vld [vmem:[%s15991_s30 + $0x550] sm:$0xff] }
 0x3f5   : > { %12573 = vmatmul.mubr.bf16.vlgmr.msra.gmra.mrb[0].mxu0 %v3449_v1  ;;  %8741 = vmatpush1.bf16.xpose.msra.mxu1 %v14000_v0  ;;  %v1371_v0 = vld [vmem:[%s15991_s30 + $0xb38] sm:$0x11]  ;;  %v14200_v1 = vcombine.low %v1178_v45, %v1370_v46 }
 0x3f6   : > { %12581 = vmatpush1.bf16.xpose.msra.mxu0 %v14192_v4  ;;  %8772 = vmatprep.mubr.bf16.mxu1 %v2272_v5  ;;  %v14011_v4 = vcombine.high %v1083_v59, %v1275_v60  ;;  %v14203_v5 = vcombine.high %v1179_v63, %v1371_v0 }
 0x3f7   : > { %12612 = vmatprep.mubr.bf16.mxu0 %v3448_v6  ;;  %8780 = vmatprep.subr.bf16.mxu1 %v14003_v7  ;;  %v2307_v6 = vrot.slane %v2291_v54, %v15997_v11  ;;  %v1084_v7 = vld [vmem:[%s15991_s30 + $0x240] sm:$0xff] }
 0x3f8   : > { %12620 = vmatprep.subr.bf16.mxu0 %v14195_v8  ;;  %v1276_v8 = vld [vmem:[%s15991_s30 + $0x840] sm:$0x11] }
 0x3f9   : > { %v2323_v25 = vcombine.high %v2307_v6, %v2307_v6 }
 0x400   : > { %8773 = vmatmul.mubr.bf16.vlgmr.msra.gmra.mrb[0].mxu1 %v2258_v9  ;;  %v14010_v9 = vcombine.low %v1083_v59, %v1275_v60  ;;  %v1183_v60 = vld [vmem:[%s15991_s30 + $0x558] sm:$0xff] }
 0x401   : > { %12613 = vmatmul.mubr.bf16.vlgmr.msra.gmra.mrb[0].mxu0 %v3434_v14  ;;  %8781 = vmatpush1.bf16.xpose.msra.mxu1 %v14002_v13  ;;  %v1372_v13 = vld [vmem:[%s15991_s30 + $0xb40] sm:$0x11]  ;;  %v14202_v14 = vcombine.low %v1179_v63, %v1371_v0 }
 0x402   : > { %12621 = vmatpush1.bf16.xpose.msra.mxu0 %v14194_v17  ;;  %8812 = vmatprep.mubr.bf16.mxu1 %v2276_v18  ;;  %v14013_v17 = vcombine.high %v1084_v7, %v1276_v8  ;;  %v982_v18 = vld [vmem:[%s16004_s6 + $0x90] sm:$0xff] }
 0x403   : > { %12652 = vmatprep.mubr.bf16.mxu0 %v3452_v19  ;;  %8820 = vmatprep.subr.bf16.mxu1 %v14005_v20  ;;  %v14205_v19 = vcombine.high %v1180_v12, %v1372_v13  ;;  %v1006_v20 = vld [vmem:[%s16004_s6 + $0x150] sm:$0xff]  ;;  %v2333_v21 = vrot.slane %v982_v18, %v15997_v11  ;;  %v2326_v46 = vcombine.high %v982_v18, %v982_v18 }
 0x404   : > { %12660 = vmatprep.subr.bf16.mxu0 %v14197_v22  ;;  %v3509_v22 = vrot.slane %v1006_v20, %v15997_v11  ;;  %v3502_v49 = vcombine.high %v1006_v20, %v1006_v20 }
 0x405   : > { %v2341_v23 = vcombine.high %v2333_v21, %v2333_v21 }
 0x406   : > { %v3517_v24 = vcombine.high %v3509_v22, %v3509_v22  ;;  %v3525_v41 = vrot.slane %v3509_v22, %v15997_v11  ;;  %v3516_v52 = vrot.slane %v3502_v49, %v15997_v11 }
 0x407   : > { %v2363_v33 = vrot.slane %v2341_v23, %v15997_v11  ;;  %v1089_v23 = vld [vmem:[%s15991_s30 + $0x268] sm:$0xff] }
 0x408   : > { %v3539_v34 = vrot.slane %v3517_v24, %v15997_v11  ;;  %v3518_v54 = vcombine.high %v3516_v52, %v3516_v52  ;;  %v3547_v59 = vcombine.high %v3525_v41, %v3525_v41  ;;  %v1281_v24 = vld [vmem:[%s15991_s30 + $0x868] sm:$0x11] }
 0x409   : > { %v2373_v45 = vcombine.high %v2363_v33, %v2363_v33 }
 0x40a   : > { %v3546_v0 = vrot.slane %v3518_v54, %v15997_v11  ;;  %v1283_v54 = vld [vmem:[%s15991_s30 + $0x878] sm:$0x11] }
 0x40c   : > { %8813 = vmatmul.mubr.bf16.vlgmr.msra.gmra.mrb[0].mxu1 %v2274_v28  ;;  %v14012_v28 = vcombine.low %v1084_v7, %v1276_v8  ;;  %v3532_v7 = vrot.slane %v3516_v52, %v15997_v11  ;;  %v1184_v8 = vld [vmem:[%s15991_s30 + $0x560] sm:$0xff] }
 0x40d   : > { %12653 = vmatmul.mubr.bf16.vlgmr.msra.gmra.mrb[0].mxu0 %v3450_v32  ;;  %8821 = vmatpush1.bf16.xpose.msra.mxu1 %v14004_v31  ;;  %v1373_v31 = vld [vmem:[%s15991_s30 + $0xb48] sm:$0x11]  ;;  %v14204_v32 = vcombine.low %v1180_v12, %v1372_v13  ;;  %v3550_v13 = vcombine.high %v3546_v0, %v3546_v0 }
 0x40e   : > { %12661 = vmatpush1.bf16.xpose.msra.mxu0 %v14196_v35  ;;  %8852 = vmatprep.mubr.bf16.mxu1 %v2314_v36  ;;  %v14015_v35 = vcombine.high %v1085_v26, %v1277_v27  ;;  %v14207_v36 = vcombine.high %v1181_v30, %v1373_v31 }
 0x40f   : > { %12692 = vmatprep.mubr.bf16.mxu0 %v3490_v37  ;;  %8860 = vmatprep.subr.bf16.mxu1 %v14007_v38  ;;  %v2349_v37 = vrot.slane %v2333_v21, %v15997_v11  ;;  %v1086_v38 = vld [vmem:[%s15991_s30 + $0x250] sm:$0xff] }
 0x410   : > { %12700 = vmatprep.subr.bf16.mxu0 %v14199_v39  ;;  %v1278_v39 = vld [vmem:[%s15991_s30 + $0x850] sm:$0x11] }
 0x411   : > { %v2371_v55 = vcombine.high %v2349_v37, %v2349_v37 }
 0x418   : > { %8853 = vmatmul.mubr.bf16.vlgmr.msra.gmra.mrb[0].mxu1 %v2300_v40  ;;  %v14014_v40 = vcombine.low %v1085_v26, %v1277_v27  ;;  %v3548_v26 = vcombine.high %v3532_v7, %v3532_v7  ;;  %v1185_v27 = vld [vmem:[%s15991_s30 + $0x568] sm:$0xff] }
 0x419   : > { %12693 = vmatmul.mubr.bf16.vlgmr.msra.gmra.mrb[0].mxu0 %v3476_v44  ;;  %8861 = vmatpush1.bf16.xpose.msra.mxu1 %v14006_v43  ;;  %v1374_v43 = vld [vmem:[%s15991_s30 + $0xb50] sm:$0x11]  ;;  %v14206_v44 = vcombine.low %v1181_v30, %v1373_v31 }
 0x41a   : > { %12701 = vmatpush1.bf16.xpose.msra.mxu0 %v14198_v47  ;;  %8892 = vmatprep.mubr.bf16.mxu1 %v2324_v48  ;;  %v3549_v47 = vcombine.high %v3539_v34, %v3539_v34  ;;  %v14017_v48 = vcombine.high %v1086_v38, %v1278_v39 }
 0x41b   : > { %12732 = vmatprep.mubr.bf16.mxu0 %v3500_v50  ;;  %8900 = vmatprep.subr.bf16.mxu1 %v14009_v51  ;;  %v14209_v50 = vcombine.high %v1182_v42, %v1374_v43  ;;  %v2340_v51 = vrot.slane %v2326_v46, %v15997_v11 }
 0x41c   : > { %12740 = vmatprep.subr.bf16.mxu0 %v14201_v53 }
 0x41d   : > { %v2342_v53 = vcombine.high %v2340_v51, %v2340_v51 }
 0x41f   : > { %v2370_v63 = vrot.slane %v2342_v53, %v15997_v11  ;;  %v1091_v53 = vld [vmem:[%s15991_s30 + $0x278] sm:$0xff] }
 0x421   : > { %v2374_v12 = vcombine.high %v2370_v63, %v2370_v63 }
 0x424   : > { %8893 = vmatmul.mubr.bf16.vlgmr.msra.gmra.mrb[0].mxu1 %v2322_v58  ;;  %v14016_v58 = vcombine.low %v1086_v38, %v1278_v39  ;;  %v1186_v39 = vld [vmem:[%s15991_s30 + $0x570] sm:$0xff] }
 0x425   : > { %12733 = vmatmul.mubr.bf16.vlgmr.msra.gmra.mrb[0].mxu0 %v3498_v62  ;;  %8901 = vmatpush1.bf16.xpose.msra.mxu1 %v14008_v61  ;;  %v1375_v61 = vld [vmem:[%s15991_s30 + $0xb58] sm:$0x11]  ;;  %v14208_v62 = vcombine.low %v1182_v42, %v1374_v43 }
 0x426   : > { %12741 = vmatpush1.bf16.xpose.msra.mxu0 %v14200_v1  ;;  %8932 = vmatprep.mubr.bf16.mxu1 %v2321_v2  ;;  %v14019_v1 = vcombine.high %v1087_v56, %v1279_v57  ;;  %v14211_v2 = vcombine.high %v1183_v60, %v1375_v61 }
 0x427   : > { %12772 = vmatprep.mubr.bf16.mxu0 %v3497_v3  ;;  %8940 = vmatprep.subr.bf16.mxu1 %v14011_v4  ;;  %v2356_v3 = vrot.slane %v2340_v51, %v15997_v11  ;;  %v1088_v4 = vld [vmem:[%s15991_s30 + $0x260] sm:$0xff] }
 0x428   : > { %12780 = vmatprep.subr.bf16.mxu0 %v14203_v5  ;;  %v1280_v5 = vld [vmem:[%s15991_s30 + $0x860] sm:$0x11] }
 0x429   : > { %v2372_v22 = vcombine.high %v2356_v3, %v2356_v3 }
 0x430   : > { %8933 = vmatmul.mubr.bf16.vlgmr.msra.gmra.mrb[0].mxu1 %v2307_v6  ;;  %v14018_v6 = vcombine.low %v1087_v56, %v1279_v57  ;;  %v1187_v57 = vld [vmem:[%s15991_s30 + $0x578] sm:$0xff] }
 0x431   : > { %12773 = vmatmul.mubr.bf16.vlgmr.msra.gmra.mrb[0].mxu0 %v3483_v10  ;;  %8941 = vmatpush1.bf16.xpose.msra.mxu1 %v14010_v9  ;;  %v1376_v9 = vld [vmem:[%s15991_s30 + $0xb60] sm:$0x11]  ;;  %v14210_v10 = vcombine.low %v1183_v60, %v1375_v61 }
 0x432   : > { %12781 = vmatpush1.bf16.xpose.msra.mxu0 %v14202_v14  ;;  %8972 = vmatprep.mubr.bf16.mxu1 %v2325_v15  ;;  %v14021_v14 = vcombine.high %v1088_v4, %v1280_v5  ;;  %v983_v15 = vld [vmem:[%s16004_s6 + $0x98] sm:$0xff] }
 0x433   : > { %12812 = vmatprep.mubr.bf16.mxu0 %v3501_v16  ;;  %8980 = vmatprep.subr.bf16.mxu1 %v14013_v17  ;;  %v14213_v16 = vcombine.high %v1184_v8, %v1376_v9  ;;  %v1007_v17 = vld [vmem:[%s16004_s6 + $0x158] sm:$0xff]  ;;  %v2382_v18 = vrot.slane %v983_v15, %v15997_v11  ;;  %v2375_v43 = vcombine.high %v983_v15, %v983_v15 }
 0x434   : > { %12820 = vmatprep.subr.bf16.mxu0 %v14205_v19  ;;  %v3558_v19 = vrot.slane %v1007_v17, %v15997_v11  ;;  %v3551_v46 = vcombine.high %v1007_v17, %v1007_v17 }
 0x435   : > { %v2390_v20 = vcombine.high %v2382_v18, %v2382_v18 }
 0x436   : > { %v3566_v21 = vcombine.high %v3558_v19, %v3558_v19  ;;  %v3574_v38 = vrot.slane %v3558_v19, %v15997_v11  ;;  %v3565_v49 = vrot.slane %v3551_v46, %v15997_v11 }
 0x437   : > { %v2412_v30 = vrot.slane %v2390_v20, %v15997_v11  ;;  %v1093_v20 = vld [vmem:[%s15991_s30 + $0x288] sm:$0xff] }
 0x438   : > { %v3588_v31 = vrot.slane %v3566_v21, %v15997_v11  ;;  %v3567_v51 = vcombine.high %v3565_v49, %v3565_v49  ;;  %v3596_v56 = vcombine.high %v3574_v38, %v3574_v38  ;;  %v1285_v21 = vld [vmem:[%s15991_s30 + $0x888] sm:$0x11] }
 0x439   : > { %v2422_v42 = vcombine.high %v2412_v30, %v2412_v30 }
 0x43a   : > { %v3595_v61 = vrot.slane %v3567_v51, %v15997_v11  ;;  %v1287_v51 = vld [vmem:[%s15991_s30 + $0x898] sm:$0x11] }
 0x43c   : > { %8973 = vmatmul.mubr.bf16.vlgmr.msra.gmra.mrb[0].mxu1 %v2323_v25  ;;  %v14020_v25 = vcombine.low %v1088_v4, %v1280_v5  ;;  %v3581_v4 = vrot.slane %v3565_v49, %v15997_v11  ;;  %v1188_v5 = vld [vmem:[%s15991_s30 + $0x580] sm:$0xff] }
 0x43d   : > { %12813 = vmatmul.mubr.bf16.vlgmr.msra.gmra.mrb[0].mxu0 %v3499_v29  ;;  %8981 = vmatpush1.bf16.xpose.msra.mxu1 %v14012_v28  ;;  %v1377_v28 = vld [vmem:[%s15991_s30 + $0xb68] sm:$0x11]  ;;  %v14212_v29 = vcombine.low %v1184_v8, %v1376_v9  ;;  %v3599_v9 = vcombine.high %v3595_v61, %v3595_v61 }
 0x43e   : > { %12821 = vmatpush1.bf16.xpose.msra.mxu0 %v14204_v32  ;;  %9012 = vmatprep.mubr.bf16.mxu1 %v2363_v33  ;;  %v14023_v32 = vcombine.high %v1089_v23, %v1281_v24  ;;  %v14215_v33 = vcombine.high %v1185_v27, %v1377_v28 }
 0x43f   : > { %12852 = vmatprep.mubr.bf16.mxu0 %v3539_v34  ;;  %9020 = vmatprep.subr.bf16.mxu1 %v14015_v35  ;;  %v2398_v34 = vrot.slane %v2382_v18, %v15997_v11  ;;  %v1090_v35 = vld [vmem:[%s15991_s30 + $0x270] sm:$0xff] }
 0x440   : > { %12860 = vmatprep.subr.bf16.mxu0 %v14207_v36  ;;  %v1282_v36 = vld [vmem:[%s15991_s30 + $0x870] sm:$0x11] }
 0x441   : > { %v2420_v52 = vcombine.high %v2398_v34, %v2398_v34 }
 0x448   : > { %9013 = vmatmul.mubr.bf16.vlgmr.msra.gmra.mrb[0].mxu1 %v2349_v37  ;;  %v14022_v37 = vcombine.low %v1089_v23, %v1281_v24  ;;  %v3597_v23 = vcombine.high %v3581_v4, %v3581_v4  ;;  %v1189_v24 = vld [vmem:[%s15991_s30 + $0x588] sm:$0xff] }
 0x449   : > { %12853 = vmatmul.mubr.bf16.vlgmr.msra.gmra.mrb[0].mxu0 %v3525_v41  ;;  %9021 = vmatpush1.bf16.xpose.msra.mxu1 %v14014_v40  ;;  %v1378_v40 = vld [vmem:[%s15991_s30 + $0xb70] sm:$0x11]  ;;  %v14214_v41 = vcombine.low %v1185_v27, %v1377_v28 }
 0x44a   : > { %12861 = vmatpush1.bf16.xpose.msra.mxu0 %v14206_v44  ;;  %9052 = vmatprep.mubr.bf16.mxu1 %v2373_v45  ;;  %v3598_v44 = vcombine.high %v3588_v31, %v3588_v31  ;;  %v14025_v45 = vcombine.high %v1090_v35, %v1282_v36 }
 0x44b   : > { %12892 = vmatprep.mubr.bf16.mxu0 %v3549_v47  ;;  %9060 = vmatprep.subr.bf16.mxu1 %v14017_v48  ;;  %v14217_v47 = vcombine.high %v1186_v39, %v1378_v40  ;;  %v2389_v48 = vrot.slane %v2375_v43, %v15997_v11 }
 0x44c   : > { %12900 = vmatprep.subr.bf16.mxu0 %v14209_v50 }
 0x44d   : > { %v2391_v50 = vcombine.high %v2389_v48, %v2389_v48 }
 0x44f   : > { %v2419_v60 = vrot.slane %v2391_v50, %v15997_v11  ;;  %v1095_v50 = vld [vmem:[%s15991_s30 + $0x298] sm:$0xff] }
 0x451   : > { %v2423_v8 = vcombine.high %v2419_v60, %v2419_v60 }
 0x454   : > { %9053 = vmatmul.mubr.bf16.vlgmr.msra.gmra.mrb[0].mxu1 %v2371_v55  ;;  %v14024_v55 = vcombine.low %v1090_v35, %v1282_v36  ;;  %v1190_v36 = vld [vmem:[%s15991_s30 + $0x590] sm:$0xff] }
 0x455   : > { %12893 = vmatmul.mubr.bf16.vlgmr.msra.gmra.mrb[0].mxu0 %v3547_v59  ;;  %9061 = vmatpush1.bf16.xpose.msra.mxu1 %v14016_v58  ;;  %v1379_v58 = vld [vmem:[%s15991_s30 + $0xb78] sm:$0x11]  ;;  %v14216_v59 = vcombine.low %v1186_v39, %v1378_v40 }
 0x456   : > { %12901 = vmatpush1.bf16.xpose.msra.mxu0 %v14208_v62  ;;  %9092 = vmatprep.mubr.bf16.mxu1 %v2370_v63  ;;  %v14027_v62 = vcombine.high %v1091_v53, %v1283_v54  ;;  %v14219_v63 = vcombine.high %v1187_v57, %v1379_v58 }
 0x457   : > { %12932 = vmatprep.mubr.bf16.mxu0 %v3546_v0  ;;  %9100 = vmatprep.subr.bf16.mxu1 %v14019_v1  ;;  %v2405_v0 = vrot.slane %v2389_v48, %v15997_v11  ;;  %v1092_v1 = vld [vmem:[%s15991_s30 + $0x280] sm:$0xff] }
 0x458   : > { %12940 = vmatprep.subr.bf16.mxu0 %v14211_v2  ;;  %v1284_v2 = vld [vmem:[%s15991_s30 + $0x880] sm:$0x11] }
 0x459   : > { %v2421_v19 = vcombine.high %v2405_v0, %v2405_v0 }
 0x460   : > { %9093 = vmatmul.mubr.bf16.vlgmr.msra.gmra.mrb[0].mxu1 %v2356_v3  ;;  %v14026_v3 = vcombine.low %v1091_v53, %v1283_v54  ;;  %v1191_v54 = vld [vmem:[%s15991_s30 + $0x598] sm:$0xff] }
 0x461   : > { %12933 = vmatmul.mubr.bf16.vlgmr.msra.gmra.mrb[0].mxu0 %v3532_v7  ;;  %9101 = vmatpush1.bf16.xpose.msra.mxu1 %v14018_v6  ;;  %v1380_v6 = vld [vmem:[%s15991_s30 + $0xb80] sm:$0x11]  ;;  %v14218_v7 = vcombine.low %v1187_v57, %v1379_v58 }
 0x462   : > { %12941 = vmatpush1.bf16.xpose.msra.mxu0 %v14210_v10  ;;  %9132 = vmatprep.mubr.bf16.mxu1 %v2374_v12  ;;  %v14029_v10 = vcombine.high %v1092_v1, %v1284_v2  ;;  %v984_v12 = vld [vmem:[%s16004_s6 + $0xa0] sm:$0xff] }
 0x463   : > { %12972 = vmatprep.mubr.bf16.mxu0 %v3550_v13  ;;  %9140 = vmatprep.subr.bf16.mxu1 %v14021_v14  ;;  %v14221_v13 = vcombine.high %v1188_v5, %v1380_v6  ;;  %v1008_v14 = vld [vmem:[%s16004_s6 + $0x160] sm:$0xff]  ;;  %v2431_v15 = vrot.slane %v984_v12, %v15997_v11  ;;  %v2424_v40 = vcombine.high %v984_v12, %v984_v12 }
 0x464   : > { %12980 = vmatprep.subr.bf16.mxu0 %v14213_v16  ;;  %v3607_v16 = vrot.slane %v1008_v14, %v15997_v11  ;;  %v3600_v43 = vcombine.high %v1008_v14, %v1008_v14 }
 0x465   : > { %v2439_v17 = vcombine.high %v2431_v15, %v2431_v15 }
 0x466   : > { %v3615_v18 = vcombine.high %v3607_v16, %v3607_v16  ;;  %v3623_v35 = vrot.slane %v3607_v16, %v15997_v11  ;;  %v3614_v46 = vrot.slane %v3600_v43, %v15997_v11 }
 0x467   : > { %v2461_v27 = vrot.slane %v2439_v17, %v15997_v11  ;;  %v1097_v17 = vld [vmem:[%s15991_s30 + $0x2a8] sm:$0xff] }
 0x468   : > { %v3637_v28 = vrot.slane %v3615_v18, %v15997_v11  ;;  %v3616_v48 = vcombine.high %v3614_v46, %v3614_v46  ;;  %v3645_v53 = vcombine.high %v3623_v35, %v3623_v35  ;;  %v1289_v18 = vld [vmem:[%s15991_s30 + $0x8a8] sm:$0x11] }
 0x469   : > { %v2471_v39 = vcombine.high %v2461_v27, %v2461_v27 }
 0x46a   : > { %v3644_v58 = vrot.slane %v3616_v48, %v15997_v11  ;;  %v1291_v48 = vld [vmem:[%s15991_s30 + $0x8b8] sm:$0x11] }
 0x46c   : > { %9133 = vmatmul.mubr.bf16.vlgmr.msra.gmra.mrb[0].mxu1 %v2372_v22  ;;  %v14028_v22 = vcombine.low %v1092_v1, %v1284_v2  ;;  %v3630_v1 = vrot.slane %v3614_v46, %v15997_v11  ;;  %v1192_v2 = vld [vmem:[%s15991_s30 + $0x5a0] sm:$0xff] }
 0x46d   : > { %12973 = vmatmul.mubr.bf16.vlgmr.msra.gmra.mrb[0].mxu0 %v3548_v26  ;;  %9141 = vmatpush1.bf16.xpose.msra.mxu1 %v14020_v25  ;;  %v1381_v25 = vld [vmem:[%s15991_s30 + $0xb88] sm:$0x11]  ;;  %v14220_v26 = vcombine.low %v1188_v5, %v1380_v6  ;;  %v3648_v6 = vcombine.high %v3644_v58, %v3644_v58 }
 0x46e   : > { %12981 = vmatpush1.bf16.xpose.msra.mxu0 %v14212_v29  ;;  %9172 = vmatprep.mubr.bf16.mxu1 %v2412_v30  ;;  %v14031_v29 = vcombine.high %v1093_v20, %v1285_v21  ;;  %v14223_v30 = vcombine.high %v1189_v24, %v1381_v25 }
 0x46f   : > { %13012 = vmatprep.mubr.bf16.mxu0 %v3588_v31  ;;  %9180 = vmatprep.subr.bf16.mxu1 %v14023_v32  ;;  %v2447_v31 = vrot.slane %v2431_v15, %v15997_v11  ;;  %v1094_v32 = vld [vmem:[%s15991_s30 + $0x290] sm:$0xff] }
 0x470   : > { %13020 = vmatprep.subr.bf16.mxu0 %v14215_v33  ;;  %v1286_v33 = vld [vmem:[%s15991_s30 + $0x890] sm:$0x11] }
 0x471   : > { %v2469_v49 = vcombine.high %v2447_v31, %v2447_v31 }
 0x478   : > { %9173 = vmatmul.mubr.bf16.vlgmr.msra.gmra.mrb[0].mxu1 %v2398_v34  ;;  %v14030_v34 = vcombine.low %v1093_v20, %v1285_v21  ;;  %v3646_v20 = vcombine.high %v3630_v1, %v3630_v1  ;;  %v1193_v21 = vld [vmem:[%s15991_s30 + $0x5a8] sm:$0xff] }
 0x479   : > { %13013 = vmatmul.mubr.bf16.vlgmr.msra.gmra.mrb[0].mxu0 %v3574_v38  ;;  %9181 = vmatpush1.bf16.xpose.msra.mxu1 %v14022_v37  ;;  %v1382_v37 = vld [vmem:[%s15991_s30 + $0xb90] sm:$0x11]  ;;  %v14222_v38 = vcombine.low %v1189_v24, %v1381_v25 }
 0x47a   : > { %13021 = vmatpush1.bf16.xpose.msra.mxu0 %v14214_v41  ;;  %9212 = vmatprep.mubr.bf16.mxu1 %v2422_v42  ;;  %v3647_v41 = vcombine.high %v3637_v28, %v3637_v28  ;;  %v14033_v42 = vcombine.high %v1094_v32, %v1286_v33 }
 0x47b   : > { %13052 = vmatprep.mubr.bf16.mxu0 %v3598_v44  ;;  %9220 = vmatprep.subr.bf16.mxu1 %v14025_v45  ;;  %v14225_v44 = vcombine.high %v1190_v36, %v1382_v37  ;;  %v2438_v45 = vrot.slane %v2424_v40, %v15997_v11 }
 0x47c   : > { %13060 = vmatprep.subr.bf16.mxu0 %v14217_v47 }
 0x47d   : > { %v2440_v47 = vcombine.high %v2438_v45, %v2438_v45 }
 0x47f   : > { %v2468_v57 = vrot.slane %v2440_v47, %v15997_v11  ;;  %v1099_v47 = vld [vmem:[%s15991_s30 + $0x2b8] sm:$0xff] }
 0x481   : > { %v2472_v5 = vcombine.high %v2468_v57, %v2468_v57 }
 0x484   : > { %9213 = vmatmul.mubr.bf16.vlgmr.msra.gmra.mrb[0].mxu1 %v2420_v52  ;;  %v14032_v52 = vcombine.low %v1094_v32, %v1286_v33  ;;  %v1194_v33 = vld [vmem:[%s15991_s30 + $0x5b0] sm:$0xff] }
 0x485   : > { %13053 = vmatmul.mubr.bf16.vlgmr.msra.gmra.mrb[0].mxu0 %v3596_v56  ;;  %9221 = vmatpush1.bf16.xpose.msra.mxu1 %v14024_v55  ;;  %v1383_v55 = vld [vmem:[%s15991_s30 + $0xb98] sm:$0x11]  ;;  %v14224_v56 = vcombine.low %v1190_v36, %v1382_v37 }
 0x486   : > { %13061 = vmatpush1.bf16.xpose.msra.mxu0 %v14216_v59  ;;  %9252 = vmatprep.mubr.bf16.mxu1 %v2419_v60  ;;  %v14035_v59 = vcombine.high %v1095_v50, %v1287_v51  ;;  %v14227_v60 = vcombine.high %v1191_v54, %v1383_v55 }
 0x487   : > { %13092 = vmatprep.mubr.bf16.mxu0 %v3595_v61  ;;  %9260 = vmatprep.subr.bf16.mxu1 %v14027_v62  ;;  %v2454_v61 = vrot.slane %v2438_v45, %v15997_v11  ;;  %v1096_v62 = vld [vmem:[%s15991_s30 + $0x2a0] sm:$0xff] }
 0x488   : > { %13100 = vmatprep.subr.bf16.mxu0 %v14219_v63  ;;  %v1288_v63 = vld [vmem:[%s15991_s30 + $0x8a0] sm:$0x11] }
 0x489   : > { %v2470_v16 = vcombine.high %v2454_v61, %v2454_v61 }
 0x490   : > { %9253 = vmatmul.mubr.bf16.vlgmr.msra.gmra.mrb[0].mxu1 %v2405_v0  ;;  %v14034_v0 = vcombine.low %v1095_v50, %v1287_v51  ;;  %v1195_v51 = vld [vmem:[%s15991_s30 + $0x5b8] sm:$0xff] }
 0x491   : > { %13093 = vmatmul.mubr.bf16.vlgmr.msra.gmra.mrb[0].mxu0 %v3581_v4  ;;  %9261 = vmatpush1.bf16.xpose.msra.mxu1 %v14026_v3  ;;  %v1384_v3 = vld [vmem:[%s15991_s30 + $0xba0] sm:$0x11]  ;;  %v14226_v4 = vcombine.low %v1191_v54, %v1383_v55 }
 0x492   : > { %13101 = vmatpush1.bf16.xpose.msra.mxu0 %v14218_v7  ;;  %9292 = vmatprep.mubr.bf16.mxu1 %v2423_v8  ;;  %v14037_v7 = vcombine.high %v1096_v62, %v1288_v63  ;;  %v985_v8 = vld [vmem:[%s16004_s6 + $0xa8] sm:$0xff] }
 0x493   : > { %13132 = vmatprep.mubr.bf16.mxu0 %v3599_v9  ;;  %9300 = vmatprep.subr.bf16.mxu1 %v14029_v10  ;;  %v14229_v9 = vcombine.high %v1192_v2, %v1384_v3  ;;  %v1009_v10 = vld [vmem:[%s16004_s6 + $0x168] sm:$0xff]  ;;  %v2480_v12 = vrot.slane %v985_v8, %v15997_v11  ;;  %v2473_v37 = vcombine.high %v985_v8, %v985_v8 }
 0x494   : > { %13140 = vmatprep.subr.bf16.mxu0 %v14221_v13  ;;  %v3656_v13 = vrot.slane %v1009_v10, %v15997_v11  ;;  %v3649_v40 = vcombine.high %v1009_v10, %v1009_v10 }
 0x495   : > { %v2488_v14 = vcombine.high %v2480_v12, %v2480_v12 }
 0x496   : > { %v3664_v15 = vcombine.high %v3656_v13, %v3656_v13  ;;  %v3672_v32 = vrot.slane %v3656_v13, %v15997_v11  ;;  %v3663_v43 = vrot.slane %v3649_v40, %v15997_v11 }
 0x497   : > { %v2510_v24 = vrot.slane %v2488_v14, %v15997_v11  ;;  %v1101_v14 = vld [vmem:[%s15991_s30 + $0x2c8] sm:$0xff] }
 0x498   : > { %v3686_v25 = vrot.slane %v3664_v15, %v15997_v11  ;;  %v3665_v45 = vcombine.high %v3663_v43, %v3663_v43  ;;  %v3694_v50 = vcombine.high %v3672_v32, %v3672_v32  ;;  %v1293_v15 = vld [vmem:[%s15991_s30 + $0x8c8] sm:$0x11] }
 0x499   : > { %v2520_v36 = vcombine.high %v2510_v24, %v2510_v24 }
 0x49a   : > { %v3693_v55 = vrot.slane %v3665_v45, %v15997_v11  ;;  %v1295_v45 = vld [vmem:[%s15991_s30 + $0x8d8] sm:$0x11] }
 0x49c   : > { %9293 = vmatmul.mubr.bf16.vlgmr.msra.gmra.mrb[0].mxu1 %v2421_v19  ;;  %v14036_v19 = vcombine.low %v1096_v62, %v1288_v63  ;;  %v3679_v62 = vrot.slane %v3663_v43, %v15997_v11  ;;  %v1196_v63 = vld [vmem:[%s15991_s30 + $0x5c0] sm:$0xff] }
 0x49d   : > { %13133 = vmatmul.mubr.bf16.vlgmr.msra.gmra.mrb[0].mxu0 %v3597_v23  ;;  %9301 = vmatpush1.bf16.xpose.msra.mxu1 %v14028_v22  ;;  %v1385_v22 = vld [vmem:[%s15991_s30 + $0xba8] sm:$0x11]  ;;  %v14228_v23 = vcombine.low %v1192_v2, %v1384_v3  ;;  %v3697_v3 = vcombine.high %v3693_v55, %v3693_v55 }
 0x49e   : > { %13141 = vmatpush1.bf16.xpose.msra.mxu0 %v14220_v26  ;;  %9332 = vmatprep.mubr.bf16.mxu1 %v2461_v27  ;;  %v14039_v26 = vcombine.high %v1097_v17, %v1289_v18  ;;  %v14231_v27 = vcombine.high %v1193_v21, %v1385_v22 }
 0x49f   : > { %13172 = vmatprep.mubr.bf16.mxu0 %v3637_v28  ;;  %9340 = vmatprep.subr.bf16.mxu1 %v14031_v29  ;;  %v2496_v28 = vrot.slane %v2480_v12, %v15997_v11  ;;  %v1098_v29 = vld [vmem:[%s15991_s30 + $0x2b0] sm:$0xff] }
 0x4a0   : > { %13180 = vmatprep.subr.bf16.mxu0 %v14223_v30  ;;  %v1290_v30 = vld [vmem:[%s15991_s30 + $0x8b0] sm:$0x11] }
 0x4a1   : > { %v2518_v46 = vcombine.high %v2496_v28, %v2496_v28 }
 0x4a8   : > { %9333 = vmatmul.mubr.bf16.vlgmr.msra.gmra.mrb[0].mxu1 %v2447_v31  ;;  %v14038_v31 = vcombine.low %v1097_v17, %v1289_v18  ;;  %v3695_v17 = vcombine.high %v3679_v62, %v3679_v62  ;;  %v1197_v18 = vld [vmem:[%s15991_s30 + $0x5c8] sm:$0xff] }
 0x4a9   : > { %13173 = vmatmul.mubr.bf16.vlgmr.msra.gmra.mrb[0].mxu0 %v3623_v35  ;;  %9341 = vmatpush1.bf16.xpose.msra.mxu1 %v14030_v34  ;;  %v1386_v34 = vld [vmem:[%s15991_s30 + $0xbb0] sm:$0x11]  ;;  %v14230_v35 = vcombine.low %v1193_v21, %v1385_v22 }
 0x4aa   : > { %13181 = vmatpush1.bf16.xpose.msra.mxu0 %v14222_v38  ;;  %9372 = vmatprep.mubr.bf16.mxu1 %v2471_v39  ;;  %v3696_v38 = vcombine.high %v3686_v25, %v3686_v25  ;;  %v14041_v39 = vcombine.high %v1098_v29, %v1290_v30 }
 0x4ab   : > { %13212 = vmatprep.mubr.bf16.mxu0 %v3647_v41  ;;  %9380 = vmatprep.subr.bf16.mxu1 %v14033_v42  ;;  %v14233_v41 = vcombine.high %v1194_v33, %v1386_v34  ;;  %v2487_v42 = vrot.slane %v2473_v37, %v15997_v11 }
 0x4ac   : > { %13220 = vmatprep.subr.bf16.mxu0 %v14225_v44 }
 0x4ad   : > { %v2489_v44 = vcombine.high %v2487_v42, %v2487_v42 }
 0x4af   : > { %v2517_v54 = vrot.slane %v2489_v44, %v15997_v11  ;;  %v1103_v44 = vld [vmem:[%s15991_s30 + $0x2d8] sm:$0xff] }
 0x4b1   : > { %v2521_v2 = vcombine.high %v2517_v54, %v2517_v54 }
 0x4b4   : > { %9373 = vmatmul.mubr.bf16.vlgmr.msra.gmra.mrb[0].mxu1 %v2469_v49  ;;  %v14040_v49 = vcombine.low %v1098_v29, %v1290_v30  ;;  %v1198_v30 = vld [vmem:[%s15991_s30 + $0x5d0] sm:$0xff] }
 0x4b5   : > { %13213 = vmatmul.mubr.bf16.vlgmr.msra.gmra.mrb[0].mxu0 %v3645_v53  ;;  %9381 = vmatpush1.bf16.xpose.msra.mxu1 %v14032_v52  ;;  %v1387_v52 = vld [vmem:[%s15991_s30 + $0xbb8] sm:$0x11]  ;;  %v14232_v53 = vcombine.low %v1194_v33, %v1386_v34 }
 0x4b6   : > { %13221 = vmatpush1.bf16.xpose.msra.mxu0 %v14224_v56  ;;  %9412 = vmatprep.mubr.bf16.mxu1 %v2468_v57  ;;  %v14043_v56 = vcombine.high %v1099_v47, %v1291_v48  ;;  %v14235_v57 = vcombine.high %v1195_v51, %v1387_v52 }
 0x4b7   : > { %13252 = vmatprep.mubr.bf16.mxu0 %v3644_v58  ;;  %9420 = vmatprep.subr.bf16.mxu1 %v14035_v59  ;;  %v2503_v58 = vrot.slane %v2487_v42, %v15997_v11  ;;  %v1100_v59 = vld [vmem:[%s15991_s30 + $0x2c0] sm:$0xff] }
 0x4b8   : > { %13260 = vmatprep.subr.bf16.mxu0 %v14227_v60  ;;  %v1292_v60 = vld [vmem:[%s15991_s30 + $0x8c0] sm:$0x11] }
 0x4b9   : > { %v2519_v13 = vcombine.high %v2503_v58, %v2503_v58 }
 0x4c0   : > { %9413 = vmatmul.mubr.bf16.vlgmr.msra.gmra.mrb[0].mxu1 %v2454_v61  ;;  %v14042_v61 = vcombine.low %v1099_v47, %v1291_v48  ;;  %v1199_v48 = vld [vmem:[%s15991_s30 + $0x5d8] sm:$0xff] }
 0x4c1   : > { %13253 = vmatmul.mubr.bf16.vlgmr.msra.gmra.mrb[0].mxu0 %v3630_v1  ;;  %9421 = vmatpush1.bf16.xpose.msra.mxu1 %v14034_v0  ;;  %v1388_v0 = vld [vmem:[%s15991_s30 + $0xbc0] sm:$0x11]  ;;  %v14234_v1 = vcombine.low %v1195_v51, %v1387_v52 }
 0x4c2   : > { %13261 = vmatpush1.bf16.xpose.msra.mxu0 %v14226_v4  ;;  %9452 = vmatprep.mubr.bf16.mxu1 %v2472_v5  ;;  %v14045_v4 = vcombine.high %v1100_v59, %v1292_v60  ;;  %v986_v5 = vld [vmem:[%s16004_s6 + $0xb0] sm:$0xff] }
 0x4c3   : > { %13292 = vmatprep.mubr.bf16.mxu0 %v3648_v6  ;;  %9460 = vmatprep.subr.bf16.mxu1 %v14037_v7  ;;  %v14237_v6 = vcombine.high %v1196_v63, %v1388_v0  ;;  %v1010_v7 = vld [vmem:[%s16004_s6 + $0x170] sm:$0xff]  ;;  %v2529_v8 = vrot.slane %v986_v5, %v15997_v11  ;;  %v2522_v34 = vcombine.high %v986_v5, %v986_v5 }
 0x4c4   : > { %13300 = vmatprep.subr.bf16.mxu0 %v14229_v9  ;;  %v3705_v9 = vrot.slane %v1010_v7, %v15997_v11  ;;  %v3698_v37 = vcombine.high %v1010_v7, %v1010_v7 }
 0x4c5   : > { %v2537_v10 = vcombine.high %v2529_v8, %v2529_v8 }
 0x4c6   : > { %v3713_v12 = vcombine.high %v3705_v9, %v3705_v9  ;;  %v3721_v29 = vrot.slane %v3705_v9, %v15997_v11  ;;  %v3712_v40 = vrot.slane %v3698_v37, %v15997_v11 }
 0x4c7   : > { %v2559_v21 = vrot.slane %v2537_v10, %v15997_v11  ;;  %v1105_v10 = vld [vmem:[%s15991_s30 + $0x2e8] sm:$0xff] }
 0x4c8   : > { %v3735_v22 = vrot.slane %v3713_v12, %v15997_v11  ;;  %v3714_v42 = vcombine.high %v3712_v40, %v3712_v40  ;;  %v3743_v47 = vcombine.high %v3721_v29, %v3721_v29  ;;  %v1297_v12 = vld [vmem:[%s15991_s30 + $0x8e8] sm:$0x11] }
 0x4c9   : > { %v2569_v33 = vcombine.high %v2559_v21, %v2559_v21 }
 0x4ca   : > { %v3742_v52 = vrot.slane %v3714_v42, %v15997_v11  ;;  %v1299_v42 = vld [vmem:[%s15991_s30 + $0x8f8] sm:$0x11] }
 0x4cc   : > { %9453 = vmatmul.mubr.bf16.vlgmr.msra.gmra.mrb[0].mxu1 %v2470_v16  ;;  %v14044_v16 = vcombine.low %v1100_v59, %v1292_v60  ;;  %v3728_v59 = vrot.slane %v3712_v40, %v15997_v11  ;;  %v1200_v60 = vld [vmem:[%s15991_s30 + $0x5e0] sm:$0xff] }
 0x4cd   : > { %13293 = vmatmul.mubr.bf16.vlgmr.msra.gmra.mrb[0].mxu0 %v3646_v20  ;;  %9461 = vmatpush1.bf16.xpose.msra.mxu1 %v14036_v19  ;;  %v1389_v19 = vld [vmem:[%s15991_s30 + $0xbc8] sm:$0x11]  ;;  %v14236_v20 = vcombine.low %v1196_v63, %v1388_v0  ;;  %v3746_v0 = vcombine.high %v3742_v52, %v3742_v52 }
 0x4ce   : > { %13301 = vmatpush1.bf16.xpose.msra.mxu0 %v14228_v23  ;;  %9492 = vmatprep.mubr.bf16.mxu1 %v2510_v24  ;;  %v14047_v23 = vcombine.high %v1101_v14, %v1293_v15  ;;  %v14239_v24 = vcombine.high %v1197_v18, %v1389_v19 }
 0x4cf   : > { %13332 = vmatprep.mubr.bf16.mxu0 %v3686_v25  ;;  %9500 = vmatprep.subr.bf16.mxu1 %v14039_v26  ;;  %v2545_v25 = vrot.slane %v2529_v8, %v15997_v11  ;;  %v1102_v26 = vld [vmem:[%s15991_s30 + $0x2d0] sm:$0xff] }
 0x4d0   : > { %13340 = vmatprep.subr.bf16.mxu0 %v14231_v27  ;;  %v1294_v27 = vld [vmem:[%s15991_s30 + $0x8d0] sm:$0x11] }
 0x4d1   : > { %v2567_v43 = vcombine.high %v2545_v25, %v2545_v25 }
 0x4d8   : > { %9493 = vmatmul.mubr.bf16.vlgmr.msra.gmra.mrb[0].mxu1 %v2496_v28  ;;  %v14046_v28 = vcombine.low %v1101_v14, %v1293_v15  ;;  %v3744_v14 = vcombine.high %v3728_v59, %v3728_v59  ;;  %v1201_v15 = vld [vmem:[%s15991_s30 + $0x5e8] sm:$0xff] }
 0x4d9   : > { %13333 = vmatmul.mubr.bf16.vlgmr.msra.gmra.mrb[0].mxu0 %v3672_v32  ;;  %9501 = vmatpush1.bf16.xpose.msra.mxu1 %v14038_v31  ;;  %v1390_v31 = vld [vmem:[%s15991_s30 + $0xbd0] sm:$0x11]  ;;  %v14238_v32 = vcombine.low %v1197_v18, %v1389_v19 }
 0x4da   : > { %13341 = vmatpush1.bf16.xpose.msra.mxu0 %v14230_v35  ;;  %9532 = vmatprep.mubr.bf16.mxu1 %v2520_v36  ;;  %v3745_v35 = vcombine.high %v3735_v22, %v3735_v22  ;;  %v14049_v36 = vcombine.high %v1102_v26, %v1294_v27 }
 0x4db   : > { %13372 = vmatprep.mubr.bf16.mxu0 %v3696_v38  ;;  %9540 = vmatprep.subr.bf16.mxu1 %v14041_v39  ;;  %v14241_v38 = vcombine.high %v1198_v30, %v1390_v31  ;;  %v2536_v39 = vrot.slane %v2522_v34, %v15997_v11 }
 0x4dc   : > { %13380 = vmatprep.subr.bf16.mxu0 %v14233_v41 }
 0x4dd   : > { %v2538_v41 = vcombine.high %v2536_v39, %v2536_v39 }
 0x4df   : > { %v2566_v51 = vrot.slane %v2538_v41, %v15997_v11  ;;  %v1107_v41 = vld [vmem:[%s15991_s30 + $0x2f8] sm:$0xff] }
 0x4e1   : > { %v2570_v63 = vcombine.high %v2566_v51, %v2566_v51 }
 0x4e4   : > { %9533 = vmatmul.mubr.bf16.vlgmr.msra.gmra.mrb[0].mxu1 %v2518_v46  ;;  %v14048_v46 = vcombine.low %v1102_v26, %v1294_v27  ;;  %v1202_v27 = vld [vmem:[%s15991_s30 + $0x5f0] sm:$0xff] }
 0x4e5   : > { %13373 = vmatmul.mubr.bf16.vlgmr.msra.gmra.mrb[0].mxu0 %v3694_v50  ;;  %9541 = vmatpush1.bf16.xpose.msra.mxu1 %v14040_v49  ;;  %v1391_v49 = vld [vmem:[%s15991_s30 + $0xbd8] sm:$0x11]  ;;  %v14240_v50 = vcombine.low %v1198_v30, %v1390_v31 }
 0x4e6   : > { %13381 = vmatpush1.bf16.xpose.msra.mxu0 %v14232_v53  ;;  %9572 = vmatprep.mubr.bf16.mxu1 %v2517_v54  ;;  %v14051_v53 = vcombine.high %v1103_v44, %v1295_v45  ;;  %v14243_v54 = vcombine.high %v1199_v48, %v1391_v49 }
 0x4e7   : > { %13412 = vmatprep.mubr.bf16.mxu0 %v3693_v55  ;;  %9580 = vmatprep.subr.bf16.mxu1 %v14043_v56  ;;  %v2552_v55 = vrot.slane %v2536_v39, %v15997_v11  ;;  %v1104_v56 = vld [vmem:[%s15991_s30 + $0x2e0] sm:$0xff] }
 0x4e8   : > { %13420 = vmatprep.subr.bf16.mxu0 %v14235_v57  ;;  %v1296_v57 = vld [vmem:[%s15991_s30 + $0x8e0] sm:$0x11] }
 0x4e9   : > { %v2568_v9 = vcombine.high %v2552_v55, %v2552_v55 }
 0x4f0   : > { %9573 = vmatmul.mubr.bf16.vlgmr.msra.gmra.mrb[0].mxu1 %v2503_v58  ;;  %v14050_v58 = vcombine.low %v1103_v44, %v1295_v45  ;;  %v1203_v45 = vld [vmem:[%s15991_s30 + $0x5f8] sm:$0xff] }
 0x4f1   : > { %13413 = vmatmul.mubr.bf16.vlgmr.msra.gmra.mrb[0].mxu0 %v3679_v62  ;;  %9581 = vmatpush1.bf16.xpose.msra.mxu1 %v14042_v61  ;;  %v1392_v61 = vld [vmem:[%s15991_s30 + $0xbe0] sm:$0x11]  ;;  %v14242_v62 = vcombine.low %v1199_v48, %v1391_v49 }
 0x4f2   : > { %13421 = vmatpush1.bf16.xpose.msra.mxu0 %v14234_v1  ;;  %9612 = vmatprep.mubr.bf16.mxu1 %v2521_v2  ;;  %v14053_v1 = vcombine.high %v1104_v56, %v1296_v57  ;;  %v987_v2 = vld [vmem:[%s16004_s6 + $0xb8] sm:$0xff] }
 0x4f3   : > { %13452 = vmatprep.mubr.bf16.mxu0 %v3697_v3  ;;  %9620 = vmatprep.subr.bf16.mxu1 %v14045_v4  ;;  %v14245_v3 = vcombine.high %v1200_v60, %v1392_v61  ;;  %v1011_v4 = vld [vmem:[%s16004_s6 + $0x178] sm:$0xff]  ;;  %v2578_v5 = vrot.slane %v987_v2, %v15997_v11  ;;  %v2571_v31 = vcombine.high %v987_v2, %v987_v2 }
 0x4f4   : > { %13460 = vmatprep.subr.bf16.mxu0 %v14237_v6  ;;  %v3754_v6 = vrot.slane %v1011_v4, %v15997_v11  ;;  %v3747_v34 = vcombine.high %v1011_v4, %v1011_v4  ;;  %v14253_v4 = vld [vmem:[%s16760_s2] ss:$0 sm:$0xff] (!%p14252_p9) }
 0x4f5   : > { %v2586_v7 = vcombine.high %v2578_v5, %v2578_v5 }
 0x4f6   : > { %v3762_v8 = vcombine.high %v3754_v6, %v3754_v6  ;;  %v3770_v26 = vrot.slane %v3754_v6, %v15997_v11  ;;  %v3761_v37 = vrot.slane %v3747_v34, %v15997_v11 }
 0x4f7   : > { %v2608_v18 = vrot.slane %v2586_v7, %v15997_v11 }
 0x4f8   : > { %v3784_v19 = vrot.slane %v3762_v8, %v15997_v11  ;;  %v3763_v39 = vcombine.high %v3761_v37, %v3761_v37  ;;  %v3792_v44 = vcombine.high %v3770_v26, %v3770_v26 }
 0x4f9   : > { %v2618_v30 = vcombine.high %v2608_v18, %v2608_v18 }
 0x4fa   : > { %v3791_v49 = vrot.slane %v3763_v39, %v15997_v11 }
 0x4fc   : > { %9613 = vmatmul.mubr.bf16.vlgmr.msra.gmra.mrb[0].mxu1 %v2519_v13  ;;  %v14052_v13 = vcombine.low %v1104_v56, %v1296_v57  ;;  %v3795_v57 = vcombine.high %v3791_v49, %v3791_v49 }
 0x4fd   : > { %13453 = vmatmul.mubr.bf16.vlgmr.msra.gmra.mrb[0].mxu0 %v3695_v17  ;;  %9621 = vmatpush1.bf16.xpose.msra.mxu1 %v14044_v16  ;;  %v1393_v16 = vld [vmem:[%s15991_s30 + $0xbe8] sm:$0x11]  ;;  %v14244_v17 = vcombine.low %v1200_v60, %v1392_v61 }
 0x4fe   : > { %13461 = vmatpush1.bf16.xpose.msra.mxu0 %v14236_v20  ;;  %9652 = vmatprep.mubr.bf16.mxu1 %v2559_v21  ;;  %v14055_v20 = vcombine.high %v1105_v10, %v1297_v12  ;;  %v14247_v21 = vcombine.high %v1201_v15, %v1393_v16 }
 0x4ff   : > { %13492 = vmatprep.mubr.bf16.mxu0 %v3735_v22  ;;  %9660 = vmatprep.subr.bf16.mxu1 %v14047_v23  ;;  %v2594_v22 = vrot.slane %v2578_v5, %v15997_v11  ;;  %v1106_v23 = vld [vmem:[%s15991_s30 + $0x2f0] sm:$0xff] }
 0x500   : > { %13500 = vmatprep.subr.bf16.mxu0 %v14239_v24  ;;  %v1298_v24 = vld [vmem:[%s15991_s30 + $0x8f0] sm:$0x11] }
 0x501   : > { %v2616_v40 = vcombine.high %v2594_v22, %v2594_v22 }
 0x508   : > { %9653 = vmatmul.mubr.bf16.vlgmr.msra.gmra.mrb[0].mxu1 %v2545_v25  ;;  %v14054_v25 = vcombine.low %v1105_v10, %v1297_v12 }
 0x509   : > { %13493 = vmatmul.mubr.bf16.vlgmr.msra.gmra.mrb[0].mxu0 %v3721_v29  ;;  %9661 = vmatpush1.bf16.xpose.msra.mxu1 %v14046_v28  ;;  %v1394_v28 = vld [vmem:[%s15991_s30 + $0xbf0] sm:$0x11]  ;;  %v14246_v29 = vcombine.low %v1201_v15, %v1393_v16 }
 0x50a   : > { %13501 = vmatpush1.bf16.xpose.msra.mxu0 %v14238_v32  ;;  %9692 = vmatprep.mubr.bf16.mxu1 %v2569_v33  ;;  %v3794_v32 = vcombine.high %v3784_v19, %v3784_v19  ;;  %v14057_v33 = vcombine.high %v1106_v23, %v1298_v24 }
 0x50b   : > { %13532 = vmatprep.mubr.bf16.mxu0 %v3745_v35  ;;  %9700 = vmatprep.subr.bf16.mxu1 %v14049_v36  ;;  %v14249_v35 = vcombine.high %v1202_v27, %v1394_v28  ;;  %v2585_v36 = vrot.slane %v2571_v31, %v15997_v11 }
 0x50c   : > { %13540 = vmatprep.subr.bf16.mxu0 %v14241_v38 }
 0x50d   : > { %v2587_v38 = vcombine.high %v2585_v36, %v2585_v36 }
 0x50f   : > { %v2615_v48 = vrot.slane %v2587_v38, %v15997_v11 }
 0x511   : > { %v2619_v56 = vcombine.high %v2615_v48, %v2615_v48 }
 0x514   : > { %9693 = vmatmul.mubr.bf16.vlgmr.msra.gmra.mrb[0].mxu1 %v2567_v43  ;;  %v14056_v43 = vcombine.low %v1106_v23, %v1298_v24 }
 0x515   : > { %13533 = vmatmul.mubr.bf16.vlgmr.msra.gmra.mrb[0].mxu0 %v3743_v47  ;;  %9701 = vmatpush1.bf16.xpose.msra.mxu1 %v14048_v46  ;;  %v1395_v46 = vld [vmem:[%s15991_s30 + $0xbf8] sm:$0x11]  ;;  %v14248_v47 = vcombine.low %v1202_v27, %v1394_v28 }
 0x516   : > { %13541 = vmatpush1.bf16.xpose.msra.mxu0 %v14240_v50  ;;  %9732 = vmatprep.mubr.bf16.mxu1 %v2566_v51  ;;  %v14059_v50 = vcombine.high %v1107_v41, %v1299_v42  ;;  %v14251_v51 = vcombine.high %v1203_v45, %v1395_v46 }
 0x517   : > { %13572 = vmatprep.mubr.bf16.mxu0 %v3742_v52  ;;  %9740 = vmatprep.subr.bf16.mxu1 %v14051_v53  ;;  %v2601_v52 = vrot.slane %v2585_v36, %v15997_v11  ;;  %v14058_v53 = vcombine.low %v1107_v41, %v1299_v42 }
 0x518   : > { %13580 = vmatprep.subr.bf16.mxu0 %v14243_v54  ;;  %v3777_v54 = vrot.slane %v3761_v37, %v15997_v11 }
 0x520   : > { %9733 = vmatmul.mubr.bf16.vlgmr.msra.gmra.mrb[0].mxu1 %v2552_v55  ;;  %v14250_v55 = vcombine.low %v1203_v45, %v1395_v46 }
 0x521   : > { %13573 = vmatmul.mubr.bf16.vlgmr.msra.gmra.mrb[0].mxu0 %v3728_v59  ;;  %9741 = vmatpush1.bf16.xpose.msra.mxu1 %v14050_v58  ;;  %v2617_v58 = vcombine.high %v2601_v52, %v2601_v52  ;;  %v3793_v59 = vcombine.high %v3777_v54, %v3777_v54 }
 0x522   : > { %13581 = vmatpush1.bf16.xpose.msra.mxu0 %v14242_v62  ;;  %9772 = vmatprep.mubr.bf16.mxu1 %v2570_v63 }
 0x523   : > { %13612 = vmatprep.mubr.bf16.mxu0 %v3746_v0  ;;  %9780 = vmatprep.subr.bf16.mxu1 %v14053_v1 }
 0x524   : > { %13620 = vmatprep.subr.bf16.mxu0 %v14245_v3 }
 0x52c   : > { %9773 = vmatmul.mubr.bf16.vlgmr.msra.gmra.mrb[0].mxu1 %v2568_v9 }
 0x52d   : > { %13613 = vmatmul.mubr.bf16.vlgmr.msra.gmra.mrb[0].mxu0 %v3744_v14  ;;  %9781 = vmatpush1.bf16.xpose.msra.mxu1 %v14052_v13 }
 0x52e   : > { %13621 = vmatpush1.bf16.xpose.msra.mxu0 %v14244_v17  ;;  %9812 = vmatprep.mubr.bf16.mxu1 %v2608_v18 }
 0x52f   : > { %13652 = vmatprep.mubr.bf16.mxu0 %v3784_v19  ;;  %9820 = vmatprep.subr.bf16.mxu1 %v14055_v20 }
 0x530   : > { %13660 = vmatprep.subr.bf16.mxu0 %v14247_v21 }
 0x538   : > { %9813 = vmatmul.mubr.bf16.vlgmr.msra.gmra.mrb[0].mxu1 %v2594_v22 }
 0x539   : > { %13653 = vmatmul.mubr.bf16.vlgmr.msra.gmra.mrb[0].mxu0 %v3770_v26  ;;  %9821 = vmatpush1.bf16.xpose.msra.mxu1 %v14054_v25 }
 0x53a   : > { %13661 = vmatpush1.bf16.xpose.msra.mxu0 %v14246_v29  ;;  %9852 = vmatprep.mubr.bf16.mxu1 %v2618_v30 }
 0x53b   : > { %13692 = vmatprep.mubr.bf16.mxu0 %v3794_v32  ;;  %9860 = vmatprep.subr.bf16.mxu1 %v14057_v33 }
 0x53c   : > { %13700 = vmatprep.subr.bf16.mxu0 %v14249_v35 }
 0x544   : > { %9853 = vmatmul.mubr.bf16.vlgmr.msra.gmra.mrb[0].mxu1 %v2616_v40 }
 0x545   : > { %13693 = vmatmul.mubr.bf16.vlgmr.msra.gmra.mrb[0].mxu0 %v3792_v44  ;;  %9861 = vmatpush1.bf16.xpose.msra.mxu1 %v14056_v43 }
 0x546   : > { %13701 = vmatpush1.bf16.xpose.msra.mxu0 %v14248_v47  ;;  %9892 = vmatprep.mubr.bf16.mxu1 %v2615_v48 }
 0x547   : > { %13732 = vmatprep.mubr.bf16.mxu0 %v3791_v49  ;;  %9900 = vmatprep.subr.bf16.mxu1 %v14059_v50 }
 0x548   : > { %13740 = vmatprep.subr.bf16.mxu0 %v14251_v51 }
 0x550   : > { %9893 = vmatmul.mubr.bf16.vlgmr.msra.gmra.mrb[0].mxu1 %v2601_v52 }
 0x551   : > { %13733 = vmatmul.mubr.bf16.vlgmr.msra.gmra.mrb[0].mxu0 %v3777_v54  ;;  %9901 = vmatpush1.bf16.xpose.msra.mxu1 %v14058_v53 }
 0x552   : > { %13741 = vmatpush1.bf16.xpose.msra.mxu0 %v14250_v55  ;;  %9932 = vmatprep.mubr.bf16.mxu1 %v2619_v56 }
 0x553   : > { %13772 = vmatprep.mubr.bf16.mxu0 %v3795_v57 }
 0x55c   : > { %9933 = vmatmul.mubr.bf16.vlgmr.msra.gmra.mrb[0].mxu1 %v2617_v58 }
 0x55d   : > { %13773 = vmatmul.mubr.bf16.vlgmr.msra.gmra.mrb[0].mxu0 %v3793_v59 }
 0x62d   : > { %13783 = sbr.rel (%p14252_p9) target bundleno = 1590 (0x636), region = 59 }
 0x62f   : > { %v9934_v60 = vpop.f32.mrb[0].mxu1 }
 0x630   : > { %v13774_v61 = vpop.f32.mrb[0].mxu0  ;;  %v9936_v62 = vpop.f32.mrb[1].mxu1 }
 0x631   : > { %v14260_v63 = vadd.f32 %v13774_v61, %v9934_v60  ;;  %v13776_v0 = vpop.f32.mrb[1].mxu0  ;;  %v9937_v1 = vpop.f32.mrb[2].mxu1 }
 0x632   : > { %v13777_v11 = vpop.f32.mrb[2].mxu0  ;;  %v9938_v2 = vpop.f32.mrb[3].mxu1 }
 0x633   : > { %v13778_v3 = vpop.f32.mrb[3].mxu0  ;;  %v13791_v5 = vadd.f32 (!%p14252_p9), %v14260_v63, %v14253_v4 }
 0x635   : > { %13793 = vst.msk [vmem:[#allocation3] sm:$0x3] %vm13792_vm0, %v13791_v5 }
 0x636 PF: > { %p14254_p10 = scmp.le.s32.totalorder %s15195_s15, 0 }
 0x637   : > { %vm13800_vm1 = vcmask (!%p14254_p10), 74752  }
 0x638   : > { %13797 = sbr.rel (%p14254_p10) target bundleno = 1600 (0x640), region = 63 }
 0x63c   : > { %v13798_v6 = vld [vmem:[#allocation3] sm:$0x3] (!%p14254_p10) }
 0x63d   : > { %v13799_v7 = vadd.f32 (!%p14254_p10), %v14260_v63, %v13798_v6 }
 0x63f   : > { %13801 = vst.msk [vmem:[#allocation3] sm:$0x3] %vm13800_vm1, %v13799_v7 }
 0x640 PF: > { %p15027_p11 = scmp.eq.s32.totalorder %s15195_s15, 3  ;;  %s15158_s9 = smov [#allocation3]  }
 0x641   : > { %s13809_s10 = sshll.u32 %s15158_s9, 4  ;;  %s13810_s10 = int_to_ptr.vmem [resolvable:$true] %s13809_s10 }
 0x642   : > { %s15103_s11 = scalar_lea.vmem %s13810_s10, 32  ;;  %p15110_p1 = scmp.lt.s32.totalorder %s13810_s10, %s13810_s10 }
 0x643   : > { %p15104_p12 = scmp.ne.s32.totalorder %s13810_s10, %s15103_s11  ;;  %p15111_p2 = scmp.lt.s32.totalorder %s15103_s11, %s15103_s11 }
 0x645   : > { %p15105_p13 = pnand %p15104_p12, %p15027_p11  ;;  %p15112_p3 = por %p15111_p2, %p15110_p1 }
 0x647   : > { %p15106_p0 = pneg %p15105_p13 }
 0x649   : > { %p15113_p4 = pnand %p15112_p3, %p15106_p0 }
 0x64b   : > { %15116 = shalt.err (!%p15113_p4)
}
 0x64c   : > { %s15117_s17 = scalar_lea.hbm %s16761_s3, 32 }
 0x64d   : > { %p15118_p5 = scmp.ne.s32.totalorder %s16761_s3, %s15117_s17  ;;  %p15123_p8 = scmp.lt.u32.totalorder %s15117_s17, %s16761_s3 }
 0x64f   : > { %p15119_p6 = pnand %p15118_p5, %p15027_p11 }
 0x651   : > { %p15120_p7 = pneg %p15119_p6 }
 0x653   : > { %p15125_p9 = pnand %p15123_p8, %p15120_p7 }
 0x655   : > { %15128 = shalt.err (!%p15125_p9)
}
 0x656   : > { %15024 = dma.vmem_to_hbm [thread:$0]  (%p15027_p11), %s13810_s10, 32, %s16761_s3, [#allocation4]  }
 0x657   : > { %15142 = dma.done.wait (%p15027_p11), [#allocation4], 32  }
 0x658   : > { %15144 = vsyncadd (%p15027_p11), [#allocation4], 4294967264 }
 0x659 PF: > { %p11_p10 = scmp.ge.s32.totalorder %s15198_s16, 6   ;;  %s16762_s12 = smov %s15151_s13 }
 0x65a   : > { %s16763_s13 = smov %s15207_s19  ;;  %s16764_s14 = smov %s15198_s16 }
 0x65b   :  { %13 = sbr.rel (!%p11_p10) target bundleno = 2 (0x2), region = 98 }
 0x662   :  { %13822 = vsyncpa [#allocation4], 1 }
 0x663   :  { %13824 = vsyncpa [#allocation4 + $0x1], 1 }

</bundles_post_ra>
